<compile_context>
chip_gen: v7x
topology: tpu7x:2x2x1
jax: 0.10.0
libtpu: 0.0.40
codegen_flags: <defaults>
</compile_context>

<pallas_src>
import functools

import jax
import jax.numpy as jnp
from jax.experimental import pallas as pl
from jax.experimental.pallas import tpu as pltpu


# ---------------------------------------------------------------------------
# Fused kernel: channel mean/max pool + k x k conv (2 -> 1, no bias) + sigmoid
# ---------------------------------------------------------------------------
def _fused_sa_kernel(x_ref, w_ref, o_ref, pbuf, *, H, W, k, pad):
    # x_ref: (1, C, H, W) f32            w_ref: (2*k*k,) f32 (SMEM)
    # o_ref: (1, 1, H, W) f32            pbuf : (2, H+2p, W+2p) f32 VMEM scratch
    x = x_ref[0]                                     # (C, H, W)

    # Zero-padded pooled planes built directly in VMEM scratch (no HBM trip).
    pbuf[...] = jnp.zeros_like(pbuf)
    pbuf[0, pad:pad + H, pad:pad + W] = jnp.mean(x, axis=0)
    pbuf[1, pad:pad + H, pad:pad + W] = jnp.max(x, axis=0)

    # The conv is far too narrow for the MXU (2 in / 1 out channels), so lower
    # it to 2*k*k shifted VPU multiply-accumulates.  The lane-offset (W) slice
    # is hoisted out of the dh loop: only 2*k lane shifts total.
    acc = jnp.zeros((H, W), jnp.float32)
    for c in range(2):
        plane = pbuf[c]                              # (Hp, Wp)
        for dw in range(k):
            col = plane[:, dw:dw + W]                # (Hp, W): one lane shift
            for dh in range(k):
                wv = w_ref[c * k * k + dh * k + dw]  # SMEM scalar
                acc = acc + wv * col[dh:dh + H, :]
    o_ref[0, 0] = jax.nn.sigmoid(acc)


def _spatial_attention_fused(x, w_flat, ksize, pad):
    N, C, H, W = x.shape
    Hp, Wp = H + 2 * pad, W + 2 * pad
    kernel = functools.partial(_fused_sa_kernel, H=H, W=W, k=ksize, pad=pad)
    return pl.pallas_call(
        kernel,
        out_shape=jax.ShapeDtypeStruct((N, 1, H, W), jnp.float32),
        grid=(N,),
        in_specs=[
            pl.BlockSpec((1, C, H, W), lambda n: (n, 0, 0, 0)),
            pl.BlockSpec(memory_space=pltpu.MemorySpace.SMEM),
        ],
        out_specs=pl.BlockSpec((1, 1, H, W), lambda n: (n, 0, 0, 0)),
        scratch_shapes=[pltpu.VMEM((2, Hp, Wp), jnp.float32)],
        compiler_params=pltpu.CompilerParams(
            dimension_semantics=("parallel",)),
    )(x, w_flat)


# ---------------------------------------------------------------------------
# Fallback path (large C*H*W): channel pool tiled over (N, H) + conv kernel
# ---------------------------------------------------------------------------
def _channel_pool_kernel(x_ref, o_ref):
    # x_ref: (1, C, th, W) -> o_ref: (1, 2, th, W)   [0]=mean, [1]=max over C
    x = x_ref[0]
    o_ref[0, 0] = jnp.mean(x, axis=0)
    o_ref[0, 1] = jnp.max(x, axis=0)


def _pick_h_tile(H, C, W, budget_bytes=4 << 20):
    """Largest H tile whose double-buffered f32 block stays under budget.
    Tiles are multiples of 8 sublanes; the full H is always a legal block."""
    th = H
    while th > 8 and 2 * (C + 2) * th * W * 4 > budget_bytes:
        th //= 2
    if th != H and th % 8 != 0:
        th = max(8, (th // 8) * 8)
    return th


def _channel_pool(x):
    N, C, H, W = x.shape
    th = _pick_h_tile(H, C, W)
    return pl.pallas_call(
        _channel_pool_kernel,
        out_shape=jax.ShapeDtypeStruct((N, 2, H, W), jnp.float32),
        grid=(N, pl.cdiv(H, th)),
        in_specs=[pl.BlockSpec((1, C, th, W), lambda n, h: (n, 0, h, 0))],
        out_specs=pl.BlockSpec((1, 2, th, W), lambda n, h: (n, 0, h, 0)),
        compiler_params=pltpu.CompilerParams(
            dimension_semantics=("parallel", "parallel")),
    )(x)


def _conv_sigmoid_kernel(p_ref, w_ref, o_ref, *, H, W, k):
    # p_ref: (1, 2, H+2p, W+2p) zero-padded pooled map (VMEM)
    # w_ref: (2*k*k,) conv weights (SMEM)     o_ref: (1, 1, H, W)
    acc = jnp.zeros((H, W), jnp.float32)
    for c in range(2):
        plane = p_ref[0, c]                          # (Hp, Wp)
        for dw in range(k):
            col = plane[:, dw:dw + W]                # one lane shift per (c,dw)
            for dh in range(k):
                wv = w_ref[c * k * k + dh * k + dw]
                acc = acc + wv * col[dh:dh + H, :]
    o_ref[0, 0] = jax.nn.sigmoid(acc)


def _conv2_sigmoid(pooled, w_flat, ksize, pad):
    N, _, H, W = pooled.shape
    # TODO(synk): for extremely large H*W the padded per-batch pooled block
    # would also need H tiling with halos; typical attention-map sizes fit.
    pooled_pad = jnp.pad(pooled, ((0, 0), (0, 0), (pad, pad), (pad, pad)))
    Hp, Wp = H + 2 * pad, W + 2 * pad
    kernel = functools.partial(_conv_sigmoid_kernel, H=H, W=W, k=ksize)
    return pl.pallas_call(
        kernel,
        out_shape=jax.ShapeDtypeStruct((N, 1, H, W), jnp.float32),
        grid=(N,),
        in_specs=[
            pl.BlockSpec((1, 2, Hp, Wp), lambda n: (n, 0, 0, 0)),
            pl.BlockSpec(memory_space=pltpu.MemorySpace.SMEM),
        ],
        out_specs=pl.BlockSpec((1, 1, H, W), lambda n: (n, 0, 0, 0)),
        compiler_params=pltpu.CompilerParams(
            dimension_semantics=("parallel",)),
    )(pooled_pad, w_flat)


# ---------------------------------------------------------------------------
# Public entry point
# ---------------------------------------------------------------------------
def _fused_vmem_bytes(C, H, W, pad):
    Hp, Wp = H + 2 * pad, W + 2 * pad
    # double-buffered x block + double-buffered output block + scratch planes
    return 4 * (2 * C * H * W + 2 * H * W + 2 * Hp * Wp)


def spatial_attention_forward(x, weight, kernel_size=7, *, force_split=False):
    """x: (N, C, H, W), weight: (1, 2, k, k) (PyTorch Conv2d layout).

    Returns sigmoid(conv2d(cat([mean_c(x), max_c(x)]), weight, padding=k//2)).
    """
    assert kernel_size in (3, 7), "kernel size must be 3 or 7"
    pad = 3 if kernel_size == 7 else 1
    x = x.astype(jnp.float32)
    w_flat = weight.reshape(-1).astype(jnp.float32)          # (2*k*k,)
    _, C, H, W = x.shape

    # Fused single-kernel path whenever the per-batch slab fits comfortably in
    # the default scoped VMEM (conservative for v5e's 16 MiB default).
    if not force_split and _fused_vmem_bytes(C, H, W, pad) <= (12 << 20):
        return _spatial_attention_fused(x, w_flat, kernel_size, pad)

    pooled = _channel_pool(x)
    return _conv2_sigmoid(pooled, w_flat, kernel_size, pad)


if __name__ == "__main__":
    key = jax.random.PRNGKey(0)
    kx, kw = jax.random.split(key)

    N, C, H, W, ksize = 2, 4, 16, 16, 7
    x = jax.random.normal(kx, (N, C, H, W), jnp.float32)
    # PyTorch Conv2d(2, 1, 7, padding=3, bias=False) weight layout: (1, 2, k, k)
    weight = 0.05 * jax.random.normal(kw, (1, 2, ksize, ksize), jnp.float32)

    # Pure-JAX reference (same math, same f32 order).
    pooled_ref = jnp.concatenate(
        [x.mean(axis=1, keepdims=True), x.max(axis=1, keepdims=True)], axis=1)
    pad = 3
    pp = jnp.pad(pooled_ref, ((0, 0), (0, 0), (pad, pad), (pad, pad)))
    ref_acc = sum(
        weight[0, c, dh, dw] * pp[:, c, dh:dh + H, dw:dw + W]
        for c in range(2) for dh in range(ksize) for dw in range(ksize))
    ref = jax.nn.sigmoid(ref_acc)[:, None, :, :]

    # Fused (default) path.
    fwd = jax.jit(functools.partial(spatial_attention_forward, kernel_size=ksize))
    out = fwd(x, weight)
    jax.block_until_ready(out)
    assert out.shape == (N, 1, H, W)
    assert jnp.allclose(out, ref, atol=1e-4, rtol=1e-4), float(jnp.abs(out - ref).max())

    # Large-C fallback (two-kernel) path, exercised at small shapes.
    fwd_split = jax.jit(functools.partial(
        spatial_attention_forward, kernel_size=ksize, force_split=True))
    out_split = fwd_split(x, weight)
    jax.block_until_ready(out_split)
    assert jnp.allclose(out_split, ref, atol=1e-4, rtol=1e-4), \
        float(jnp.abs(out_split - ref).max())

    print("KERNEL_OK")
</pallas_src>

<mosaic_0001>
module attributes {stable_mosaic.version = 11 : i64} {
  func.func @_fused_sa_kernel(%arg0: i32, %arg1: memref<1x4x16x16xf32, #tpu.memory_space<vmem>>, %arg2: memref<98xf32, #tpu.memory_space<smem>>, %arg3: memref<1x1x16x16xf32, #tpu.memory_space<vmem>>, %arg4: memref<2x22x22xf32, #tpu.memory_space<vmem>>) attributes {dimension_semantics = [#tpu.dimension_semantics<parallel>], iteration_bounds = array<i64: 2>, scalar_prefetch = 0 : i64, scratch_operands = 1 : i64, tpu.core_type = #tpu.core_type<tc>, window_params = [{transform_indices = @transform_0, window_bounds = array<i64: 1, 4, 16, 16>}, {transform_indices = @transform_1, window_bounds = array<i64: 98>}, {transform_indices = @transform_2, window_bounds = array<i64: 1, 1, 16, 16>}]} {
    %c0 = arith.constant 0 : index
    %c0_0 = arith.constant 0 : index
    %c0_1 = arith.constant 0 : index
    %c0_2 = arith.constant 0 : index
    %0 = vector.load %arg1[%c0, %c0_0, %c0_1, %c0_2] : memref<1x4x16x16xf32, #tpu.memory_space<vmem>>, vector<1x4x16x16xf32>
    %1 = vector.shape_cast %0 : vector<1x4x16x16xf32> to vector<4x16x16xf32>
    %cst = arith.constant 0.000000e+00 : f32
    %2 = vector.broadcast %cst : f32 to vector<2x22x22xf32>
    %c0_3 = arith.constant 0 : index
    %c0_4 = arith.constant 0 : index
    %c0_5 = arith.constant 0 : index
    %3 = vector.load %arg4[%c0_3, %c0_4, %c0_5] : memref<2x22x22xf32, #tpu.memory_space<vmem>>, vector<2x22x22xf32>
    tpu.vector_store %arg4[%c0_3, %c0_4, %c0_5], %2 {strides = array<i32>} : memref<2x22x22xf32, #tpu.memory_space<vmem>>, vector<2x22x22xf32>,
    %cst_6 = arith.constant dense<0.000000e+00> : vector<16x16xf32>
    %4 = vector.multi_reduction <add>, %1, %cst_6 [0] : vector<4x16x16xf32> to vector<16x16xf32>
    %cst_7 = arith.constant 4.000000e+00 : f32
    %5 = vector.broadcast %cst_7 : f32 to vector<16x16xf32>
    %6 = arith.divf %4, %5 : vector<16x16xf32>
    %c0_8 = arith.constant 0 : index
    %c3 = arith.constant 3 : index
    %c3_9 = arith.constant 3 : index
    %7 = vector.load %arg4[%c0_8, %c3, %c3_9] : memref<2x22x22xf32, #tpu.memory_space<vmem>>, vector<1x16x16xf32>
    %8 = vector.shape_cast %7 : vector<1x16x16xf32> to vector<16x16xf32>
    %9 = vector.shape_cast %6 : vector<16x16xf32> to vector<1x16x16xf32>
    tpu.vector_store %arg4[%c0_8, %c3, %c3_9], %9 {strides = array<i32>} : memref<2x22x22xf32, #tpu.memory_space<vmem>>, vector<1x16x16xf32>,
    %cst_10 = arith.constant dense<0xFF800000> : vector<16x16xf32>
    %10 = vector.multi_reduction <maximumf>, %1, %cst_10 [0] : vector<4x16x16xf32> to vector<16x16xf32>
    %c1 = arith.constant 1 : index
    %c3_11 = arith.constant 3 : index
    %c3_12 = arith.constant 3 : index
    %11 = vector.load %arg4[%c1, %c3_11, %c3_12] : memref<2x22x22xf32, #tpu.memory_space<vmem>>, vector<1x16x16xf32>
    %12 = vector.shape_cast %11 : vector<1x16x16xf32> to vector<16x16xf32>
    %13 = vector.shape_cast %10 : vector<16x16xf32> to vector<1x16x16xf32>
    tpu.vector_store %arg4[%c1, %c3_11, %c3_12], %13 {strides = array<i32>} : memref<2x22x22xf32, #tpu.memory_space<vmem>>, vector<1x16x16xf32>,
    %cst_13 = arith.constant 0.000000e+00 : f32
    %14 = vector.broadcast %cst_13 : f32 to vector<16x16xf32>
    %c0_14 = arith.constant 0 : index
    %c0_15 = arith.constant 0 : index
    %c0_16 = arith.constant 0 : index
    %15 = vector.load %arg4[%c0_14, %c0_15, %c0_16] : memref<2x22x22xf32, #tpu.memory_space<vmem>>, vector<1x22x22xf32>
    %16 = vector.shape_cast %15 : vector<1x22x22xf32> to vector<22x22xf32>
    %17 = vector.extract_strided_slice %16 {offsets = [0, 0], sizes = [22, 16], strides = [1, 1]} : vector<22x22xf32> to vector<22x16xf32>
    %c0_17 = arith.constant 0 : index
    %18 = memref.load %arg2[%c0_17] : memref<98xf32, #tpu.memory_space<smem>>
    %19 = vector.extract_strided_slice %17 {offsets = [0, 0], sizes = [16, 16], strides = [1, 1]} : vector<22x16xf32> to vector<16x16xf32>
    %20 = vector.broadcast %18 : f32 to vector<16x16xf32>
    %21 = arith.mulf %20, %19 : vector<16x16xf32>
    %22 = arith.addf %14, %21 : vector<16x16xf32>
    %c7 = arith.constant 7 : index
    %23 = memref.load %arg2[%c7] : memref<98xf32, #tpu.memory_space<smem>>
    %24 = vector.extract_strided_slice %17 {offsets = [1, 0], sizes = [16, 16], strides = [1, 1]} : vector<22x16xf32> to vector<16x16xf32>
    %25 = vector.broadcast %23 : f32 to vector<16x16xf32>
    %26 = arith.mulf %25, %24 : vector<16x16xf32>
    %27 = arith.addf %22, %26 : vector<16x16xf32>
    %c14 = arith.constant 14 : index
    %28 = memref.load %arg2[%c14] : memref<98xf32, #tpu.memory_space<smem>>
    %29 = vector.extract_strided_slice %17 {offsets = [2, 0], sizes = [16, 16], strides = [1, 1]} : vector<22x16xf32> to vector<16x16xf32>
    %30 = vector.broadcast %28 : f32 to vector<16x16xf32>
    %31 = arith.mulf %30, %29 : vector<16x16xf32>
    %32 = arith.addf %27, %31 : vector<16x16xf32>
    %c21 = arith.constant 21 : index
    %33 = memref.load %arg2[%c21] : memref<98xf32, #tpu.memory_space<smem>>
    %34 = vector.extract_strided_slice %17 {offsets = [3, 0], sizes = [16, 16], strides = [1, 1]} : vector<22x16xf32> to vector<16x16xf32>
    %35 = vector.broadcast %33 : f32 to vector<16x16xf32>
    %36 = arith.mulf %35, %34 : vector<16x16xf32>
    %37 = arith.addf %32, %36 : vector<16x16xf32>
    %c28 = arith.constant 28 : index
    %38 = memref.load %arg2[%c28] : memref<98xf32, #tpu.memory_space<smem>>
    %39 = vector.extract_strided_slice %17 {offsets = [4, 0], sizes = [16, 16], strides = [1, 1]} : vector<22x16xf32> to vector<16x16xf32>
    %40 = vector.broadcast %38 : f32 to vector<16x16xf32>
    %41 = arith.mulf %40, %39 : vector<16x16xf32>
    %42 = arith.addf %37, %41 : vector<16x16xf32>
    %c35 = arith.constant 35 : index
    %43 = memref.load %arg2[%c35] : memref<98xf32, #tpu.memory_space<smem>>
    %44 = vector.extract_strided_slice %17 {offsets = [5, 0], sizes = [16, 16], strides = [1, 1]} : vector<22x16xf32> to vector<16x16xf32>
    %45 = vector.broadcast %43 : f32 to vector<16x16xf32>
    %46 = arith.mulf %45, %44 : vector<16x16xf32>
    %47 = arith.addf %42, %46 : vector<16x16xf32>
    %c42 = arith.constant 42 : index
    %48 = memref.load %arg2[%c42] : memref<98xf32, #tpu.memory_space<smem>>
    %49 = vector.extract_strided_slice %17 {offsets = [6, 0], sizes = [16, 16], strides = [1, 1]} : vector<22x16xf32> to vector<16x16xf32>
    %50 = vector.broadcast %48 : f32 to vector<16x16xf32>
    %51 = arith.mulf %50, %49 : vector<16x16xf32>
    %52 = arith.addf %47, %51 : vector<16x16xf32>
    %53 = vector.extract_strided_slice %16 {offsets = [0, 1], sizes = [22, 16], strides = [1, 1]} : vector<22x22xf32> to vector<22x16xf32>
    %c1_18 = arith.constant 1 : index
    %54 = memref.load %arg2[%c1_18] : memref<98xf32, #tpu.memory_space<smem>>
    %55 = vector.extract_strided_slice %53 {offsets = [0, 0], sizes = [16, 16], strides = [1, 1]} : vector<22x16xf32> to vector<16x16xf32>
    %56 = vector.broadcast %54 : f32 to vector<16x16xf32>
    %57 = arith.mulf %56, %55 : vector<16x16xf32>
    %58 = arith.addf %52, %57 : vector<16x16xf32>
    %c8 = arith.constant 8 : index
    %59 = memref.load %arg2[%c8] : memref<98xf32, #tpu.memory_space<smem>>
    %60 = vector.extract_strided_slice %53 {offsets = [1, 0], sizes = [16, 16], strides = [1, 1]} : vector<22x16xf32> to vector<16x16xf32>
    %61 = vector.broadcast %59 : f32 to vector<16x16xf32>
    %62 = arith.mulf %61, %60 : vector<16x16xf32>
    %63 = arith.addf %58, %62 : vector<16x16xf32>
    %c15 = arith.constant 15 : index
    %64 = memref.load %arg2[%c15] : memref<98xf32, #tpu.memory_space<smem>>
    %65 = vector.extract_strided_slice %53 {offsets = [2, 0], sizes = [16, 16], strides = [1, 1]} : vector<22x16xf32> to vector<16x16xf32>
    %66 = vector.broadcast %64 : f32 to vector<16x16xf32>
    %67 = arith.mulf %66, %65 : vector<16x16xf32>
    %68 = arith.addf %63, %67 : vector<16x16xf32>
    %c22 = arith.constant 22 : index
    %69 = memref.load %arg2[%c22] : memref<98xf32, #tpu.memory_space<smem>>
    %70 = vector.extract_strided_slice %53 {offsets = [3, 0], sizes = [16, 16], strides = [1, 1]} : vector<22x16xf32> to vector<16x16xf32>
    %71 = vector.broadcast %69 : f32 to vector<16x16xf32>
    %72 = arith.mulf %71, %70 : vector<16x16xf32>
    %73 = arith.addf %68, %72 : vector<16x16xf32>
    %c29 = arith.constant 29 : index
    %74 = memref.load %arg2[%c29] : memref<98xf32, #tpu.memory_space<smem>>
    %75 = vector.extract_strided_slice %53 {offsets = [4, 0], sizes = [16, 16], strides = [1, 1]} : vector<22x16xf32> to vector<16x16xf32>
    %76 = vector.broadcast %74 : f32 to vector<16x16xf32>
    %77 = arith.mulf %76, %75 : vector<16x16xf32>
    %78 = arith.addf %73, %77 : vector<16x16xf32>
    %c36 = arith.constant 36 : index
    %79 = memref.load %arg2[%c36] : memref<98xf32, #tpu.memory_space<smem>>
    %80 = vector.extract_strided_slice %53 {offsets = [5, 0], sizes = [16, 16], strides = [1, 1]} : vector<22x16xf32> to vector<16x16xf32>
    %81 = vector.broadcast %79 : f32 to vector<16x16xf32>
    %82 = arith.mulf %81, %80 : vector<16x16xf32>
    %83 = arith.addf %78, %82 : vector<16x16xf32>
    %c43 = arith.constant 43 : index
    %84 = memref.load %arg2[%c43] : memref<98xf32, #tpu.memory_space<smem>>
    %85 = vector.extract_strided_slice %53 {offsets = [6, 0], sizes = [16, 16], strides = [1, 1]} : vector<22x16xf32> to vector<16x16xf32>
    %86 = vector.broadcast %84 : f32 to vector<16x16xf32>
    %87 = arith.mulf %86, %85 : vector<16x16xf32>
    %88 = arith.addf %83, %87 : vector<16x16xf32>
    %89 = vector.extract_strided_slice %16 {offsets = [0, 2], sizes = [22, 16], strides = [1, 1]} : vector<22x22xf32> to vector<22x16xf32>
    %c2 = arith.constant 2 : index
    %90 = memref.load %arg2[%c2] : memref<98xf32, #tpu.memory_space<smem>>
    %91 = vector.extract_strided_slice %89 {offsets = [0, 0], sizes = [16, 16], strides = [1, 1]} : vector<22x16xf32> to vector<16x16xf32>
    %92 = vector.broadcast %90 : f32 to vector<16x16xf32>
    %93 = arith.mulf %92, %91 : vector<16x16xf32>
    %94 = arith.addf %88, %93 : vector<16x16xf32>
    %c9 = arith.constant 9 : index
    %95 = memref.load %arg2[%c9] : memref<98xf32, #tpu.memory_space<smem>>
    %96 = vector.extract_strided_slice %89 {offsets = [1, 0], sizes = [16, 16], strides = [1, 1]} : vector<22x16xf32> to vector<16x16xf32>
    %97 = vector.broadcast %95 : f32 to vector<16x16xf32>
    %98 = arith.mulf %97, %96 : vector<16x16xf32>
    %99 = arith.addf %94, %98 : vector<16x16xf32>
    %c16 = arith.constant 16 : index
    %100 = memref.load %arg2[%c16] : memref<98xf32, #tpu.memory_space<smem>>
    %101 = vector.extract_strided_slice %89 {offsets = [2, 0], sizes = [16, 16], strides = [1, 1]} : vector<22x16xf32> to vector<16x16xf32>
    %102 = vector.broadcast %100 : f32 to vector<16x16xf32>
    %103 = arith.mulf %102, %101 : vector<16x16xf32>
    %104 = arith.addf %99, %103 : vector<16x16xf32>
    %c23 = arith.constant 23 : index
    %105 = memref.load %arg2[%c23] : memref<98xf32, #tpu.memory_space<smem>>
    %106 = vector.extract_strided_slice %89 {offsets = [3, 0], sizes = [16, 16], strides = [1, 1]} : vector<22x16xf32> to vector<16x16xf32>
    %107 = vector.broadcast %105 : f32 to vector<16x16xf32>
    %108 = arith.mulf %107, %106 : vector<16x16xf32>
    %109 = arith.addf %104, %108 : vector<16x16xf32>
    %c30 = arith.constant 30 : index
    %110 = memref.load %arg2[%c30] : memref<98xf32, #tpu.memory_space<smem>>
    %111 = vector.extract_strided_slice %89 {offsets = [4, 0], sizes = [16, 16], strides = [1, 1]} : vector<22x16xf32> to vector<16x16xf32>
    %112 = vector.broadcast %110 : f32 to vector<16x16xf32>
    %113 = arith.mulf %112, %111 : vector<16x16xf32>
    %114 = arith.addf %109, %113 : vector<16x16xf32>
    %c37 = arith.constant 37 : index
    %115 = memref.load %arg2[%c37] : memref<98xf32, #tpu.memory_space<smem>>
    %116 = vector.extract_strided_slice %89 {offsets = [5, 0], sizes = [16, 16], strides = [1, 1]} : vector<22x16xf32> to vector<16x16xf32>
    %117 = vector.broadcast %115 : f32 to vector<16x16xf32>
    %118 = arith.mulf %117, %116 : vector<16x16xf32>
    %119 = arith.addf %114, %118 : vector<16x16xf32>
    %c44 = arith.constant 44 : index
    %120 = memref.load %arg2[%c44] : memref<98xf32, #tpu.memory_space<smem>>
    %121 = vector.extract_strided_slice %89 {offsets = [6, 0], sizes = [16, 16], strides = [1, 1]} : vector<22x16xf32> to vector<16x16xf32>
    %122 = vector.broadcast %120 : f32 to vector<16x16xf32>
    %123 = arith.mulf %122, %121 : vector<16x16xf32>
    %124 = arith.addf %119, %123 : vector<16x16xf32>
    %125 = vector.extract_strided_slice %16 {offsets = [0, 3], sizes = [22, 16], strides = [1, 1]} : vector<22x22xf32> to vector<22x16xf32>
    %c3_19 = arith.constant 3 : index
    %126 = memref.load %arg2[%c3_19] : memref<98xf32, #tpu.memory_space<smem>>
    %127 = vector.extract_strided_slice %125 {offsets = [0, 0], sizes = [16, 16], strides = [1, 1]} : vector<22x16xf32> to vector<16x16xf32>
    %128 = vector.broadcast %126 : f32 to vector<16x16xf32>
    %129 = arith.mulf %128, %127 : vector<16x16xf32>
    %130 = arith.addf %124, %129 : vector<16x16xf32>
    %c10 = arith.constant 10 : index
    %131 = memref.load %arg2[%c10] : memref<98xf32, #tpu.memory_space<smem>>
    %132 = vector.extract_strided_slice %125 {offsets = [1, 0], sizes = [16, 16], strides = [1, 1]} : vector<22x16xf32> to vector<16x16xf32>
    %133 = vector.broadcast %131 : f32 to vector<16x16xf32>
    %134 = arith.mulf %133, %132 : vector<16x16xf32>
    %135 = arith.addf %130, %134 : vector<16x16xf32>
    %c17 = arith.constant 17 : index
    %136 = memref.load %arg2[%c17] : memref<98xf32, #tpu.memory_space<smem>>
    %137 = vector.extract_strided_slice %125 {offsets = [2, 0], sizes = [16, 16], strides = [1, 1]} : vector<22x16xf32> to vector<16x16xf32>
    %138 = vector.broadcast %136 : f32 to vector<16x16xf32>
    %139 = arith.mulf %138, %137 : vector<16x16xf32>
    %140 = arith.addf %135, %139 : vector<16x16xf32>
    %c24 = arith.constant 24 : index
    %141 = memref.load %arg2[%c24] : memref<98xf32, #tpu.memory_space<smem>>
    %142 = vector.extract_strided_slice %125 {offsets = [3, 0], sizes = [16, 16], strides = [1, 1]} : vector<22x16xf32> to vector<16x16xf32>
    %143 = vector.broadcast %141 : f32 to vector<16x16xf32>
    %144 = arith.mulf %143, %142 : vector<16x16xf32>
    %145 = arith.addf %140, %144 : vector<16x16xf32>
    %c31 = arith.constant 31 : index
    %146 = memref.load %arg2[%c31] : memref<98xf32, #tpu.memory_space<smem>>
    %147 = vector.extract_strided_slice %125 {offsets = [4, 0], sizes = [16, 16], strides = [1, 1]} : vector<22x16xf32> to vector<16x16xf32>
    %148 = vector.broadcast %146 : f32 to vector<16x16xf32>
    %149 = arith.mulf %148, %147 : vector<16x16xf32>
    %150 = arith.addf %145, %149 : vector<16x16xf32>
    %c38 = arith.constant 38 : index
    %151 = memref.load %arg2[%c38] : memref<98xf32, #tpu.memory_space<smem>>
    %152 = vector.extract_strided_slice %125 {offsets = [5, 0], sizes = [16, 16], strides = [1, 1]} : vector<22x16xf32> to vector<16x16xf32>
    %153 = vector.broadcast %151 : f32 to vector<16x16xf32>
    %154 = arith.mulf %153, %152 : vector<16x16xf32>
    %155 = arith.addf %150, %154 : vector<16x16xf32>
    %c45 = arith.constant 45 : index
    %156 = memref.load %arg2[%c45] : memref<98xf32, #tpu.memory_space<smem>>
    %157 = vector.extract_strided_slice %125 {offsets = [6, 0], sizes = [16, 16], strides = [1, 1]} : vector<22x16xf32> to vector<16x16xf32>
    %158 = vector.broadcast %156 : f32 to vector<16x16xf32>
    %159 = arith.mulf %158, %157 : vector<16x16xf32>
    %160 = arith.addf %155, %159 : vector<16x16xf32>
    %161 = vector.extract_strided_slice %16 {offsets = [0, 4], sizes = [22, 16], strides = [1, 1]} : vector<22x22xf32> to vector<22x16xf32>
    %c4 = arith.constant 4 : index
    %162 = memref.load %arg2[%c4] : memref<98xf32, #tpu.memory_space<smem>>
    %163 = vector.extract_strided_slice %161 {offsets = [0, 0], sizes = [16, 16], strides = [1, 1]} : vector<22x16xf32> to vector<16x16xf32>
    %164 = vector.broadcast %162 : f32 to vector<16x16xf32>
    %165 = arith.mulf %164, %163 : vector<16x16xf32>
    %166 = arith.addf %160, %165 : vector<16x16xf32>
    %c11 = arith.constant 11 : index
    %167 = memref.load %arg2[%c11] : memref<98xf32, #tpu.memory_space<smem>>
    %168 = vector.extract_strided_slice %161 {offsets = [1, 0], sizes = [16, 16], strides = [1, 1]} : vector<22x16xf32> to vector<16x16xf32>
    %169 = vector.broadcast %167 : f32 to vector<16x16xf32>
    %170 = arith.mulf %169, %168 : vector<16x16xf32>
    %171 = arith.addf %166, %170 : vector<16x16xf32>
    %c18 = arith.constant 18 : index
    %172 = memref.load %arg2[%c18] : memref<98xf32, #tpu.memory_space<smem>>
    %173 = vector.extract_strided_slice %161 {offsets = [2, 0], sizes = [16, 16], strides = [1, 1]} : vector<22x16xf32> to vector<16x16xf32>
    %174 = vector.broadcast %172 : f32 to vector<16x16xf32>
    %175 = arith.mulf %174, %173 : vector<16x16xf32>
    %176 = arith.addf %171, %175 : vector<16x16xf32>
    %c25 = arith.constant 25 : index
    %177 = memref.load %arg2[%c25] : memref<98xf32, #tpu.memory_space<smem>>
    %178 = vector.extract_strided_slice %161 {offsets = [3, 0], sizes = [16, 16], strides = [1, 1]} : vector<22x16xf32> to vector<16x16xf32>
    %179 = vector.broadcast %177 : f32 to vector<16x16xf32>
    %180 = arith.mulf %179, %178 : vector<16x16xf32>
    %181 = arith.addf %176, %180 : vector<16x16xf32>
    %c32 = arith.constant 32 : index
    %182 = memref.load %arg2[%c32] : memref<98xf32, #tpu.memory_space<smem>>
    %183 = vector.extract_strided_slice %161 {offsets = [4, 0], sizes = [16, 16], strides = [1, 1]} : vector<22x16xf32> to vector<16x16xf32>
    %184 = vector.broadcast %182 : f32 to vector<16x16xf32>
    %185 = arith.mulf %184, %183 : vector<16x16xf32>
    %186 = arith.addf %181, %185 : vector<16x16xf32>
    %c39 = arith.constant 39 : index
    %187 = memref.load %arg2[%c39] : memref<98xf32, #tpu.memory_space<smem>>
    %188 = vector.extract_strided_slice %161 {offsets = [5, 0], sizes = [16, 16], strides = [1, 1]} : vector<22x16xf32> to vector<16x16xf32>
    %189 = vector.broadcast %187 : f32 to vector<16x16xf32>
    %190 = arith.mulf %189, %188 : vector<16x16xf32>
    %191 = arith.addf %186, %190 : vector<16x16xf32>
    %c46 = arith.constant 46 : index
    %192 = memref.load %arg2[%c46] : memref<98xf32, #tpu.memory_space<smem>>
    %193 = vector.extract_strided_slice %161 {offsets = [6, 0], sizes = [16, 16], strides = [1, 1]} : vector<22x16xf32> to vector<16x16xf32>
    %194 = vector.broadcast %192 : f32 to vector<16x16xf32>
    %195 = arith.mulf %194, %193 : vector<16x16xf32>
    %196 = arith.addf %191, %195 : vector<16x16xf32>
    %197 = vector.extract_strided_slice %16 {offsets = [0, 5], sizes = [22, 16], strides = [1, 1]} : vector<22x22xf32> to vector<22x16xf32>
    %c5 = arith.constant 5 : index
    %198 = memref.load %arg2[%c5] : memref<98xf32, #tpu.memory_space<smem>>
    %199 = vector.extract_strided_slice %197 {offsets = [0, 0], sizes = [16, 16], strides = [1, 1]} : vector<22x16xf32> to vector<16x16xf32>
    %200 = vector.broadcast %198 : f32 to vector<16x16xf32>
    %201 = arith.mulf %200, %199 : vector<16x16xf32>
    %202 = arith.addf %196, %201 : vector<16x16xf32>
    %c12 = arith.constant 12 : index
    %203 = memref.load %arg2[%c12] : memref<98xf32, #tpu.memory_space<smem>>
    %204 = vector.extract_strided_slice %197 {offsets = [1, 0], sizes = [16, 16], strides = [1, 1]} : vector<22x16xf32> to vector<16x16xf32>
    %205 = vector.broadcast %203 : f32 to vector<16x16xf32>
    %206 = arith.mulf %205, %204 : vector<16x16xf32>
    %207 = arith.addf %202, %206 : vector<16x16xf32>
    %c19 = arith.constant 19 : index
    %208 = memref.load %arg2[%c19] : memref<98xf32, #tpu.memory_space<smem>>
    %209 = vector.extract_strided_slice %197 {offsets = [2, 0], sizes = [16, 16], strides = [1, 1]} : vector<22x16xf32> to vector<16x16xf32>
    %210 = vector.broadcast %208 : f32 to vector<16x16xf32>
    %211 = arith.mulf %210, %209 : vector<16x16xf32>
    %212 = arith.addf %207, %211 : vector<16x16xf32>
    %c26 = arith.constant 26 : index
    %213 = memref.load %arg2[%c26] : memref<98xf32, #tpu.memory_space<smem>>
    %214 = vector.extract_strided_slice %197 {offsets = [3, 0], sizes = [16, 16], strides = [1, 1]} : vector<22x16xf32> to vector<16x16xf32>
    %215 = vector.broadcast %213 : f32 to vector<16x16xf32>
    %216 = arith.mulf %215, %214 : vector<16x16xf32>
    %217 = arith.addf %212, %216 : vector<16x16xf32>
    %c33 = arith.constant 33 : index
    %218 = memref.load %arg2[%c33] : memref<98xf32, #tpu.memory_space<smem>>
    %219 = vector.extract_strided_slice %197 {offsets = [4, 0], sizes = [16, 16], strides = [1, 1]} : vector<22x16xf32> to vector<16x16xf32>
    %220 = vector.broadcast %218 : f32 to vector<16x16xf32>
    %221 = arith.mulf %220, %219 : vector<16x16xf32>
    %222 = arith.addf %217, %221 : vector<16x16xf32>
    %c40 = arith.constant 40 : index
    %223 = memref.load %arg2[%c40] : memref<98xf32, #tpu.memory_space<smem>>
    %224 = vector.extract_strided_slice %197 {offsets = [5, 0], sizes = [16, 16], strides = [1, 1]} : vector<22x16xf32> to vector<16x16xf32>
    %225 = vector.broadcast %223 : f32 to vector<16x16xf32>
    %226 = arith.mulf %225, %224 : vector<16x16xf32>
    %227 = arith.addf %222, %226 : vector<16x16xf32>
    %c47 = arith.constant 47 : index
    %228 = memref.load %arg2[%c47] : memref<98xf32, #tpu.memory_space<smem>>
    %229 = vector.extract_strided_slice %197 {offsets = [6, 0], sizes = [16, 16], strides = [1, 1]} : vector<22x16xf32> to vector<16x16xf32>
    %230 = vector.broadcast %228 : f32 to vector<16x16xf32>
    %231 = arith.mulf %230, %229 : vector<16x16xf32>
    %232 = arith.addf %227, %231 : vector<16x16xf32>
    %233 = vector.extract_strided_slice %16 {offsets = [0, 6], sizes = [22, 16], strides = [1, 1]} : vector<22x22xf32> to vector<22x16xf32>
    %c6 = arith.constant 6 : index
    %234 = memref.load %arg2[%c6] : memref<98xf32, #tpu.memory_space<smem>>
    %235 = vector.extract_strided_slice %233 {offsets = [0, 0], sizes = [16, 16], strides = [1, 1]} : vector<22x16xf32> to vector<16x16xf32>
    %236 = vector.broadcast %234 : f32 to vector<16x16xf32>
    %237 = arith.mulf %236, %235 : vector<16x16xf32>
    %238 = arith.addf %232, %237 : vector<16x16xf32>
    %c13 = arith.constant 13 : index
    %239 = memref.load %arg2[%c13] : memref<98xf32, #tpu.memory_space<smem>>
    %240 = vector.extract_strided_slice %233 {offsets = [1, 0], sizes = [16, 16], strides = [1, 1]} : vector<22x16xf32> to vector<16x16xf32>
    %241 = vector.broadcast %239 : f32 to vector<16x16xf32>
    %242 = arith.mulf %241, %240 : vector<16x16xf32>
    %243 = arith.addf %238, %242 : vector<16x16xf32>
    %c20 = arith.constant 20 : index
    %244 = memref.load %arg2[%c20] : memref<98xf32, #tpu.memory_space<smem>>
    %245 = vector.extract_strided_slice %233 {offsets = [2, 0], sizes = [16, 16], strides = [1, 1]} : vector<22x16xf32> to vector<16x16xf32>
    %246 = vector.broadcast %244 : f32 to vector<16x16xf32>
    %247 = arith.mulf %246, %245 : vector<16x16xf32>
    %248 = arith.addf %243, %247 : vector<16x16xf32>
    %c27 = arith.constant 27 : index
    %249 = memref.load %arg2[%c27] : memref<98xf32, #tpu.memory_space<smem>>
    %250 = vector.extract_strided_slice %233 {offsets = [3, 0], sizes = [16, 16], strides = [1, 1]} : vector<22x16xf32> to vector<16x16xf32>
    %251 = vector.broadcast %249 : f32 to vector<16x16xf32>
    %252 = arith.mulf %251, %250 : vector<16x16xf32>
    %253 = arith.addf %248, %252 : vector<16x16xf32>
    %c34 = arith.constant 34 : index
    %254 = memref.load %arg2[%c34] : memref<98xf32, #tpu.memory_space<smem>>
    %255 = vector.extract_strided_slice %233 {offsets = [4, 0], sizes = [16, 16], strides = [1, 1]} : vector<22x16xf32> to vector<16x16xf32>
    %256 = vector.broadcast %254 : f32 to vector<16x16xf32>
    %257 = arith.mulf %256, %255 : vector<16x16xf32>
    %258 = arith.addf %253, %257 : vector<16x16xf32>
    %c41 = arith.constant 41 : index
    %259 = memref.load %arg2[%c41] : memref<98xf32, #tpu.memory_space<smem>>
    %260 = vector.extract_strided_slice %233 {offsets = [5, 0], sizes = [16, 16], strides = [1, 1]} : vector<22x16xf32> to vector<16x16xf32>
    %261 = vector.broadcast %259 : f32 to vector<16x16xf32>
    %262 = arith.mulf %261, %260 : vector<16x16xf32>
    %263 = arith.addf %258, %262 : vector<16x16xf32>
    %c48 = arith.constant 48 : index
    %264 = memref.load %arg2[%c48] : memref<98xf32, #tpu.memory_space<smem>>
    %265 = vector.extract_strided_slice %233 {offsets = [6, 0], sizes = [16, 16], strides = [1, 1]} : vector<22x16xf32> to vector<16x16xf32>
    %266 = vector.broadcast %264 : f32 to vector<16x16xf32>
    %267 = arith.mulf %266, %265 : vector<16x16xf32>
    %268 = arith.addf %263, %267 : vector<16x16xf32>
    %c1_20 = arith.constant 1 : index
    %c0_21 = arith.constant 0 : index
    %c0_22 = arith.constant 0 : index
    %269 = vector.load %arg4[%c1_20, %c0_21, %c0_22] : memref<2x22x22xf32, #tpu.memory_space<vmem>>, vector<1x22x22xf32>
    %270 = vector.shape_cast %269 : vector<1x22x22xf32> to vector<22x22xf32>
    %271 = vector.extract_strided_slice %270 {offsets = [0, 0], sizes = [22, 16], strides = [1, 1]} : vector<22x22xf32> to vector<22x16xf32>
    %c49 = arith.constant 49 : index
    %272 = memref.load %arg2[%c49] : memref<98xf32, #tpu.memory_space<smem>>
    %273 = vector.extract_strided_slice %271 {offsets = [0, 0], sizes = [16, 16], strides = [1, 1]} : vector<22x16xf32> to vector<16x16xf32>
    %274 = vector.broadcast %272 : f32 to vector<16x16xf32>
    %275 = arith.mulf %274, %273 : vector<16x16xf32>
    %276 = arith.addf %268, %275 : vector<16x16xf32>
    %c56 = arith.constant 56 : index
    %277 = memref.load %arg2[%c56] : memref<98xf32, #tpu.memory_space<smem>>
    %278 = vector.extract_strided_slice %271 {offsets = [1, 0], sizes = [16, 16], strides = [1, 1]} : vector<22x16xf32> to vector<16x16xf32>
    %279 = vector.broadcast %277 : f32 to vector<16x16xf32>
    %280 = arith.mulf %279, %278 : vector<16x16xf32>
    %281 = arith.addf %276, %280 : vector<16x16xf32>
    %c63 = arith.constant 63 : index
    %282 = memref.load %arg2[%c63] : memref<98xf32, #tpu.memory_space<smem>>
    %283 = vector.extract_strided_slice %271 {offsets = [2, 0], sizes = [16, 16], strides = [1, 1]} : vector<22x16xf32> to vector<16x16xf32>
    %284 = vector.broadcast %282 : f32 to vector<16x16xf32>
    %285 = arith.mulf %284, %283 : vector<16x16xf32>
    %286 = arith.addf %281, %285 : vector<16x16xf32>
    %c70 = arith.constant 70 : index
    %287 = memref.load %arg2[%c70] : memref<98xf32, #tpu.memory_space<smem>>
    %288 = vector.extract_strided_slice %271 {offsets = [3, 0], sizes = [16, 16], strides = [1, 1]} : vector<22x16xf32> to vector<16x16xf32>
    %289 = vector.broadcast %287 : f32 to vector<16x16xf32>
    %290 = arith.mulf %289, %288 : vector<16x16xf32>
    %291 = arith.addf %286, %290 : vector<16x16xf32>
    %c77 = arith.constant 77 : index
    %292 = memref.load %arg2[%c77] : memref<98xf32, #tpu.memory_space<smem>>
    %293 = vector.extract_strided_slice %271 {offsets = [4, 0], sizes = [16, 16], strides = [1, 1]} : vector<22x16xf32> to vector<16x16xf32>
    %294 = vector.broadcast %292 : f32 to vector<16x16xf32>
    %295 = arith.mulf %294, %293 : vector<16x16xf32>
    %296 = arith.addf %291, %295 : vector<16x16xf32>
    %c84 = arith.constant 84 : index
    %297 = memref.load %arg2[%c84] : memref<98xf32, #tpu.memory_space<smem>>
    %298 = vector.extract_strided_slice %271 {offsets = [5, 0], sizes = [16, 16], strides = [1, 1]} : vector<22x16xf32> to vector<16x16xf32>
    %299 = vector.broadcast %297 : f32 to vector<16x16xf32>
    %300 = arith.mulf %299, %298 : vector<16x16xf32>
    %301 = arith.addf %296, %300 : vector<16x16xf32>
    %c91 = arith.constant 91 : index
    %302 = memref.load %arg2[%c91] : memref<98xf32, #tpu.memory_space<smem>>
    %303 = vector.extract_strided_slice %271 {offsets = [6, 0], sizes = [16, 16], strides = [1, 1]} : vector<22x16xf32> to vector<16x16xf32>
    %304 = vector.broadcast %302 : f32 to vector<16x16xf32>
    %305 = arith.mulf %304, %303 : vector<16x16xf32>
    %306 = arith.addf %301, %305 : vector<16x16xf32>
    %307 = vector.extract_strided_slice %270 {offsets = [0, 1], sizes = [22, 16], strides = [1, 1]} : vector<22x22xf32> to vector<22x16xf32>
    %c50 = arith.constant 50 : index
    %308 = memref.load %arg2[%c50] : memref<98xf32, #tpu.memory_space<smem>>
    %309 = vector.extract_strided_slice %307 {offsets = [0, 0], sizes = [16, 16], strides = [1, 1]} : vector<22x16xf32> to vector<16x16xf32>
    %310 = vector.broadcast %308 : f32 to vector<16x16xf32>
    %311 = arith.mulf %310, %309 : vector<16x16xf32>
    %312 = arith.addf %306, %311 : vector<16x16xf32>
    %c57 = arith.constant 57 : index
    %313 = memref.load %arg2[%c57] : memref<98xf32, #tpu.memory_space<smem>>
    %314 = vector.extract_strided_slice %307 {offsets = [1, 0], sizes = [16, 16], strides = [1, 1]} : vector<22x16xf32> to vector<16x16xf32>
    %315 = vector.broadcast %313 : f32 to vector<16x16xf32>
    %316 = arith.mulf %315, %314 : vector<16x16xf32>
    %317 = arith.addf %312, %316 : vector<16x16xf32>
    %c64 = arith.constant 64 : index
    %318 = memref.load %arg2[%c64] : memref<98xf32, #tpu.memory_space<smem>>
    %319 = vector.extract_strided_slice %307 {offsets = [2, 0], sizes = [16, 16], strides = [1, 1]} : vector<22x16xf32> to vector<16x16xf32>
    %320 = vector.broadcast %318 : f32 to vector<16x16xf32>
    %321 = arith.mulf %320, %319 : vector<16x16xf32>
    %322 = arith.addf %317, %321 : vector<16x16xf32>
    %c71 = arith.constant 71 : index
    %323 = memref.load %arg2[%c71] : memref<98xf32, #tpu.memory_space<smem>>
    %324 = vector.extract_strided_slice %307 {offsets = [3, 0], sizes = [16, 16], strides = [1, 1]} : vector<22x16xf32> to vector<16x16xf32>
    %325 = vector.broadcast %323 : f32 to vector<16x16xf32>
    %326 = arith.mulf %325, %324 : vector<16x16xf32>
    %327 = arith.addf %322, %326 : vector<16x16xf32>
    %c78 = arith.constant 78 : index
    %328 = memref.load %arg2[%c78] : memref<98xf32, #tpu.memory_space<smem>>
    %329 = vector.extract_strided_slice %307 {offsets = [4, 0], sizes = [16, 16], strides = [1, 1]} : vector<22x16xf32> to vector<16x16xf32>
    %330 = vector.broadcast %328 : f32 to vector<16x16xf32>
    %331 = arith.mulf %330, %329 : vector<16x16xf32>
    %332 = arith.addf %327, %331 : vector<16x16xf32>
    %c85 = arith.constant 85 : index
    %333 = memref.load %arg2[%c85] : memref<98xf32, #tpu.memory_space<smem>>
    %334 = vector.extract_strided_slice %307 {offsets = [5, 0], sizes = [16, 16], strides = [1, 1]} : vector<22x16xf32> to vector<16x16xf32>
    %335 = vector.broadcast %333 : f32 to vector<16x16xf32>
    %336 = arith.mulf %335, %334 : vector<16x16xf32>
    %337 = arith.addf %332, %336 : vector<16x16xf32>
    %c92 = arith.constant 92 : index
    %338 = memref.load %arg2[%c92] : memref<98xf32, #tpu.memory_space<smem>>
    %339 = vector.extract_strided_slice %307 {offsets = [6, 0], sizes = [16, 16], strides = [1, 1]} : vector<22x16xf32> to vector<16x16xf32>
    %340 = vector.broadcast %338 : f32 to vector<16x16xf32>
    %341 = arith.mulf %340, %339 : vector<16x16xf32>
    %342 = arith.addf %337, %341 : vector<16x16xf32>
    %343 = vector.extract_strided_slice %270 {offsets = [0, 2], sizes = [22, 16], strides = [1, 1]} : vector<22x22xf32> to vector<22x16xf32>
    %c51 = arith.constant 51 : index
    %344 = memref.load %arg2[%c51] : memref<98xf32, #tpu.memory_space<smem>>
    %345 = vector.extract_strided_slice %343 {offsets = [0, 0], sizes = [16, 16], strides = [1, 1]} : vector<22x16xf32> to vector<16x16xf32>
    %346 = vector.broadcast %344 : f32 to vector<16x16xf32>
    %347 = arith.mulf %346, %345 : vector<16x16xf32>
    %348 = arith.addf %342, %347 : vector<16x16xf32>
    %c58 = arith.constant 58 : index
    %349 = memref.load %arg2[%c58] : memref<98xf32, #tpu.memory_space<smem>>
    %350 = vector.extract_strided_slice %343 {offsets = [1, 0], sizes = [16, 16], strides = [1, 1]} : vector<22x16xf32> to vector<16x16xf32>
    %351 = vector.broadcast %349 : f32 to vector<16x16xf32>
    %352 = arith.mulf %351, %350 : vector<16x16xf32>
    %353 = arith.addf %348, %352 : vector<16x16xf32>
    %c65 = arith.constant 65 : index
    %354 = memref.load %arg2[%c65] : memref<98xf32, #tpu.memory_space<smem>>
    %355 = vector.extract_strided_slice %343 {offsets = [2, 0], sizes = [16, 16], strides = [1, 1]} : vector<22x16xf32> to vector<16x16xf32>
    %356 = vector.broadcast %354 : f32 to vector<16x16xf32>
    %357 = arith.mulf %356, %355 : vector<16x16xf32>
    %358 = arith.addf %353, %357 : vector<16x16xf32>
    %c72 = arith.constant 72 : index
    %359 = memref.load %arg2[%c72] : memref<98xf32, #tpu.memory_space<smem>>
    %360 = vector.extract_strided_slice %343 {offsets = [3, 0], sizes = [16, 16], strides = [1, 1]} : vector<22x16xf32> to vector<16x16xf32>
    %361 = vector.broadcast %359 : f32 to vector<16x16xf32>
    %362 = arith.mulf %361, %360 : vector<16x16xf32>
    %363 = arith.addf %358, %362 : vector<16x16xf32>
    %c79 = arith.constant 79 : index
    %364 = memref.load %arg2[%c79] : memref<98xf32, #tpu.memory_space<smem>>
    %365 = vector.extract_strided_slice %343 {offsets = [4, 0], sizes = [16, 16], strides = [1, 1]} : vector<22x16xf32> to vector<16x16xf32>
    %366 = vector.broadcast %364 : f32 to vector<16x16xf32>
    %367 = arith.mulf %366, %365 : vector<16x16xf32>
    %368 = arith.addf %363, %367 : vector<16x16xf32>
    %c86 = arith.constant 86 : index
    %369 = memref.load %arg2[%c86] : memref<98xf32, #tpu.memory_space<smem>>
    %370 = vector.extract_strided_slice %343 {offsets = [5, 0], sizes = [16, 16], strides = [1, 1]} : vector<22x16xf32> to vector<16x16xf32>
    %371 = vector.broadcast %369 : f32 to vector<16x16xf32>
    %372 = arith.mulf %371, %370 : vector<16x16xf32>
    %373 = arith.addf %368, %372 : vector<16x16xf32>
    %c93 = arith.constant 93 : index
    %374 = memref.load %arg2[%c93] : memref<98xf32, #tpu.memory_space<smem>>
    %375 = vector.extract_strided_slice %343 {offsets = [6, 0], sizes = [16, 16], strides = [1, 1]} : vector<22x16xf32> to vector<16x16xf32>
    %376 = vector.broadcast %374 : f32 to vector<16x16xf32>
    %377 = arith.mulf %376, %375 : vector<16x16xf32>
    %378 = arith.addf %373, %377 : vector<16x16xf32>
    %379 = vector.extract_strided_slice %270 {offsets = [0, 3], sizes = [22, 16], strides = [1, 1]} : vector<22x22xf32> to vector<22x16xf32>
    %c52 = arith.constant 52 : index
    %380 = memref.load %arg2[%c52] : memref<98xf32, #tpu.memory_space<smem>>
    %381 = vector.extract_strided_slice %379 {offsets = [0, 0], sizes = [16, 16], strides = [1, 1]} : vector<22x16xf32> to vector<16x16xf32>
    %382 = vector.broadcast %380 : f32 to vector<16x16xf32>
    %383 = arith.mulf %382, %381 : vector<16x16xf32>
    %384 = arith.addf %378, %383 : vector<16x16xf32>
    %c59 = arith.constant 59 : index
    %385 = memref.load %arg2[%c59] : memref<98xf32, #tpu.memory_space<smem>>
    %386 = vector.extract_strided_slice %379 {offsets = [1, 0], sizes = [16, 16], strides = [1, 1]} : vector<22x16xf32> to vector<16x16xf32>
    %387 = vector.broadcast %385 : f32 to vector<16x16xf32>
    %388 = arith.mulf %387, %386 : vector<16x16xf32>
    %389 = arith.addf %384, %388 : vector<16x16xf32>
    %c66 = arith.constant 66 : index
    %390 = memref.load %arg2[%c66] : memref<98xf32, #tpu.memory_space<smem>>
    %391 = vector.extract_strided_slice %379 {offsets = [2, 0], sizes = [16, 16], strides = [1, 1]} : vector<22x16xf32> to vector<16x16xf32>
    %392 = vector.broadcast %390 : f32 to vector<16x16xf32>
    %393 = arith.mulf %392, %391 : vector<16x16xf32>
    %394 = arith.addf %389, %393 : vector<16x16xf32>
    %c73 = arith.constant 73 : index
    %395 = memref.load %arg2[%c73] : memref<98xf32, #tpu.memory_space<smem>>
    %396 = vector.extract_strided_slice %379 {offsets = [3, 0], sizes = [16, 16], strides = [1, 1]} : vector<22x16xf32> to vector<16x16xf32>
    %397 = vector.broadcast %395 : f32 to vector<16x16xf32>
    %398 = arith.mulf %397, %396 : vector<16x16xf32>
    %399 = arith.addf %394, %398 : vector<16x16xf32>
    %c80 = arith.constant 80 : index
    %400 = memref.load %arg2[%c80] : memref<98xf32, #tpu.memory_space<smem>>
    %401 = vector.extract_strided_slice %379 {offsets = [4, 0], sizes = [16, 16], strides = [1, 1]} : vector<22x16xf32> to vector<16x16xf32>
    %402 = vector.broadcast %400 : f32 to vector<16x16xf32>
    %403 = arith.mulf %402, %401 : vector<16x16xf32>
    %404 = arith.addf %399, %403 : vector<16x16xf32>
    %c87 = arith.constant 87 : index
    %405 = memref.load %arg2[%c87] : memref<98xf32, #tpu.memory_space<smem>>
    %406 = vector.extract_strided_slice %379 {offsets = [5, 0], sizes = [16, 16], strides = [1, 1]} : vector<22x16xf32> to vector<16x16xf32>
    %407 = vector.broadcast %405 : f32 to vector<16x16xf32>
    %408 = arith.mulf %407, %406 : vector<16x16xf32>
    %409 = arith.addf %404, %408 : vector<16x16xf32>
    %c94 = arith.constant 94 : index
    %410 = memref.load %arg2[%c94] : memref<98xf32, #tpu.memory_space<smem>>
    %411 = vector.extract_strided_slice %379 {offsets = [6, 0], sizes = [16, 16], strides = [1, 1]} : vector<22x16xf32> to vector<16x16xf32>
    %412 = vector.broadcast %410 : f32 to vector<16x16xf32>
    %413 = arith.mulf %412, %411 : vector<16x16xf32>
    %414 = arith.addf %409, %413 : vector<16x16xf32>
    %415 = vector.extract_strided_slice %270 {offsets = [0, 4], sizes = [22, 16], strides = [1, 1]} : vector<22x22xf32> to vector<22x16xf32>
    %c53 = arith.constant 53 : index
    %416 = memref.load %arg2[%c53] : memref<98xf32, #tpu.memory_space<smem>>
    %417 = vector.extract_strided_slice %415 {offsets = [0, 0], sizes = [16, 16], strides = [1, 1]} : vector<22x16xf32> to vector<16x16xf32>
    %418 = vector.broadcast %416 : f32 to vector<16x16xf32>
    %419 = arith.mulf %418, %417 : vector<16x16xf32>
    %420 = arith.addf %414, %419 : vector<16x16xf32>
    %c60 = arith.constant 60 : index
    %421 = memref.load %arg2[%c60] : memref<98xf32, #tpu.memory_space<smem>>
    %422 = vector.extract_strided_slice %415 {offsets = [1, 0], sizes = [16, 16], strides = [1, 1]} : vector<22x16xf32> to vector<16x16xf32>
    %423 = vector.broadcast %421 : f32 to vector<16x16xf32>
    %424 = arith.mulf %423, %422 : vector<16x16xf32>
    %425 = arith.addf %420, %424 : vector<16x16xf32>
    %c67 = arith.constant 67 : index
    %426 = memref.load %arg2[%c67] : memref<98xf32, #tpu.memory_space<smem>>
    %427 = vector.extract_strided_slice %415 {offsets = [2, 0], sizes = [16, 16], strides = [1, 1]} : vector<22x16xf32> to vector<16x16xf32>
    %428 = vector.broadcast %426 : f32 to vector<16x16xf32>
    %429 = arith.mulf %428, %427 : vector<16x16xf32>
    %430 = arith.addf %425, %429 : vector<16x16xf32>
    %c74 = arith.constant 74 : index
    %431 = memref.load %arg2[%c74] : memref<98xf32, #tpu.memory_space<smem>>
    %432 = vector.extract_strided_slice %415 {offsets = [3, 0], sizes = [16, 16], strides = [1, 1]} : vector<22x16xf32> to vector<16x16xf32>
    %433 = vector.broadcast %431 : f32 to vector<16x16xf32>
    %434 = arith.mulf %433, %432 : vector<16x16xf32>
    %435 = arith.addf %430, %434 : vector<16x16xf32>
    %c81 = arith.constant 81 : index
    %436 = memref.load %arg2[%c81] : memref<98xf32, #tpu.memory_space<smem>>
    %437 = vector.extract_strided_slice %415 {offsets = [4, 0], sizes = [16, 16], strides = [1, 1]} : vector<22x16xf32> to vector<16x16xf32>
    %438 = vector.broadcast %436 : f32 to vector<16x16xf32>
    %439 = arith.mulf %438, %437 : vector<16x16xf32>
    %440 = arith.addf %435, %439 : vector<16x16xf32>
    %c88 = arith.constant 88 : index
    %441 = memref.load %arg2[%c88] : memref<98xf32, #tpu.memory_space<smem>>
    %442 = vector.extract_strided_slice %415 {offsets = [5, 0], sizes = [16, 16], strides = [1, 1]} : vector<22x16xf32> to vector<16x16xf32>
    %443 = vector.broadcast %441 : f32 to vector<16x16xf32>
    %444 = arith.mulf %443, %442 : vector<16x16xf32>
    %445 = arith.addf %440, %444 : vector<16x16xf32>
    %c95 = arith.constant 95 : index
    %446 = memref.load %arg2[%c95] : memref<98xf32, #tpu.memory_space<smem>>
    %447 = vector.extract_strided_slice %415 {offsets = [6, 0], sizes = [16, 16], strides = [1, 1]} : vector<22x16xf32> to vector<16x16xf32>
    %448 = vector.broadcast %446 : f32 to vector<16x16xf32>
    %449 = arith.mulf %448, %447 : vector<16x16xf32>
    %450 = arith.addf %445, %449 : vector<16x16xf32>
    %451 = vector.extract_strided_slice %270 {offsets = [0, 5], sizes = [22, 16], strides = [1, 1]} : vector<22x22xf32> to vector<22x16xf32>
    %c54 = arith.constant 54 : index
    %452 = memref.load %arg2[%c54] : memref<98xf32, #tpu.memory_space<smem>>
    %453 = vector.extract_strided_slice %451 {offsets = [0, 0], sizes = [16, 16], strides = [1, 1]} : vector<22x16xf32> to vector<16x16xf32>
    %454 = vector.broadcast %452 : f32 to vector<16x16xf32>
    %455 = arith.mulf %454, %453 : vector<16x16xf32>
    %456 = arith.addf %450, %455 : vector<16x16xf32>
    %c61 = arith.constant 61 : index
    %457 = memref.load %arg2[%c61] : memref<98xf32, #tpu.memory_space<smem>>
    %458 = vector.extract_strided_slice %451 {offsets = [1, 0], sizes = [16, 16], strides = [1, 1]} : vector<22x16xf32> to vector<16x16xf32>
    %459 = vector.broadcast %457 : f32 to vector<16x16xf32>
    %460 = arith.mulf %459, %458 : vector<16x16xf32>
    %461 = arith.addf %456, %460 : vector<16x16xf32>
    %c68 = arith.constant 68 : index
    %462 = memref.load %arg2[%c68] : memref<98xf32, #tpu.memory_space<smem>>
    %463 = vector.extract_strided_slice %451 {offsets = [2, 0], sizes = [16, 16], strides = [1, 1]} : vector<22x16xf32> to vector<16x16xf32>
    %464 = vector.broadcast %462 : f32 to vector<16x16xf32>
    %465 = arith.mulf %464, %463 : vector<16x16xf32>
    %466 = arith.addf %461, %465 : vector<16x16xf32>
    %c75 = arith.constant 75 : index
    %467 = memref.load %arg2[%c75] : memref<98xf32, #tpu.memory_space<smem>>
    %468 = vector.extract_strided_slice %451 {offsets = [3, 0], sizes = [16, 16], strides = [1, 1]} : vector<22x16xf32> to vector<16x16xf32>
    %469 = vector.broadcast %467 : f32 to vector<16x16xf32>
    %470 = arith.mulf %469, %468 : vector<16x16xf32>
    %471 = arith.addf %466, %470 : vector<16x16xf32>
    %c82 = arith.constant 82 : index
    %472 = memref.load %arg2[%c82] : memref<98xf32, #tpu.memory_space<smem>>
    %473 = vector.extract_strided_slice %451 {offsets = [4, 0], sizes = [16, 16], strides = [1, 1]} : vector<22x16xf32> to vector<16x16xf32>
    %474 = vector.broadcast %472 : f32 to vector<16x16xf32>
    %475 = arith.mulf %474, %473 : vector<16x16xf32>
    %476 = arith.addf %471, %475 : vector<16x16xf32>
    %c89 = arith.constant 89 : index
    %477 = memref.load %arg2[%c89] : memref<98xf32, #tpu.memory_space<smem>>
    %478 = vector.extract_strided_slice %451 {offsets = [5, 0], sizes = [16, 16], strides = [1, 1]} : vector<22x16xf32> to vector<16x16xf32>
    %479 = vector.broadcast %477 : f32 to vector<16x16xf32>
    %480 = arith.mulf %479, %478 : vector<16x16xf32>
    %481 = arith.addf %476, %480 : vector<16x16xf32>
    %c96 = arith.constant 96 : index
    %482 = memref.load %arg2[%c96] : memref<98xf32, #tpu.memory_space<smem>>
    %483 = vector.extract_strided_slice %451 {offsets = [6, 0], sizes = [16, 16], strides = [1, 1]} : vector<22x16xf32> to vector<16x16xf32>
    %484 = vector.broadcast %482 : f32 to vector<16x16xf32>
    %485 = arith.mulf %484, %483 : vector<16x16xf32>
    %486 = arith.addf %481, %485 : vector<16x16xf32>
    %487 = vector.extract_strided_slice %270 {offsets = [0, 6], sizes = [22, 16], strides = [1, 1]} : vector<22x22xf32> to vector<22x16xf32>
    %c55 = arith.constant 55 : index
    %488 = memref.load %arg2[%c55] : memref<98xf32, #tpu.memory_space<smem>>
    %489 = vector.extract_strided_slice %487 {offsets = [0, 0], sizes = [16, 16], strides = [1, 1]} : vector<22x16xf32> to vector<16x16xf32>
    %490 = vector.broadcast %488 : f32 to vector<16x16xf32>
    %491 = arith.mulf %490, %489 : vector<16x16xf32>
    %492 = arith.addf %486, %491 : vector<16x16xf32>
    %c62 = arith.constant 62 : index
    %493 = memref.load %arg2[%c62] : memref<98xf32, #tpu.memory_space<smem>>
    %494 = vector.extract_strided_slice %487 {offsets = [1, 0], sizes = [16, 16], strides = [1, 1]} : vector<22x16xf32> to vector<16x16xf32>
    %495 = vector.broadcast %493 : f32 to vector<16x16xf32>
    %496 = arith.mulf %495, %494 : vector<16x16xf32>
    %497 = arith.addf %492, %496 : vector<16x16xf32>
    %c69 = arith.constant 69 : index
    %498 = memref.load %arg2[%c69] : memref<98xf32, #tpu.memory_space<smem>>
    %499 = vector.extract_strided_slice %487 {offsets = [2, 0], sizes = [16, 16], strides = [1, 1]} : vector<22x16xf32> to vector<16x16xf32>
    %500 = vector.broadcast %498 : f32 to vector<16x16xf32>
    %501 = arith.mulf %500, %499 : vector<16x16xf32>
    %502 = arith.addf %497, %501 : vector<16x16xf32>
    %c76 = arith.constant 76 : index
    %503 = memref.load %arg2[%c76] : memref<98xf32, #tpu.memory_space<smem>>
    %504 = vector.extract_strided_slice %487 {offsets = [3, 0], sizes = [16, 16], strides = [1, 1]} : vector<22x16xf32> to vector<16x16xf32>
    %505 = vector.broadcast %503 : f32 to vector<16x16xf32>
    %506 = arith.mulf %505, %504 : vector<16x16xf32>
    %507 = arith.addf %502, %506 : vector<16x16xf32>
    %c83 = arith.constant 83 : index
    %508 = memref.load %arg2[%c83] : memref<98xf32, #tpu.memory_space<smem>>
    %509 = vector.extract_strided_slice %487 {offsets = [4, 0], sizes = [16, 16], strides = [1, 1]} : vector<22x16xf32> to vector<16x16xf32>
    %510 = vector.broadcast %508 : f32 to vector<16x16xf32>
    %511 = arith.mulf %510, %509 : vector<16x16xf32>
    %512 = arith.addf %507, %511 : vector<16x16xf32>
    %c90 = arith.constant 90 : index
    %513 = memref.load %arg2[%c90] : memref<98xf32, #tpu.memory_space<smem>>
    %514 = vector.extract_strided_slice %487 {offsets = [5, 0], sizes = [16, 16], strides = [1, 1]} : vector<22x16xf32> to vector<16x16xf32>
    %515 = vector.broadcast %513 : f32 to vector<16x16xf32>
    %516 = arith.mulf %515, %514 : vector<16x16xf32>
    %517 = arith.addf %512, %516 : vector<16x16xf32>
    %c97 = arith.constant 97 : index
    %518 = memref.load %arg2[%c97] : memref<98xf32, #tpu.memory_space<smem>>
    %519 = vector.extract_strided_slice %487 {offsets = [6, 0], sizes = [16, 16], strides = [1, 1]} : vector<22x16xf32> to vector<16x16xf32>
    %520 = vector.broadcast %518 : f32 to vector<16x16xf32>
    %521 = arith.mulf %520, %519 : vector<16x16xf32>
    %522 = arith.addf %517, %521 : vector<16x16xf32>
    %523 = arith.negf %522 : vector<16x16xf32>
    %524 = math.exp %523 : vector<16x16xf32>
    %cst_23 = arith.constant 1.000000e+00 : f32
    %525 = vector.broadcast %cst_23 : f32 to vector<16x16xf32>
    %526 = arith.addf %525, %524 : vector<16x16xf32>
    %527 = arith.divf %525, %526 : vector<16x16xf32>
    %c0_24 = arith.constant 0 : index
    %c0_25 = arith.constant 0 : index
    %c0_26 = arith.constant 0 : index
    %c0_27 = arith.constant 0 : index
    %528 = vector.load %arg3[%c0_24, %c0_25, %c0_26, %c0_27] : memref<1x1x16x16xf32, #tpu.memory_space<vmem>>, vector<1x1x16x16xf32>
    %529 = vector.shape_cast %528 : vector<1x1x16x16xf32> to vector<16x16xf32>
    %530 = vector.shape_cast %527 : vector<16x16xf32> to vector<1x1x16x16xf32>
    tpu.vector_store %arg3[%c0_24, %c0_25, %c0_26, %c0_27], %530 {strides = array<i32>} : memref<1x1x16x16xf32, #tpu.memory_space<vmem>>, vector<1x1x16x16xf32>,
    return
  }
  func.func @transform_0(%arg0: i32) -> (i32, i32, i32, i32) {
    %c0_i32 = arith.constant 0 : i32
    %c0_i32_0 = arith.constant 0 : i32
    %c0_i32_1 = arith.constant 0 : i32
    %c0_i32_2 = arith.constant 0 : i32
    return %arg0, %c0_i32, %c0_i32_0, %c0_i32_1 : i32, i32, i32, i32
  }
  func.func @transform_1(%arg0: i32) -> i32 {
    %c0_i32 = arith.constant 0 : i32
    %c0_i32_0 = arith.constant 0 : i32
    return %c0_i32 : i32
  }
  func.func @transform_2(%arg0: i32) -> (i32, i32, i32, i32) {
    %c0_i32 = arith.constant 0 : i32
    %c0_i32_0 = arith.constant 0 : i32
    %c0_i32_1 = arith.constant 0 : i32
    %c0_i32_2 = arith.constant 0 : i32
    return %arg0, %c0_i32, %c0_i32_0, %c0_i32_1 : i32, i32, i32, i32
  }
}

</mosaic_0001>

<bundles_post_ra>
// kernel: spatial_attention_forward.1
= control target key start
LH: loop header
LB: loop body
LE: loop exit
PB: predicated region body
PF: predicated region fallthrough
CT: control target
= control target key end

     0   :  { %7 = vsyncpa [#allocation4], 0  ;;  %s4015_s0 = inlined_call_operand.hbm [shape: f32[2,4,16,16], index: 0, kind: input, shape index: {}]   ;;  %s4016_s1 = inlined_call_operand.vmem [shape: f32[98], index: 1, kind: input, shape index: {}]   ;;  %s4017_s2 = inlined_call_operand.hbm [shape: f32[2,1,16,16], index: 2, kind: output, shape index: {}]  }
   0x1   :  { %9 = vsyncpa [#allocation4 + $0x1], 0 }
   0x2   :  { %10 = vsyncpa [#allocation6], 0 }
   0x3   :  { %11 = vsyncpa [#allocation5], 0 }
   0x4   :  { %13 = vsyncpa [#allocation5 + $0x1], 0  ;;  %s2614_s9 = smov 0   ;;  %s2616_s10 = smov 0  }
   0x5   :  { %s2618_s11 = smov 0   ;;  %s2620_s12 = smov 0  }
   0x6 LB: > { %s2635_s13 = sadd.s32 4294967295, %s2582_s12   ;;  %s2267_s14 = sadd.s32 4294967294, %s2582_s12   ;;  %s2582_s12 = sphi %s2620_s12, %s4040_s12   ;;  %s2578_s11 = sphi %s2618_s11, %s4039_s11   ;;  %s2574_s10 = sphi %s2616_s10, %s4038_s10   ;;  %s2570_s9 = sphi %s2614_s9, %s4037_s9  }
   0x7   : > { %s2639_s15 = sadd.s32 1, %s2582_s12   ;;  %s26_s16 = sadd.s32 1, %s2578_s11 }
   0x8   : > { %s23_s17 = ssub.s32 %s2582_s12, %s2639_s15  ;;  %p33_p0 = scmp.ne.s32.totalorder %s2578_s11, %s2574_s10 }
   0x9   : > { %p24_p1 = scmp.eq.s32.totalorder %s23_s17, 0  ;;  %p34_p2 = scmp.eq.s32.totalorder %s2582_s12, 0 }
   0xa   : > { %p39_p3 = scmp.ne.s32.totalorder %s2574_s10, %s2570_s9  ;;  %p4019_p4 = scmp.eq.s32.totalorder %s2635_s13, 0 }
   0xb   : > { %s2651_s18 = scalar_select %p24_p1, %s2578_s11, %s26_s16  }
   0xc   : > { %p2653_p5 = por %p34_p2, %p33_p0  ;;  %p2659_p6 = por %p4019_p4, %p39_p3 }
   0xd   : > { %p84_p7 = scmp.eq.s32.totalorder %s2635_s13, 1  ;;  %p90_p8 = scmp.eq.s32.totalorder %s2267_s14, 1 }
   0xe   : > { %s4024_s20 = scalar_select %p2659_p6, 1, 0 }
   0xf   : > { %p2268_p9 = scmp.ge.s32.totalorder %s2582_s12, 1  ;;  %p97_p10 = scmp.lt.s32.totalorder %s2582_s12, 3 }
  0x10   : > { %p2666_p11 = por %p84_p7, %p33_p0  ;;  %p2670_p12 = por %p90_p8, %p39_p3 }
  0x11   : > { %p2674_p13 = pnand %p2268_p9, %p97_p10  ;;  %s110_s26 = sshll.u32 %s4016_s1, 4  ;;  %s111_s26 = int_to_ptr.vmem [resolvable:$true] %s110_s26 }
  0x12   : > { %s4025_s21 = scalar_select %p2666_p11, 1, 0 }
  0x13   : > { %s4026_s22 = scalar_select %p2670_p12, 1, 0 }
  0x14   : > { %p2392_p1 = pneg %p2674_p13  ;;  %p2405_p2 = scmp.lt.s32.totalorder %s2582_s12, 2 }
  0x15   : > { %s121_s28 = sand.u32 1, %s2578_s11   ;;  %s2467_s3 = scalar_lea.vmem %s111_s26, 16 }
  0x16   : > { %p2687_p7 = pnand %p2392_p1, %p4019_p4  ;;  %p2694_p3 = pnand %p2405_p2, %p2653_p5 }
  0x17   : > { %s2271_s30 = sshll.u32 %s121_s28, 6  ;;  %p2468_p8 = scmp.ne.s32.totalorder %s111_s26, %s2467_s3 }
  0x18   : > { %p2469_p9 = pneg %p2687_p7  ;;  %p2475_p12 = scmp.lt.s32.totalorder %s111_s26, %s111_s26 }
  0x19   : > { %p2476_p11 = scmp.lt.s32.totalorder %s2467_s3, %s2467_s3 }
  0x1a   : > { %p2470_p10 = pnand %p2469_p9, %p2468_p8 }
  0x1b   : > { %p2477_p1 = por %p2476_p11, %p2475_p12 }
  0x1c   : > { %p2471_p0 = pneg %p2470_p10 }
  0x1e   : > { %p2478_p4 = pnand %p2477_p1, %p2471_p0 }
  0x20   : > { %2481 = shalt.err (!%p2478_p4)
}
  0x21   : > { %s2584_s4 = smov [#allocation7]   ;;  %s2382_s5 = sshll.u32 %s2582_s12, 10 }
  0x22   : > { %2395 = dma.vmem_to_smem (!%p2687_p7), %s111_s26, 16, %s2584_s4, [#allocation6]  }
  0x23   : > { %s125_s6 = scalar_lea.vmem [#allocation3], %s2271_s30  ;;  %s2706_s16 = scalar_lea.hbm %s4015_s0, %s2382_s5 }
  0x24   : > { %s132_s7 = sshll.u32 %s125_s6, 4  ;;  %s2710_s17 = scalar_lea.sflag [#allocation4], %s121_s28  ;;  %s2708_s7 = int_to_ptr.vmem [resolvable:$true] %s132_s7 }
  0x25   : > { %s2482_s19 = scalar_lea.hbm %s2706_s16, 1024  ;;  %p2484_p5 = pneg %p2694_p3 }
  0x26   : > { %p2483_p4 = scmp.ne.s32.totalorder %s2706_s16, %s2482_s19  ;;  %s2487_s26 = scalar_lea.hbm %s4015_s0, 2048 }
  0x27   : > { %p2488_p0 = scmp.lt.u32.totalorder %s2706_s16, %s4015_s0  ;;  %p2489_p2 = scmp.lt.u32.totalorder %s2487_s26, %s2482_s19 }
  0x28   : > { %p2485_p11 = pnand %p2484_p5, %p2483_p4  ;;  %p2491_p8 = scmp.lt.u32.totalorder %s2482_s19, %s2706_s16 }
  0x29   : > { %p2490_p7 = por %p2489_p2, %p2488_p0 }
  0x2a   : > { %p2486_p12 = pneg %p2485_p11 }
  0x2b   : > { %p2492_p9 = por %p2491_p8, %p2490_p7 }
  0x2d   : > { %p2493_p10 = pnand %p2492_p9, %p2486_p12 }
  0x2f   : > { %2496 = shalt.err (!%p2493_p10)
}
  0x30   : > { %s2497_s28 = scalar_lea.vmem %s2708_s7, 1024  ;;  %s2585_s3 = smov [#allocation3]  }
  0x31   : > { %p2498_p1 = scmp.ne.s32.totalorder %s2708_s7, %s2497_s28  ;;  %s2502_s4 = sshll.u32 %s2585_s3, 4  ;;  %s2503_s4 = int_to_ptr.vmem [resolvable:$false] %s2502_s4 }
  0x32   : > { %s2504_s5 = scalar_lea.vmem %s2503_s4, 2048  ;;  %p2505_p6 = scmp.lt.s32.totalorder %s2708_s7, %s2503_s4 }
  0x33   : > { %p2500_p4 = pnand %p2498_p1, %p2484_p5  ;;  %p2506_p0 = scmp.lt.s32.totalorder %s2504_s5, %s2497_s28 }
  0x35   : > { %p2501_p11 = pneg %p2500_p4  ;;  %p2507_p2 = por %p2506_p0, %p2505_p6 }
  0x37   : > { %p2508_p7 = pnand %p2507_p2, %p2501_p11 }
  0x39   : > { %2511 = shalt.err (!%p2508_p7)
}
  0x3a   : > { %s2586_s6 = smov 128   ;;  %s2587_s8 = smov 8  }
  0x3b   : > { %2399 = dma.hbm_to_vmem [thread:$0]  (!%p2694_p3), %s2706_s16, 1024, %s2708_s7, %s2710_s17, %s2586_s6, %s2586_s6, %s2587_s8  }
  0x3c   : > { %144 = sbr.rel (%p2674_p13) target bundleno = 703 (0x2bf), region = 28  ;;  %s2741_s14 = sand.u32 (!%p2674_p13), 1, %s2574_s10  }
  0x3d   : > { %s2275_s19 = sshll.u32 (!%p2674_p13), %s2741_s14, 6  ;;  %s147_s24 = scalar_lea.sflag (!%p2674_p13), [#allocation4], %s2741_s14 }
  0x3e   : > { %s150_s25 = scalar_lea.vmem (!%p2674_p13), [#allocation3], %s2275_s19  ;;  %p4030_p6 = scmp.ne.s32.totalorder (!%p2674_p13), %s4024_s20, 0 }
  0x43   : > { %2557 = dma.done.wait (%p4030_p6), %s147_s24, 1024  }
  0x44   : > { %2559 = vsyncadd (%p4030_p6), %s147_s24, 4294966272  ;;  %p4031_p5 = scmp.eq.s32.totalorder %s2635_s13, 0 }
  0x46   : > { %2561 = dma.done.wait (%p4031_p5), [#allocation6], 16   ;;  %p4032_p3 = pmov %p4031_p5 }
  0x48   : > { %2563 = vsyncadd (%p4032_p3), [#allocation6], 4294967280 }
  0x49   : > { %159 = sfence }
  0x4a   : > { %v176_v0 = vld [vmem:[%s150_s25] sm:$0xff]  ;;  %v178_v1 = vld [vmem:[%s150_s25 + $0x10] sm:$0xff]  ;;  %vm192_vm0 = vcmask 130048   ;;  %vm184_vm1 = vcmask 179200   ;;  %v177_v7 = vld [vmem:[%s150_s25 + $0x8] sm:$0xff]  ;;  %v2588_v19 = vmov 0.0  }
  0x4b   : > { %v180_v2 = vld [vmem:[%s150_s25 + $0x20] sm:$0xff]  ;;  %v182_v3 = vld [vmem:[%s150_s25 + $0x30] sm:$0xff]  ;;  %v193_v4 = vsel %vm192_vm0, %v176_v0, 0.0  ;;  %v194_v5 = vsel %vm192_vm0, %v178_v1, 0.0  ;;  %v179_v8 = vld [vmem:[%s150_s25 + $0x18] sm:$0xff]  ;;  %v200_v12 = vsel %vm192_vm0, %v177_v7, 0.0 }
  0x4c   : > { %v196_v6 = vsel %vm192_vm0, %v180_v2, 0.0  ;;  %v195_v9 = vadd.f32 %v194_v5, %v193_v4  ;;  %v181_v10 = vld [vmem:[%s150_s25 + $0x28] sm:$0xff]  ;;  %v183_v11 = vld [vmem:[%s150_s25 + $0x38] sm:$0xff]  ;;  %v201_v13 = vsel %vm192_vm0, %v179_v8, 0.0  ;;  %v198_v14 = vsel %vm192_vm0, %v182_v3, 0.0  ;;  %185 = vst.msk [vmem:[#allocation2] sm:$0xff] %vm184_vm1, %v2588_v19 }
  0x4d   : > { %v202_v15 = vadd.f32 %v201_v13, %v200_v12  ;;  %v203_v16 = vsel %vm192_vm0, %v181_v10, 0.0  ;;  %v205_v18 = vsel %vm192_vm0, %v183_v11, 0.0  ;;  %186 = vst.msk [vmem:[#allocation2 + $0x8] sm:$0xff] %vm184_vm1, %v2588_v19  ;;  %189 = vst.msk [vmem:[#allocation2 + $0x18] sm:$0xff] %vm184_vm1, %v2588_v19  ;;  %v221_v20 = vsel %vm192_vm0, %v176_v0, -inf  ;;  %s2589_s20 = smov 3  }
  0x4e   : > { %v197_v17 = vadd.f32 %v196_v6, %v195_v9  ;;  %190 = vst.msk [vmem:[#allocation2 + $0x20] sm:$0xff] %vm184_vm1, %v2588_v19  ;;  %v222_v21 = vsel %vm192_vm0, %v178_v1, -inf  ;;  %v223_v23 = vsel %vm192_vm0, %v180_v2, -inf  ;;  %v225_v24 = vsel %vm192_vm0, %v182_v3, -inf  ;;  %s2284_s23 = sld [smem:[#allocation7 + $0x1]]  ;;  %s2291_s29 = sld [smem:[#allocation7 + $0x2]] }
  0x4f   : > { %v204_v22 = vadd.f32 %v203_v16, %v202_v15  ;;  %vm187_vm2 = vcmask 177152   ;;  %v224_v26 = vmax.f32 %v221_v20, %v223_v23  ;;  %v226_v27 = vmax.f32 %v222_v21, %v225_v24  ;;  %s2298_s7 = sld [smem:[#allocation7 + $0x3]]  ;;  %s2776_s16 = sld [smem:[#allocation7 + $0x4]] }
  0x50   : > { %v199_v25 = vadd.f32 %v198_v14, %v197_v17  ;;  %188 = vst.msk [vmem:[#allocation2 + $0x10] sm:$0x3f] %vm187_vm2, %v2588_v19  ;;  %191 = vst.msk [vmem:[#allocation2 + $0x28] sm:$0x3f] %vm187_vm2, %v2588_v19  ;;  %v228_v28 = vsel %vm192_vm0, %v177_v7, -inf  ;;  %v229_v30 = vsel %vm192_vm0, %v179_v8, -inf }
  0x51   : > { %v206_v29 = vadd.f32 %v205_v18, %v204_v22  ;;  %v230_v31 = vsel %vm192_vm0, %v181_v10, -inf  ;;  %v232_v32 = vsel %vm192_vm0, %v183_v11, -inf  ;;  %v227_v34 = vmax.f32 %v224_v26, %v226_v27  ;;  %s2590_s17 = smov 127   ;;  %s2285_s26 = sld [smem:[#allocation7 + $0x8]] }
  0x52   : > { %v208_v33 = vmul.f32 0.25, %v199_v25  ;;  %v231_v35 = vmax.f32 %v228_v28, %v230_v31  ;;  %v233_v36 = vmax.f32 %v229_v30, %v232_v32  ;;  %vm218_vm3 = vcmask 154648   ;;  %s2783_s27 = sld [smem:[#allocation7 + $0x5]]  ;;  %s2591_s30 = smov 126  }
  0x53   : > { %v209_v37 = vmul.f32 0.25, %v206_v29  ;;  %237 = vrot.lane.b32.xlu1 %v227_v34, %s2589_s20  ;;  %s2286_s28 = sld [smem:[#allocation7 + $0xf]]  ;;  %s2592_s3 = smov 125   ;;  %vm263_vm4 = vcmask 1046528   ;;  %vm281_vm5 = vcmask 1045504   ;;  %vm299_vm6 = vcmask 1044480  }
  0x54   : > { %212 = vrot.lane.b32.xlu0 %v208_v33, %s2589_s20  ;;  %v234_v38 = vmax.f32 %v231_v35, %v233_v36  ;;  %v364_v43 = vstv %s2284_s23  ;;  %v504_v46 = vstv %s2291_s29  ;;  %s2287_s4 = sld [smem:[#allocation7 + $0x16]]  ;;  %s4021_s5 = smov 124   ;;  %vm317_vm7 = vcmask 1043456  }
  0x55   : > { %v644_v50 = vstv %s2298_s7  ;;  %v784_v53 = vstv %s2776_s16  ;;  %s2288_s6 = sld [smem:[#allocation7 + $0x1d]]  ;;  %s2594_s8 = smov 123   ;;  %vm335_vm8 = vcmask 1042432   ;;  %vm353_vm9 = vcmask 1041408  }
  0x56   : > { %s2289_s19 = sld [smem:[#allocation7 + $0x24]]  ;;  %s2290_s24 = sld [smem:[#allocation7 + $0x2b]] }
  0x57   : > { %239 = vrot.lane.b32.xlu1 %v234_v38, %s2589_s20  ;;  %v378_v56 = vstv %s2285_s26  ;;  %s2292_s25 = sld [smem:[#allocation7 + $0x9]]  ;;  %s2294_s23 = sld [smem:[#allocation7 + $0x17]] }
  0x58   : > { %214 = vrot.lane.b32.xlu0 %v209_v37, %s2589_s20  ;;  %v924_v57 = vstv %s2783_s27  ;;  %s2293_s20 = sld [smem:[#allocation7 + $0x10]]  ;;  %s2295_s29 = sld [smem:[#allocation7 + $0x1e]] }
  0x59   : > { %v399_v63 = vstv %s2286_s28  ;;  %s2296_s7 = sld [smem:[#allocation7 + $0x25]]  ;;  %s2297_s16 = sld [smem:[#allocation7 + $0x2c]] }
  0x5a   : > { %v420_v5 = vstv %s2287_s4  ;;  %s2299_s26 = sld [smem:[#allocation7 + $0xa]]  ;;  %s2300_s27 = sld [smem:[#allocation7 + $0x11]] }
  0x5b   : > { %v441_v14 = vstv %s2288_s6  ;;  %s2301_s28 = sld [smem:[#allocation7 + $0x18]]  ;;  %s2302_s4 = sld [smem:[#allocation7 + $0x1f]] }
  0x5c   : > { %v462_v23 = vstv %s2289_s19  ;;  %v483_v34 = vstv %s2290_s24  ;;  %s2303_s6 = sld [smem:[#allocation7 + $0x26]]  ;;  %s2304_s19 = sld [smem:[#allocation7 + $0x2d]] }
  0x5d   : > { %s2306_s24 = sld [smem:[#allocation7 + $0xb]]  ;;  %p4034_p12 = scmp.ne.s32.totalorder %s4025_s21, 0 }
  0xc5   : > { %v238_v40 = vpop.permute.xlu1 %237 }
  0xc6   : > { %v213_v39 = vpop.permute.xlu0 %212  ;;  %244 = vst.msk [vmem:[#allocation2 + $0x1b] sm:$0xff] %vm218_vm3, %v238_v40 }
  0xc7   : > { %219 = vst.msk [vmem:[#allocation2 + $0x3] sm:$0xff] %vm218_vm3, %v213_v39 }
  0xc9   : > { %v240_v42 = vpop.permute.xlu1 %239 }
  0xca   : > { %v215_v41 = vpop.permute.xlu0 %214  ;;  %245 = vst.msk [vmem:[#allocation2 + $0x23] sm:$0xff] %vm218_vm3, %v240_v42 }
  0xcb   : > { %220 = vst.msk [vmem:[#allocation2 + $0xb] sm:$0xff] %vm218_vm3, %v215_v41  ;;  %v518_v41 = vstv %s2292_s25  ;;  %s2307_s25 = sld [smem:[#allocation7 + $0x12]] }
  0xce   : > { %v2773_v44 = vld [vmem:[#allocation2] sm:$0xff] }
  0xcf   : > { %v365_v45 = vmul.f32 %v364_v43, %v2773_v44  ;;  %v505_v48 = vmul.f32 %v504_v46, %v2773_v44  ;;  %v645_v51 = vmul.f32 %v644_v50, %v2773_v44  ;;  %v785_v54 = vmul.f32 %v784_v53, %v2773_v44 }
  0xd0   : > { %v379_v60 = vmul.f32 %v378_v56, %v2773_v44  ;;  %v925_v61 = vmul.f32 %v924_v57, %v2773_v44  ;;  %v400_v4 = vmul.f32 %v399_v63, %v2773_v44  ;;  %v421_v13 = vmul.f32 %v420_v5, %v2773_v44 }
  0xd1   : > { %369 = vrot.lane.b32.xlu0 %v365_v45, %s2590_s17  ;;  %v442_v21 = vmul.f32 %v441_v14, %v2773_v44  ;;  %v463_v31 = vmul.f32 %v462_v23, %v2773_v44  ;;  %v484_v40 = vmul.f32 %v483_v34, %v2773_v44 }
  0xd2   : > { %v2779_v47 = vld [vmem:[#allocation2 + $0x8] sm:$0xff]  ;;  %v2796_v59 = vld [vmem:[#allocation2 + $0x10] sm:$0x3f]  ;;  %v385_v3 = vrot.slane %v379_v60, 1  ;;  %v406_v12 = vrot.slane %v400_v4, 2  ;;  %v427_v22 = vrot.slane %v421_v13, 3 }
  0xd3   : > { %v366_v49 = vmul.f32 %v364_v43, %v2779_v47  ;;  %v506_v52 = vmul.f32 %v504_v46, %v2779_v47  ;;  %v646_v55 = vmul.f32 %v644_v50, %v2779_v47  ;;  %v380_v58 = vmul.f32 %v378_v56, %v2779_v47 }
  0xd4   : > { %v786_v62 = vmul.f32 %v784_v53, %v2779_v47  ;;  %v401_v1 = vmul.f32 %v399_v63, %v2779_v47  ;;  %v381_v2 = vmul.f32 %v378_v56, %v2796_v59  ;;  %v926_v6 = vmul.f32 %v924_v57, %v2779_v47 }
  0xd5   : > { %509 = vrot.lane.b32.xlu0 %v505_v48, %s2591_s30  ;;  %371 = vrot.lane.b32.xlu1 %v366_v49, %s2590_s17  ;;  %v386_v0 = vrot.slane %v380_v58, 1  ;;  %v422_v7 = vmul.f32 %v420_v5, %v2779_v47  ;;  %v402_v11 = vmul.f32 %v399_v63, %v2796_v59  ;;  %v443_v15 = vmul.f32 %v441_v14, %v2779_v47 }
  0xd6   : > { %v407_v9 = vrot.slane %v401_v1, 2  ;;  %v388_v10 = vrot.slane %v381_v2, 1  ;;  %v423_v16 = vmul.f32 %v420_v5, %v2796_v59  ;;  %v464_v25 = vmul.f32 %v462_v23, %v2779_v47 }
  0xd7   : > { %v387_v8 = vsel %vm263_vm4, %v385_v3, %v386_v0  ;;  %v428_v19 = vrot.slane %v422_v7, 3  ;;  %v409_v20 = vrot.slane %v402_v11, 2  ;;  %v449_v24 = vrot.slane %v443_v15, 4 }
  0xd8   : > { %v408_v17 = vsel %vm281_vm5, %v406_v12, %v407_v9  ;;  %v389_v18 = vsel %vm263_vm4, %v386_v0, %v388_v10  ;;  %v430_v28 = vrot.slane %v423_v16, 3  ;;  %v444_v29 = vmul.f32 %v441_v14, %v2796_v59 }
  0xd9   : > { %649 = vrot.lane.b32.xlu0 %v645_v51, %s2592_s3  ;;  %511 = vrot.lane.b32.xlu1 %v506_v52, %s2591_s30  ;;  %v429_v26 = vsel %vm299_vm6, %v427_v22, %v428_v19  ;;  %v410_v27 = vsel %vm281_vm5, %v407_v9, %v409_v20  ;;  %v448_v30 = vrot.slane %v442_v21, 4  ;;  %v470_v33 = vrot.slane %v464_v25, 5 }
  0xda   : > { %v431_v35 = vsel %vm299_vm6, %v428_v19, %v430_v28  ;;  %v451_v36 = vrot.slane %v444_v29, 4  ;;  %v485_v37 = vmul.f32 %v483_v34, %v2779_v47  ;;  %v465_v38 = vmul.f32 %v462_v23, %v2796_v59 }
  0xdb   : > { %v450_v32 = vsel %vm317_vm7, %v448_v30, %v449_v24  ;;  %v469_v39 = vrot.slane %v463_v31, 5  ;;  %v520_v43 = vmul.f32 %v518_v41, %v2779_v47  ;;  %v486_v49 = vmul.f32 %v483_v34, %v2796_v59 }
  0xdc   : > { %v452_v45 = vsel %vm317_vm7, %v449_v24, %v451_v36  ;;  %v491_v46 = vrot.slane %v485_v37, 6  ;;  %v472_v48 = vrot.slane %v465_v38, 5  ;;  %v519_v50 = vmul.f32 %v518_v41, %v2773_v44 }
  0xdd   : > { %789 = vrot.lane.b32.xlu0 %v785_v54, %s4021_s5  ;;  %651 = vrot.lane.b32.xlu1 %v646_v55, %s2592_s3  ;;  %v471_v42 = vsel %vm335_vm8, %v469_v39, %v470_v33  ;;  %v490_v51 = vrot.slane %v484_v40, 6  ;;  %v539_v52 = vstv %s2293_s20  ;;  %v526_v53 = vrot.slane %v520_v43, 1  ;;  %s2308_s20 = sld [smem:[#allocation7 + $0x19]] }
  0xde   : > { %v541_v54 = vmul.f32 %v539_v52, %v2779_v47  ;;  %v473_v56 = vsel %vm335_vm8, %v470_v33, %v472_v48  ;;  %v493_v57 = vrot.slane %v486_v49, 6  ;;  %v521_v58 = vmul.f32 %v518_v41, %v2796_v59 }
  0xdf   : > { %v492_v55 = vsel %vm353_vm9, %v490_v51, %v491_v46  ;;  %v525_v60 = vrot.slane %v519_v50, 1  ;;  %v560_v0 = vstv %s2294_s23  ;;  %v542_v4 = vmul.f32 %v539_v52, %v2796_v59  ;;  %s2309_s23 = sld [smem:[#allocation7 + $0x20]] }
  0xe0   : > { %v547_v63 = vrot.slane %v541_v54, 2  ;;  %v494_v1 = vsel %vm353_vm9, %v491_v46, %v493_v57  ;;  %v528_v2 = vrot.slane %v521_v58, 1  ;;  %v562_v3 = vmul.f32 %v560_v0, %v2779_v47 }
  0xe1   : > { %929 = vrot.lane.b32.xlu0 %v925_v61, %s2594_s8  ;;  %791 = vrot.lane.b32.xlu1 %v786_v62, %s4021_s5  ;;  %v540_v61 = vmul.f32 %v539_v52, %v2773_v44  ;;  %v527_v62 = vsel %vm263_vm4, %v525_v60, %v526_v53  ;;  %v581_v7 = vstv %s2295_s29  ;;  %v549_v12 = vrot.slane %v542_v4, 2  ;;  %s2310_s29 = sld [smem:[#allocation7 + $0x27]] }
  0xe2   : > { %v583_v9 = vmul.f32 %v581_v7, %v2779_v47  ;;  %v529_v10 = vsel %vm263_vm4, %v526_v53, %v528_v2  ;;  %v568_v11 = vrot.slane %v562_v3, 3  ;;  %v563_v13 = vmul.f32 %v560_v0, %v2796_v59 }
  0xe3   : > { %v546_v5 = vrot.slane %v540_v61, 2  ;;  %v582_v14 = vmul.f32 %v581_v7, %v2773_v44  ;;  %v602_v16 = vstv %s2296_s7  ;;  %v550_v20 = vsel %vm281_vm5, %v547_v63, %v549_v12  ;;  %s2311_s7 = sld [smem:[#allocation7 + $0x2e]] }
  0xe4   : > { %v570_v21 = vrot.slane %v563_v13, 3  ;;  %v584_v22 = vmul.f32 %v581_v7, %v2796_v59  ;;  %v603_v24 = vmul.f32 %v602_v16, %v2773_v44  ;;  %v605_v31 = vmul.f32 %v602_v16, %v2796_v59 }
  0xe5   : > { %390 = vrot.lane.b32.xlu0 %v387_v8, %s2590_s17  ;;  %931 = vrot.lane.b32.xlu1 %v926_v6, %s2594_s8  ;;  %v561_v6 = vmul.f32 %v560_v0, %v2773_v44  ;;  %v548_v8 = vsel %vm281_vm5, %v546_v5, %v547_v63  ;;  %v588_v23 = vrot.slane %v582_v14, 4  ;;  %v658_v34 = vstv %s2299_s26  ;;  %s2314_s26 = sld [smem:[#allocation7 + $0x13]] }
  0xe6   : > { %v571_v28 = vsel %vm299_vm6, %v568_v11, %v570_v21  ;;  %v591_v29 = vrot.slane %v584_v22, 4  ;;  %v660_v36 = vmul.f32 %v658_v34, %v2779_v47  ;;  %v612_v39 = vrot.slane %v605_v31, 5 }
  0xe7   : > { %v567_v15 = vrot.slane %v561_v6, 3  ;;  %v659_v41 = vmul.f32 %v658_v34, %v2773_v44  ;;  %v679_v43 = vstv %s2300_s27  ;;  %v661_v51 = vmul.f32 %v658_v34, %v2796_v59  ;;  %s2315_s27 = sld [smem:[#allocation7 + $0x1a]] }
  0xe8   : > { %v681_v46 = vmul.f32 %v679_v43, %v2779_v47  ;;  %v680_v53 = vmul.f32 %v679_v43, %v2773_v44  ;;  %v682_v61 = vmul.f32 %v679_v43, %v2796_v59  ;;  %v721_v0 = vstv %s2302_s4  ;;  %s2317_s4 = sld [smem:[#allocation7 + $0x28]] }
  0xe9   : > { %411 = vrot.lane.b32.xlu0 %v408_v17, %s2590_s17  ;;  %392 = vrot.lane.b32.xlu1 %v389_v18, %s2590_s17  ;;  %v589_v17 = vrot.slane %v583_v9, 4  ;;  %v604_v18 = vmul.f32 %v602_v16, %v2779_v47  ;;  %v569_v19 = vsel %vm299_vm6, %v567_v15, %v568_v11  ;;  %v665_v52 = vrot.slane %v659_v41, 1 }
  0xea   : > { %v668_v58 = vrot.slane %v661_v51, 1  ;;  %v723_v2 = vmul.f32 %v721_v0, %v2779_v47  ;;  %v689_v5 = vrot.slane %v682_v61, 2  ;;  %v722_v7 = vmul.f32 %v721_v0, %v2773_v44 }
  0xeb   : > { %v590_v25 = vsel %vm317_vm7, %v588_v23, %v589_v17  ;;  %v592_v37 = vsel %vm317_vm7, %v589_v17, %v591_v29  ;;  %v742_v9 = vstv %s2303_s6  ;;  %v724_v15 = vmul.f32 %v721_v0, %v2796_v59  ;;  %s2991_s6 = sld [smem:[#allocation7 + $0x2f]] }
  0xec   : > { %v744_v11 = vmul.f32 %v742_v9, %v2779_v47  ;;  %v728_v16 = vrot.slane %v722_v7, 4  ;;  %v743_v17 = vmul.f32 %v742_v9, %v2773_v44 }
  0xed   : > { %432 = vrot.lane.b32.xlu0 %v429_v26, %s2590_s17  ;;  %413 = vrot.lane.b32.xlu1 %v410_v27, %s2590_s17  ;;  %v610_v26 = vrot.slane %v604_v18, 5  ;;  %v623_v27 = vstv %s2297_s16  ;;  %v731_v22 = vrot.slane %v724_v15, 4  ;;  %s2313_s16 = sld [smem:[#allocation7 + $0xc]] }
  0xee   : > { %v625_v30 = vmul.f32 %v623_v27, %v2779_v47  ;;  %v624_v33 = vmul.f32 %v623_v27, %v2773_v44  ;;  %v626_v40 = vmul.f32 %v623_v27, %v2796_v59  ;;  %v798_v27 = vstv %s2306_s24  ;;  %s3011_s24 = sld [smem:[#allocation7 + $0x7]] }
  0xef   : > { %v613_v49 = vsel %vm335_vm8, %v610_v26, %v612_v39  ;;  %v800_v29 = vmul.f32 %v798_v27, %v2779_v47  ;;  %v799_v34 = vmul.f32 %v798_v27, %v2773_v44 }
  0xf0   : > { %v631_v38 = vrot.slane %v625_v30, 6  ;;  %v633_v50 = vrot.slane %v626_v40, 6 }
  0xf1   : > { %453 = vrot.lane.b32.xlu0 %v450_v32, %s2590_s17  ;;  %434 = vrot.lane.b32.xlu1 %v431_v35, %s2590_s17  ;;  %v609_v32 = vrot.slane %v603_v24, 5  ;;  %v745_v24 = vmul.f32 %v742_v9, %v2796_v59  ;;  %v805_v43 = vrot.slane %v799_v34, 1 }
  0xf2   : > { %v634_v57 = vsel %vm353_vm9, %v631_v38, %v633_v50 }
  0xf3   : > { %v611_v35 = vsel %vm335_vm8, %v609_v32, %v610_v26  ;;  %v752_v32 = vrot.slane %v745_v24, 5 }
  0xf5   : > { %474 = vrot.lane.b32.xlu0 %v471_v42, %s2590_s17  ;;  %455 = vrot.lane.b32.xlu1 %v452_v45, %s2590_s17  ;;  %v630_v42 = vrot.slane %v624_v33, 6  ;;  %v666_v45 = vrot.slane %v660_v36, 1  ;;  %v819_v36 = vstv %s2307_s25  ;;  %s3013_s25 = sld [smem:[#allocation7 + $0xd]] }
  0xf7   : > { %v632_v48 = vsel %vm353_vm9, %v630_v42, %v631_v38  ;;  %v667_v54 = vsel %vm263_vm4, %v665_v52, %v666_v45  ;;  %v669_v3 = vsel %vm263_vm4, %v666_v45, %v668_v58  ;;  %v821_v38 = vmul.f32 %v819_v36, %v2779_v47 }
  0xf8   : > { %v801_v42 = vmul.f32 %v798_v27, %v2796_v59  ;;  %v820_v45 = vmul.f32 %v819_v36, %v2773_v44 }
  0xf9   : > { %495 = vrot.lane.b32.xlu0 %v492_v55, %s2590_s17  ;;  %476 = vrot.lane.b32.xlu1 %v473_v56, %s2590_s17  ;;  %v687_v55 = vrot.slane %v681_v46, 2  ;;  %v700_v56 = vstv %s2301_s28  ;;  %s2316_s28 = sld [smem:[#allocation7 + $0x21]] }
  0xfa   : > { %v702_v60 = vmul.f32 %v700_v56, %v2779_v47  ;;  %v701_v63 = vmul.f32 %v700_v56, %v2773_v44  ;;  %v703_v6 = vmul.f32 %v700_v56, %v2796_v59  ;;  %v808_v51 = vrot.slane %v801_v42, 1 }
  0xfb   : > { %v690_v13 = vsel %vm281_vm5, %v687_v55, %v689_v5  ;;  %v861_v56 = vstv %s2309_s23  ;;  %s3017_s23 = sld [smem:[#allocation7 + $0x15]] }
  0xfc   : > { %v708_v4 = vrot.slane %v702_v60, 3  ;;  %v710_v14 = vrot.slane %v703_v6, 3  ;;  %v863_v58 = vmul.f32 %v861_v56, %v2779_v47  ;;  %v862_v0 = vmul.f32 %v861_v56, %v2773_v44 }
  0xfd   : > { %530 = vrot.lane.b32.xlu0 %v527_v62, %s2591_s30  ;;  %497 = vrot.lane.b32.xlu1 %v494_v1, %s2590_s17  ;;  %v686_v62 = vrot.slane %v680_v53, 2  ;;  %v822_v53 = vmul.f32 %v819_v36, %v2796_v59 }
  0xfe   : > { %v711_v21 = vsel %vm299_vm6, %v708_v4, %v710_v14  ;;  %v868_v9 = vrot.slane %v862_v0, 4 }
  0xff   : > { %v688_v1 = vsel %vm281_vm5, %v686_v62, %v687_v55  ;;  %v829_v62 = vrot.slane %v822_v53, 2 }
 0x101   : > { %551 = vrot.lane.b32.xlu0 %v548_v8, %s2591_s30  ;;  %532 = vrot.lane.b32.xlu1 %v529_v10, %s2591_s30  ;;  %v707_v8 = vrot.slane %v701_v63, 3  ;;  %v729_v10 = vrot.slane %v723_v2, 4  ;;  %v882_v2 = vstv %s2310_s29  ;;  %s3025_s29 = sld [smem:[#allocation7 + $0x1c]] }
 0x103   : > { %v709_v12 = vsel %vm299_vm6, %v707_v8, %v708_v4  ;;  %v730_v18 = vsel %vm317_vm7, %v728_v16, %v729_v10  ;;  %v732_v30 = vsel %vm317_vm7, %v729_v10, %v731_v22  ;;  %v884_v4 = vmul.f32 %v882_v2, %v2779_v47 }
 0x104   : > { %v864_v8 = vmul.f32 %v861_v56, %v2796_v59  ;;  %v883_v10 = vmul.f32 %v882_v2, %v2773_v44 }
 0x105   : > { %572 = vrot.lane.b32.xlu0 %v569_v19, %s2591_s30  ;;  %553 = vrot.lane.b32.xlu1 %v550_v20, %s2591_s30  ;;  %v750_v19 = vrot.slane %v744_v11, 5  ;;  %v763_v20 = vstv %s2304_s19  ;;  %s3006_s19 = sld [smem:[#allocation7]] }
 0x106   : > { %v765_v23 = vmul.f32 %v763_v20, %v2779_v47  ;;  %v764_v26 = vmul.f32 %v763_v20, %v2773_v44  ;;  %v766_v33 = vmul.f32 %v763_v20, %v2796_v59  ;;  %v871_v15 = vrot.slane %v864_v8, 4 }
 0x107   : > { %v753_v40 = vsel %vm335_vm8, %v750_v19, %v752_v32  ;;  %v938_v20 = vstv %s2313_s16  ;;  %s3032_s16 = sld [smem:[#allocation7 + $0x23]] }
 0x108   : > { %v771_v31 = vrot.slane %v765_v23, 6  ;;  %v773_v41 = vrot.slane %v766_v33, 6  ;;  %v940_v22 = vmul.f32 %v938_v20, %v2779_v47  ;;  %v939_v27 = vmul.f32 %v938_v20, %v2773_v44 }
 0x109   : > { %593 = vrot.lane.b32.xlu0 %v590_v25, %s2591_s30  ;;  %574 = vrot.lane.b32.xlu1 %v571_v28, %s2591_s30  ;;  %v749_v25 = vrot.slane %v743_v17, 5  ;;  %v885_v17 = vmul.f32 %v882_v2, %v2796_v59 }
 0x10a   : > { %v774_v50 = vsel %vm353_vm9, %v771_v31, %v773_v41  ;;  %v945_v36 = vrot.slane %v939_v27, 1  ;;  %v980_v41 = vstv %s2315_s27  ;;  %s3039_s27 = sld [smem:[#allocation7 + $0x14]] }
 0x10b   : > { %v751_v28 = vsel %vm335_vm8, %v749_v25, %v750_v19  ;;  %v892_v25 = vrot.slane %v885_v17, 5 }
 0x10d   : > { %614 = vrot.lane.b32.xlu0 %v611_v35, %s2591_s30  ;;  %595 = vrot.lane.b32.xlu1 %v592_v37, %s2591_s30  ;;  %v770_v35 = vrot.slane %v764_v26, 6  ;;  %v806_v37 = vrot.slane %v800_v29, 1  ;;  %v959_v29 = vstv %s2314_s26  ;;  %s3034_s26 = sld [smem:[#allocation7 + $0x2a]] }
 0x10f   : > { %v772_v39 = vsel %vm353_vm9, %v770_v35, %v771_v31  ;;  %v807_v46 = vsel %vm263_vm4, %v805_v43, %v806_v37  ;;  %v809_v60 = vsel %vm263_vm4, %v806_v37, %v808_v51  ;;  %v961_v31 = vmul.f32 %v959_v29, %v2779_v47 }
 0x110   : > { %v941_v35 = vmul.f32 %v938_v20, %v2796_v59  ;;  %v960_v37 = vmul.f32 %v959_v29, %v2773_v44 }
 0x111   : > { %635 = vrot.lane.b32.xlu0 %v632_v48, %s2591_s30  ;;  %616 = vrot.lane.b32.xlu1 %v613_v49, %s2591_s30  ;;  %v827_v48 = vrot.slane %v821_v38, 2  ;;  %v840_v49 = vstv %s2308_s20  ;;  %s3015_s20 = sld [smem:[#allocation7 + $0xe]] }
 0x112   : > { %v842_v52 = vmul.f32 %v840_v49, %v2779_v47  ;;  %v841_v55 = vmul.f32 %v840_v49, %v2773_v44  ;;  %v843_v63 = vmul.f32 %v840_v49, %v2796_v59  ;;  %v948_v43 = vrot.slane %v941_v35, 1 }
 0x113   : > { %v830_v6 = vsel %vm281_vm5, %v827_v48, %v829_v62  ;;  %v981_v49 = vmul.f32 %v980_v41, %v2773_v44  ;;  %v1022_v62 = vstv %s2317_s4  ;;  %s3048_s4 = sld [smem:[#allocation7 + $0x22]] }
 0x114   : > { %v848_v61 = vrot.slane %v842_v52, 3  ;;  %v850_v7 = vrot.slane %v843_v63, 3  ;;  %v1024_v2 = vmul.f32 %v1022_v62, %v2779_v47  ;;  %v1023_v8 = vmul.f32 %v1022_v62, %v2773_v44 }
 0x115   : > { %670 = vrot.lane.b32.xlu0 %v667_v54, %s2592_s3  ;;  %637 = vrot.lane.b32.xlu1 %v634_v57, %s2591_s30  ;;  %v826_v54 = vrot.slane %v820_v45, 2  ;;  %v982_v45 = vmul.f32 %v980_v41, %v2779_v47  ;;  %v1025_v17 = vmul.f32 %v1022_v62, %v2796_v59 }
 0x116   : > { %v851_v14 = vsel %vm299_vm6, %v848_v61, %v850_v7 }
 0x117   : > { %v828_v57 = vsel %vm281_vm5, %v826_v54, %v827_v48  ;;  %v966_v48 = vrot.slane %v960_v37, 2  ;;  %v988_v56 = vrot.slane %v982_v45, 3  ;;  %v3087_v45 = vstv %s3034_s26  ;;  %s3359_s26 = sld [smem:[#allocation7 + $0x33]] }
 0x119   : > { %691 = vrot.lane.b32.xlu0 %v688_v1, %s2592_s3  ;;  %672 = vrot.lane.b32.xlu1 %v669_v3, %s2592_s3  ;;  %v847_v1 = vrot.slane %v841_v55, 3  ;;  %v869_v3 = vrot.slane %v863_v58, 4  ;;  %v983_v58 = vmul.f32 %v980_v41, %v2796_v59  ;;  %v3078_v41 = vstv %s3025_s29  ;;  %s3300_s29 = sld [smem:[#allocation7 + $0x55]] }
 0x11b   : > { %v849_v5 = vsel %vm299_vm6, %v847_v1, %v848_v61  ;;  %v870_v11 = vsel %vm317_vm7, %v868_v9, %v869_v3  ;;  %v872_v23 = vsel %vm317_vm7, %v869_v3, %v871_v15  ;;  %v987_v61 = vrot.slane %v981_v49, 3 }
 0x11d   : > { %712 = vrot.lane.b32.xlu0 %v709_v12, %s2592_s3  ;;  %693 = vrot.lane.b32.xlu1 %v690_v13, %s2592_s3  ;;  %v890_v12 = vrot.slane %v884_v4, 5  ;;  %v903_v13 = vstv %s2311_s7  ;;  %v989_v3 = vsel %vm299_vm6, %v987_v61, %v988_v56  ;;  %s3030_s7 = sld [smem:[#allocation7 + $0x6]] }
 0x11e   : > { %v905_v16 = vmul.f32 %v903_v13, %v2779_v47  ;;  %v904_v19 = vmul.f32 %v903_v13, %v2773_v44  ;;  %v906_v26 = vmul.f32 %v903_v13, %v2796_v59  ;;  %v1043_v13 = vstv %s2991_s6  ;;  %s3052_s6 = sld [smem:[#allocation7 + $0x29]] }
 0x11f   : > { %v893_v33 = vsel %vm335_vm8, %v890_v12, %v892_v25  ;;  %v1032_v25 = vrot.slane %v1025_v17, 5 }
 0x120   : > { %v911_v24 = vrot.slane %v905_v16, 6  ;;  %v913_v34 = vrot.slane %v906_v26, 6  ;;  %v1045_v16 = vmul.f32 %v1043_v13, %v2779_v47  ;;  %v1046_v26 = vmul.f32 %v1043_v13, %v2796_v59 }
 0x121   : > { %733 = vrot.lane.b32.xlu0 %v730_v18, %s2592_s3  ;;  %714 = vrot.lane.b32.xlu1 %v711_v21, %s2592_s3  ;;  %v889_v18 = vrot.slane %v883_v10, 5 }
 0x122   : > { %v914_v42 = vsel %vm353_vm9, %v911_v24, %v913_v34 }
 0x123   : > { %v891_v21 = vsel %vm335_vm8, %v889_v18, %v890_v12  ;;  %v1030_v12 = vrot.slane %v1024_v2, 5  ;;  %v1029_v18 = vrot.slane %v1023_v8, 5  ;;  %v1064_v37 = vstv %s3030_s7  ;;  %s3317_s7 = sld [smem:[#allocation7 + $0x5c]] }
 0x124   : > { %v3109_v61 = vstv %s3052_s6  ;;  %s3402_s6 = sld [smem:[#allocation7 + $0x56]] }
 0x125   : > { %754 = vrot.lane.b32.xlu0 %v751_v28, %s2592_s3  ;;  %735 = vrot.lane.b32.xlu1 %v732_v30, %s2592_s3  ;;  %v910_v28 = vrot.slane %v904_v19, 6  ;;  %v946_v30 = vrot.slane %v940_v22, 1  ;;  %v1044_v19 = vmul.f32 %v1043_v13, %v2773_v44  ;;  %v1031_v22 = vsel %vm335_vm8, %v1029_v18, %v1030_v12 }
 0x127   : > { %v912_v32 = vsel %vm353_vm9, %v910_v28, %v911_v24  ;;  %v949_v55 = vsel %vm263_vm4, %v946_v30, %v948_v43  ;;  %v1051_v24 = vrot.slane %v1045_v16, 6  ;;  %v1050_v27 = vrot.slane %v1044_v19, 6 }
 0x128   : > { %v1078_v28 = vstv %s3013_s25  ;;  %v3084_v43 = vstv %s3032_s16  ;;  %s3226_s25 = sld [smem:[#allocation7 + $0x40]]  ;;  %s3353_s16 = sld [smem:[#allocation7 + $0x3a]] }
 0x129   : > { %775 = vrot.lane.b32.xlu0 %v772_v39, %s2592_s3  ;;  %756 = vrot.lane.b32.xlu1 %v753_v40, %s2592_s3  ;;  %v947_v39 = vsel %vm263_vm4, %v945_v36, %v946_v30  ;;  %v967_v40 = vrot.slane %v961_v31, 2  ;;  %v256_v30 = vstv %s3011_s24  ;;  %v3062_v31 = vstv %s3015_s20  ;;  %s2595_s24 = smov 122   ;;  %s3256_s20 = sld [smem:[#allocation7 + $0x47]] }
 0x12a   : > { %v3069_v34 = vmul.f32 %v1078_v28, %v2779_v47  ;;  %v1052_v35 = vsel %vm353_vm9, %v1050_v27, %v1051_v24  ;;  %v1033_v36 = vsel %vm335_vm8, %v1030_v12, %v1032_v25  ;;  %v3092_v49 = vmul.f32 %v256_v30, %v2779_v47 }
 0x12b   : > { %v968_v53 = vsel %vm281_vm5, %v966_v48, %v967_v40  ;;  %v257_v62 = vmul.f32 %v256_v30, %v2773_v44  ;;  %v3116_v2 = vmul.f32 %v3062_v31, %v2779_v47  ;;  %v3152_v27 = vmul.f32 %v3078_v41, %v2773_v44 }
 0x12c   : > { %v265_v8 = vrot.slane %v3092_v49, 1 }
 0x12d   : > { %810 = vrot.lane.b32.xlu0 %v807_v46, %s4021_s5  ;;  %777 = vrot.lane.b32.xlu1 %v774_v50, %s2592_s3  ;;  %v962_v46 = vmul.f32 %v959_v29, %v2796_v59  ;;  %v1001_v50 = vstv %s2316_s28  ;;  %s3041_s28 = sld [smem:[#allocation7 + $0x1b]]  ;;  %v250_v29 = vstv %s3006_s19  ;;  %s3224_s19 = sld [smem:[#allocation7 + $0x32]] }
 0x12e   : > { %v1003_v54 = vmul.f32 %v1001_v50, %v2779_v47 }
 0x130   : > { %v1009_v1 = vrot.slane %v1003_v54, 4  ;;  %v1065_v54 = vmul.f32 %v1064_v37, %v2773_v44 }
 0x131   : > { %831 = vrot.lane.b32.xlu0 %v828_v57, %s4021_s5  ;;  %812 = vrot.lane.b32.xlu1 %v809_v60, %s4021_s5  ;;  %v969_v57 = vrot.slane %v962_v46, 2  ;;  %v1002_v60 = vmul.f32 %v1001_v50, %v2773_v44  ;;  %v1099_v46 = vstv %s3039_s27  ;;  %s2342_s27 = sld [smem:[#allocation7 + $0x41]] }
 0x132   : > { %v1102_v19 = vmul.f32 %v1099_v46, %v2796_v59 }
 0x133   : > { %v970_v4 = vsel %vm281_vm5, %v967_v40, %v969_v57  ;;  %v1008_v7 = vrot.slane %v1002_v60, 4  ;;  %v3075_v40 = vstv %s3017_s23  ;;  %v1120_v48 = vstv %s3041_s28  ;;  %s3277_s23 = sld [smem:[#allocation7 + $0x4e]]  ;;  %s2343_s28 = sld [smem:[#allocation7 + $0x48]] }
 0x134   : > { %v1081_v60 = vmul.f32 %v1078_v28, %v2796_v59  ;;  %v1122_v18 = vmul.f32 %v1120_v48, %v2779_v47  ;;  %v3145_v25 = vmul.f32 %v3075_v40, %v2779_v47 }
 0x135   : > { %852 = vrot.lane.b32.xlu0 %v849_v5, %s4021_s5  ;;  %833 = vrot.lane.b32.xlu1 %v830_v6, %s4021_s5  ;;  %v990_v5 = vrot.slane %v983_v58, 3  ;;  %v1004_v6 = vmul.f32 %v1001_v50, %v2796_v59  ;;  %v3105_v58 = vmul.f32 %v1099_v46, %v2779_v47 }
 0x136   : > { %v1088_v17 = vrot.slane %v1081_v60, 1  ;;  %v3170_v60 = vmul.f32 %v3078_v41, %v2779_v47 }
 0x137   : > { %v1011_v15 = vrot.slane %v1004_v6, 4  ;;  %v1100_v6 = vmul.f32 %v1099_v46, %v2773_v44  ;;  %v1107_v16 = vrot.slane %v3105_v58, 2  ;;  %v301_v58 = vrot.slane %v3145_v25, 3 }
 0x139   : > { %873 = vrot.lane.b32.xlu0 %v870_v11, %s4021_s5  ;;  %854 = vrot.lane.b32.xlu1 %v851_v14, %s4021_s5  ;;  %v1010_v11 = vsel %vm317_vm7, %v1008_v7, %v1009_v1  ;;  %v991_v14 = vsel %vm299_vm6, %v988_v56, %v990_v5  ;;  %v3101_v56 = vstv %s3048_s4  ;;  %v3125_v5 = vmul.f32 %v3075_v40, %v2773_v44  ;;  %s3398_s4 = sld [smem:[#allocation7 + $0x4f]] }
 0x13d   : > { %894 = vrot.lane.b32.xlu0 %v891_v21, %s4021_s5  ;;  %875 = vrot.lane.b32.xlu1 %v872_v23, %s4021_s5  ;;  %v1012_v23 = vsel %vm317_vm7, %v1009_v1, %v1011_v15  ;;  %v275_v1 = vmul.f32 %v3062_v31, %v2773_v44  ;;  %v1066_v15 = vmul.f32 %v1064_v37, %v2779_v47 }
 0x141   : > { %915 = vrot.lane.b32.xlu0 %v912_v32, %s4021_s5  ;;  %896 = vrot.lane.b32.xlu1 %v893_v33, %s4021_s5 }
 0x143   : > { %v2976_v38 = vpop.permute.xlu0 %369 }
 0x145   : > { %950 = vrot.lane.b32.xlu0 %v947_v39, %s2594_s8  ;;  %917 = vrot.lane.b32.xlu1 %v914_v42, %s4021_s5  ;;  %s3057_s5 = sld [smem:[#allocation7 + $0x30]]  ;;  %v1053_v39 = vrot.slane %v1046_v26, 6  ;;  %v1079_v42 = vmul.f32 %v1078_v28, %v2773_v44  ;;  %v300_v26 = vrot.slane %v3125_v5, 3  ;;  %v1106_v28 = vrot.slane %v1100_v6, 2 }
 0x147   : > { %v2985_v51 = vpop.permute.xlu1 %371  ;;  %v2987_v52 = vpop.permute.xlu0 %509  ;;  %v1054_v57 = vsel %vm353_vm9, %v1051_v24, %v1053_v39  ;;  %v283_v24 = vrot.slane %v3116_v2, 2  ;;  %v3162_v39 = vmul.f32 %v3101_v56, %v2779_v47  ;;  %v1108_v46 = vsel %vm281_vm5, %v1106_v28, %v1107_v16  ;;  %v2463_v2 = vld [vmem:[#allocation2 + $0x10] sm:$0x3f] }
 0x148   : > { %v3211_v28 = vmul.f32 %v3084_v43, %v2779_v47 }
 0x149   : > { %971 = vrot.lane.b32.xlu0 %v968_v53, %s2594_s8  ;;  %952 = vrot.lane.b32.xlu1 %v949_v55, %s2594_s8  ;;  %v1086_v55 = vrot.slane %v3069_v34, 1 }
 0x14b   : > { %v2998_v63 = vpop.permute.xlu1 %511  ;;  %v3000_v0 = vpop.permute.xlu0 %649  ;;  %v3129_v7 = vstv %s3057_s5  ;;  %v1089_v49 = vsel %vm263_vm4, %v1086_v55, %v1088_v17  ;;  %s3207_s5 = sld [smem:[#allocation7 + $0x39]] }
 0x14d   : > { %992 = vrot.lane.b32.xlu0 %v989_v3, %s2594_s8  ;;  %973 = vrot.lane.b32.xlu1 %v970_v4, %s2594_s8  ;;  %v1085_v3 = vrot.slane %v1079_v42, 1  ;;  %v251_v4 = vmul.f32 %v250_v29, %v2773_v44  ;;  %v1123_v42 = vmul.f32 %v1120_v48, %v2796_v59 }
 0x14f   : > { %v3019_v9 = vpop.permute.xlu1 %651  ;;  %v3021_v10 = vpop.permute.xlu0 %789 }
 0x151   : > { %1013 = vrot.lane.b32.xlu0 %v1010_v11, %s2594_s8  ;;  %994 = vrot.lane.b32.xlu1 %v991_v14, %s2594_s8  ;;  %v259_v11 = vmul.f32 %v256_v30, %v2796_v59  ;;  %v1087_v14 = vsel %vm263_vm4, %v1085_v3, %v1086_v55  ;;  %v1121_v30 = vmul.f32 %v1120_v48, %v2773_v44 }
 0x152   : > { %v1142_v48 = vmul.f32 %v3101_v56, %v2773_v44  ;;  %v3183_v3 = vmul.f32 %v3084_v43, %v2773_v44  ;;  %v3198_v44 = vmul.f32 %v3109_v61, %v2779_v47 }
 0x153   : > { %v3043_v20 = vpop.permute.xlu1 %791  ;;  %v3045_v21 = vpop.permute.xlu0 %929  ;;  %v1127_v5 = vrot.slane %v1121_v30, 3 }
 0x155   : > { %1034 = vrot.lane.b32.xlu0 %v1031_v22, %s2594_s8  ;;  %1015 = vrot.lane.b32.xlu1 %v1012_v23, %s2594_s8  ;;  %v264_v22 = vrot.slane %v257_v62, 1  ;;  %v282_v23 = vrot.slane %v275_v1, 2  ;;  %v277_v62 = vmul.f32 %v3062_v31, %v2796_v59  ;;  %v252_v31 = vmul.f32 %v250_v29, %v2779_v47 }
 0x156   : > { %v1144_v29 = vmul.f32 %v3101_v56, %v2796_v59  ;;  %v2461_v56 = vld [vmem:[#allocation2] sm:$0xff]  ;;  %v1170_v47 = vrot.slane %v3198_v44, 5 }
 0x157   : > { %v3064_v32 = vpop.permute.xlu1 %931  ;;  %v3066_v33 = vpop.permute.xlu0 %390  ;;  %v266_v34 = vsel %vm263_vm4, %v264_v22, %v265_v8  ;;  %v284_v55 = vsel %vm281_vm5, %v282_v23, %v283_v24  ;;  %v295_v22 = vmul.f32 %v3075_v40, %v2796_v59  ;;  %v1148_v23 = vrot.slane %v1142_v48, 4 }
 0x158   : > { %v271_v1 = vadd.f32 %v266_v34, %v251_v4  ;;  %v1149_v4 = vrot.slane %v3162_v39, 4  ;;  %v302_v40 = vsel %vm299_vm6, %v300_v26, %v301_v58  ;;  %v319_v34 = vrot.slane %v3170_v60, 4 }
 0x159   : > { %1055 = vrot.lane.b32.xlu0 %v1052_v35, %s2594_s8  ;;  %1036 = vrot.lane.b32.xlu1 %v1033_v36, %s2594_s8  ;;  %v267_v35 = vrot.slane %v259_v11, 1  ;;  %v1165_v60 = vmul.f32 %v3109_v61, %v2796_v59  ;;  %v303_v48 = vrot.slane %v295_v22, 3 }
 0x15b   : > { %v3094_v50 = vpop.permute.xlu1 %392  ;;  %v3096_v53 = vpop.permute.xlu0 %411  ;;  %v268_v6 = vsel %vm263_vm4, %v265_v8, %v267_v35  ;;  %v318_v8 = vrot.slane %v3152_v27, 4  ;;  %v1163_v27 = vmul.f32 %v2461_v56, %v3109_v61 }
 0x15c   : > { %v272_v30 = vadd.f32 %v268_v6, %v252_v31  ;;  %v1184_v6 = vmul.f32 %v2461_v56, %v3129_v7 }
 0x15d   : > { %1069 = vrot.lane.b32.xlu0 %v1065_v54, %s2595_s24  ;;  %1057 = vrot.lane.b32.xlu1 %v1054_v57, %s2594_s8  ;;  %v1128_v54 = vrot.slane %v1122_v18, 3  ;;  %v1109_v57 = vrot.slane %v1102_v19, 2  ;;  %v285_v19 = vrot.slane %v277_v62, 2  ;;  %v336_v62 = vrot.slane %v3183_v3, 5 }
 0x15e   : > { %v1169_v31 = vrot.slane %v1163_v27, 5  ;;  %v320_v61 = vsel %vm317_vm7, %v318_v8, %v319_v34  ;;  %v337_v3 = vrot.slane %v3211_v28, 5  ;;  %v3258_v8 = vld [vmem:[#allocation2 + $0x18] sm:$0xff]  ;;  %v347_v28 = vmul.f32 %v2461_v56, %v3087_v45 }
 0x15f   : > { %v3133_v12 = vpop.permute.xlu1 %413  ;;  %v3135_v13 = vpop.permute.xlu0 %432  ;;  %v1129_v17 = vsel %vm299_vm6, %v1127_v5, %v1128_v54  ;;  %v1110_v18 = vsel %vm281_vm5, %v1107_v16, %v1109_v57  ;;  %v289_v16 = vadd.f32 %v284_v55, %v271_v1  ;;  %v2462_v57 = vld [vmem:[#allocation2 + $0x8] sm:$0xff]  ;;  %v286_v1 = vsel %vm281_vm5, %v283_v24, %v285_v19  ;;  %v3260_v19 = vld [vmem:[#allocation2 + $0x20] sm:$0xff] }
 0x160   : > { %v3230_v26 = vmul.f32 %v2462_v57, %v3129_v7  ;;  %v290_v5 = vadd.f32 %v286_v1, %v272_v30  ;;  %v1186_v24 = vmul.f32 %v2463_v2, %v3129_v7  ;;  %v304_v7 = vsel %vm299_vm6, %v301_v58, %v303_v48 }
 0x161   : > { %1090 = vrot.lane.b32.xlu0 %v1087_v14, %s2595_s24  ;;  %1071 = vrot.lane.b32.xlu1 %v1066_v15, %s2595_s24  ;;  %v1130_v15 = vrot.slane %v1123_v42, 3  ;;  %v1150_v42 = vsel %vm317_vm7, %v1148_v23, %v1149_v4  ;;  %v307_v55 = vadd.f32 %v302_v40, %v289_v16  ;;  %v331_v23 = vmul.f32 %v2463_v2, %v3084_v43 }
 0x162   : > { %v1191_v44 = vrot.slane %v3230_v26, 6  ;;  %v308_v30 = vadd.f32 %v304_v7, %v290_v5  ;;  %v1190_v27 = vrot.slane %v1184_v6, 6  ;;  %v338_v40 = vsel %vm335_vm8, %v336_v62, %v337_v3 }
 0x163   : > { %v3156_v36 = vpop.permute.xlu1 %434  ;;  %v3158_v37 = vpop.permute.xlu0 %453  ;;  %v325_v16 = vadd.f32 %v320_v61, %v307_v55  ;;  %v1315_v43 = vstv %s3224_s19  ;;  %v1193_v25 = vrot.slane %v1186_v24, 6  ;;  %v339_v48 = vrot.slane %v331_v23, 5  ;;  %s3468_s19 = sld [smem:[#allocation7 + $0x34]] }
 0x164   : > { %v1192_v58 = vsel %vm353_vm9, %v1190_v27, %v1191_v44 }
 0x165   : > { %1111 = vrot.lane.b32.xlu0 %v1108_v46, %s2595_s24  ;;  %1092 = vrot.lane.b32.xlu1 %v1089_v49, %s2595_s24  ;;  %v1131_v46 = vsel %vm299_vm6, %v1128_v54, %v1130_v15  ;;  %v1151_v49 = vrot.slane %v1144_v29, 4  ;;  %v313_v54 = vmul.f32 %v3078_v41, %v2796_v59  ;;  %v3246_v15 = vmul.f32 %v2462_v57, %v3087_v45 }
 0x166   : > { %v1172_v29 = vrot.slane %v1165_v60, 5  ;;  %v3283_v60 = vld [vmem:[#allocation2 + $0x28] sm:$0x3f]  ;;  %v343_v55 = vadd.f32 %v338_v40, %v325_v16  ;;  %v340_v23 = vsel %vm335_vm8, %v337_v3, %v339_v48 }
 0x167   : > { %v3189_v11 = vpop.permute.xlu1 %455  ;;  %v3191_v14 = vpop.permute.xlu0 %474  ;;  %v321_v22 = vrot.slane %v313_v54, 4  ;;  %v355_v62 = vrot.slane %v3246_v15, 6  ;;  %v349_v54 = vmul.f32 %v2463_v2, %v3087_v45  ;;  %v1316_v15 = vmul.f32 %v1315_v43, %v3258_v8 }
 0x168   : > { %v1173_v57 = vsel %vm335_vm8, %v1170_v47, %v1172_v29  ;;  %v1194_v45 = vsel %vm353_vm9, %v1191_v44, %v1193_v25 }
 0x169   : > { %1132 = vrot.lane.b32.xlu0 %v1129_v17, %s2595_s24  ;;  %1113 = vrot.lane.b32.xlu1 %v1110_v18, %s2595_s24  ;;  %v1171_v17 = vsel %vm335_vm8, %v1169_v31, %v1170_v47  ;;  %v1152_v18 = vsel %vm317_vm7, %v1149_v4, %v1151_v49  ;;  %v1329_v4 = vstv %s3207_s5  ;;  %v1350_v49 = vstv %s3226_s25  ;;  %s3461_s5 = sld [smem:[#allocation7 + $0x3b]]  ;;  %s3475_s25 = sld [smem:[#allocation7 + $0x42]] }
 0x16a   : > { %v1330_v26 = vmul.f32 %v1329_v4, %v3258_v8  ;;  %v1331_v56 = vmul.f32 %v1329_v4, %v3260_v19  ;;  %v322_v1 = vsel %vm317_vm7, %v319_v34, %v321_v22  ;;  %v1351_v5 = vmul.f32 %v1350_v49, %v3258_v8 }
 0x16b   : > { %v3218_v35 = vpop.permute.xlu1 %476  ;;  %v3220_v39 = vpop.permute.xlu0 %495  ;;  %v326_v47 = vadd.f32 %v322_v1, %v308_v30  ;;  %v354_v31 = vrot.slane %v347_v28, 6  ;;  %v1352_v2 = vmul.f32 %v1350_v49, %v3260_v19  ;;  %v357_v22 = vrot.slane %v349_v54, 6 }
 0x16c   : > { %v1336_v34 = vrot.slane %v1330_v26, 1  ;;  %v1337_v24 = vrot.slane %v1331_v56, 1  ;;  %v1353_v44 = vmul.f32 %v1350_v49, %v3283_v60  ;;  %v1317_v28 = vmul.f32 %v1315_v43, %v3260_v19 }
 0x16d   : > { %1153 = vrot.lane.b32.xlu0 %v1150_v42, %s2595_s24  ;;  %1134 = vrot.lane.b32.xlu1 %v1131_v46, %s2595_s24  ;;  %v356_v29 = vsel %vm353_vm9, %v354_v31, %v355_v62  ;;  %v344_v16 = vadd.f32 %v340_v23, %v326_v47  ;;  %v1358_v40 = vrot.slane %v1352_v2, 2  ;;  %v358_v43 = vsel %vm353_vm9, %v355_v62, %v357_v22 }
 0x16e   : > { %v361_v7 = vadd.f32 %v356_v29, %v343_v55  ;;  %v1338_v26 = vsel %vm263_vm4, %v1336_v34, %v1337_v24  ;;  %v1360_v56 = vrot.slane %v1353_v44, 2  ;;  %v1413_v34 = vstv %s3300_s29  ;;  %s3526_s29 = sld [smem:[#allocation7 + $0x57]] }
 0x16f   : > { %v3248_v59 = vpop.permute.xlu1 %497  ;;  %v3250_v41 = vpop.permute.xlu0 %530  ;;  %v362_v48 = vadd.f32 %v358_v43, %v344_v16  ;;  %v1415_v16 = vmul.f32 %v1413_v34, %v3260_v19 }
 0x171   : > { %1174 = vrot.lane.b32.xlu0 %v1171_v17, %s2595_s24  ;;  %1155 = vrot.lane.b32.xlu1 %v1152_v18, %s2595_s24  ;;  %v1332_v17 = vmul.f32 %v1329_v4, %v3283_v60  ;;  %v1371_v18 = vstv %s3256_s20  ;;  %v1357_v4 = vrot.slane %v1351_v5, 2  ;;  %s3495_s20 = sld [smem:[#allocation7 + $0x49]] }
 0x172   : > { %v1372_v25 = vmul.f32 %v1371_v18, %v3258_v8  ;;  %v1373_v3 = vmul.f32 %v1371_v18, %v3260_v19 }
 0x173   : > { %v3271_v42 = vpop.permute.xlu1 %532  ;;  %v3273_v46 = vpop.permute.xlu0 %551  ;;  %v1339_v49 = vrot.slane %v1332_v17, 1  ;;  %v1359_v5 = vsel %vm281_vm5, %v1357_v4, %v1358_v40  ;;  %v1361_v17 = vsel %vm281_vm5, %v1358_v40, %v1360_v56  ;;  %v1421_v56 = vrot.slane %v1415_v16, 5 }
 0x174   : > { %v1378_v62 = vrot.slane %v1372_v25, 3  ;;  %v1379_v31 = vrot.slane %v1373_v3, 3 }
 0x175   : > { %1195 = vrot.lane.b32.xlu0 %v1192_v58, %s2595_s24  ;;  %1176 = vrot.lane.b32.xlu1 %v1173_v57, %s2595_s24  ;;  %v1392_v58 = vstv %s3277_s23  ;;  %v375_v57 = vadd.f32 %v2976_v38, %v361_v7  ;;  %v1414_v7 = vmul.f32 %v1413_v34, %v3258_v8  ;;  %s3511_s23 = sld [smem:[#allocation7 + $0x50]] }
 0x176   : > { %v1393_v1 = vmul.f32 %v1392_v58, %v3258_v8  ;;  %v1394_v38 = vmul.f32 %v1392_v58, %v3260_v19 }
 0x177   : > { %v3291_v6 = vpop.permute.xlu1 %553  ;;  %v3293_v61 = vpop.permute.xlu0 %572  ;;  %v396_v54 = vadd.f32 %v3066_v33, %v375_v57  ;;  %v1340_v33 = vsel %vm263_vm4, %v1337_v24, %v1339_v49  ;;  %v1416_v57 = vmul.f32 %v1413_v34, %v3283_v60 }
 0x178   : > { %v1399_v23 = vrot.slane %v1393_v1, 4 }
 0x179   : > { %1320 = vrot.lane.b32.xlu0 %v1316_v15, %s2590_s17  ;;  %1197 = vrot.lane.b32.xlu1 %v1194_v45, %s2595_s24  ;;  %v1374_v15 = vmul.f32 %v1371_v18, %v3283_v60  ;;  %v376_v45 = vadd.f32 %v2985_v51, %v362_v48  ;;  %v417_v2 = vadd.f32 %v3096_v53, %v396_v54  ;;  %v1400_v18 = vrot.slane %v1394_v38, 4 }
 0x17a   : > { %v1380_v53 = vsel %vm299_vm6, %v1378_v62, %v1379_v31 }
 0x17b   : > { %v3308_v30 = vpop.permute.xlu1 %574  ;;  %v3310_v27 = vpop.permute.xlu0 %593  ;;  %v397_v29 = vadd.f32 %v3094_v50, %v376_v45  ;;  %v438_v22 = vadd.f32 %v3135_v13, %v417_v2  ;;  %v1381_v24 = vrot.slane %v1374_v15, 3  ;;  %v1395_v50 = vmul.f32 %v1392_v58, %v3283_v60 }
 0x17c   : > { %v1434_v13 = vstv %s3317_s7  ;;  %v1401_v3 = vsel %vm317_vm7, %v1399_v23, %v1400_v18  ;;  %s3534_s7 = sld [smem:[#allocation7 + $0x5e]] }
 0x17d   : > { %1341 = vrot.lane.b32.xlu0 %v1338_v26, %s2590_s17  ;;  %1322 = vrot.lane.b32.xlu1 %v1317_v28, %s2590_s17  ;;  %v418_v28 = vadd.f32 %v3133_v12, %v397_v29  ;;  %v459_v4 = vadd.f32 %v3158_v37, %v438_v22  ;;  %v1382_v58 = vsel %vm299_vm6, %v1379_v31, %v1381_v24  ;;  %v1420_v26 = vrot.slane %v1414_v7, 5 }
 0x17e   : > { %v1435_v49 = vmul.f32 %v1434_v13, %v3258_v8  ;;  %v1436_v43 = vmul.f32 %v1434_v13, %v3260_v19  ;;  %v1402_v48 = vrot.slane %v1395_v50, 4 }
 0x17f   : > { %v3325_v55 = vpop.permute.xlu1 %595  ;;  %v3327_v47 = vpop.permute.xlu0 %614  ;;  %v439_v40 = vadd.f32 %v3156_v36, %v418_v28  ;;  %v480_v25 = vadd.f32 %v3191_v14, %v459_v4  ;;  %v1422_v45 = vsel %vm335_vm8, %v1420_v26, %v1421_v56  ;;  %v1511_v28 = vstv %s2343_s28  ;;  %s3585_s28 = sld [smem:[#allocation7 + $0x51]] }
 0x180   : > { %v1442_v62 = vrot.slane %v1436_v43, 6  ;;  %v1403_v2 = vsel %vm317_vm7, %v1400_v18, %v1402_v48  ;;  %v1513_v48 = vmul.f32 %v1511_v28, %v3260_v19 }
 0x181   : > { %1362 = vrot.lane.b32.xlu0 %v1359_v5, %s2590_s17  ;;  %1343 = vrot.lane.b32.xlu1 %v1340_v33, %s2590_s17  ;;  %v460_v36 = vadd.f32 %v3189_v11, %v439_v40  ;;  %v501_v14 = vadd.f32 %v3220_v39, %v480_v25  ;;  %v1441_v5 = vrot.slane %v1435_v49, 6  ;;  %v1423_v11 = vrot.slane %v1416_v57, 5 }
 0x182   : > { %v1437_v39 = vmul.f32 %v1434_v13, %v3283_v60  ;;  %v1455_v33 = vstv %s3359_s26  ;;  %s3573_s26 = sld [smem:[#allocation7 + $0x43]] }
 0x183   : > { %v3340_v44 = vpop.permute.xlu1 %616  ;;  %v3342_v51 = vpop.permute.xlu0 %635  ;;  %v481_v54 = vadd.f32 %v3218_v35, %v460_v36  ;;  %v515_v31 = vadd.f32 %v2987_v52, %v501_v14  ;;  %v1469_v35 = vstv %s3353_s16  ;;  %v1443_v29 = vsel %vm353_vm9, %v1441_v5, %v1442_v62  ;;  %s3567_s16 = sld [smem:[#allocation7 + $0x3c]] }
 0x184   : > { %v1424_v52 = vsel %vm335_vm8, %v1421_v56, %v1423_v11  ;;  %v1444_v22 = vrot.slane %v1437_v39, 6  ;;  %v1471_v24 = vmul.f32 %v1469_v35, %v3260_v19  ;;  %v1456_v16 = vmul.f32 %v1455_v33, %v3258_v8 }
 0x185   : > { %1383 = vrot.lane.b32.xlu0 %v1380_v53, %s2590_s17  ;;  %1364 = vrot.lane.b32.xlu1 %v1361_v17, %s2590_s17  ;;  %v502_v15 = vadd.f32 %v3248_v59, %v481_v54  ;;  %v1490_v59 = vstv %s2342_s27  ;;  %v536_v18 = vadd.f32 %v3250_v41, %v515_v31  ;;  %v1470_v53 = vmul.f32 %v1469_v35, %v3258_v8  ;;  %s3579_s27 = sld [smem:[#allocation7 + $0x4a]] }
 0x186   : > { %v1445_v4 = vsel %vm353_vm9, %v1442_v62, %v1444_v22  ;;  %v1472_v50 = vmul.f32 %v1469_v35, %v3283_v60  ;;  %v1491_v13 = vmul.f32 %v1490_v59, %v3258_v8  ;;  %v1492_v40 = vmul.f32 %v1490_v59, %v3260_v19 }
 0x187   : > { %v3361_v12 = vpop.permute.xlu1 %637  ;;  %v3363_v37 = vpop.permute.xlu0 %670  ;;  %v516_v23 = vadd.f32 %v2998_v63, %v502_v15  ;;  %v557_v7 = vadd.f32 %v3273_v46, %v536_v18  ;;  %v1477_v57 = vrot.slane %v1471_v24, 1  ;;  %v1457_v49 = vmul.f32 %v1455_v33, %v3260_v19 }
 0x188   : > { %v1493_v43 = vmul.f32 %v1490_v59, %v3283_v60  ;;  %v1497_v14 = vrot.slane %v1491_v13, 2  ;;  %v1512_v56 = vmul.f32 %v1511_v28, %v3258_v8  ;;  %v1498_v5 = vrot.slane %v1492_v40, 2 }
 0x189   : > { %1404 = vrot.lane.b32.xlu0 %v1401_v3, %s2590_s17  ;;  %1385 = vrot.lane.b32.xlu1 %v1382_v58, %s2590_s17  ;;  %v537_v25 = vadd.f32 %v3271_v42, %v516_v23  ;;  %v578_v46 = vadd.f32 %v3293_v61, %v557_v7  ;;  %v1476_v3 = vrot.slane %v1470_v53, 1  ;;  %v1479_v61 = vrot.slane %v1472_v50, 1 }
 0x18a   : > { %v1532_v62 = vstv %s3398_s4  ;;  %v1500_v31 = vrot.slane %v1493_v43, 2  ;;  %v1553_v15 = vstv %s3402_s6  ;;  %v1519_v35 = vrot.slane %v1513_v48, 3  ;;  %s3591_s4 = sld [smem:[#allocation7 + $0x58]]  ;;  %s3617_s6 = sld [smem:[#allocation7 + $0x5f]] }
 0x18b   : > { %v3373_v1 = vpop.permute.xlu1 %672  ;;  %v3375_v38 = vpop.permute.xlu0 %691  ;;  %v558_v58 = vadd.f32 %v3291_v6, %v537_v25  ;;  %v599_v26 = vadd.f32 %v3310_v27, %v578_v46  ;;  %v1478_v54 = vsel %vm263_vm4, %v1476_v3, %v1477_v57  ;;  %v1514_v33 = vmul.f32 %v1511_v28, %v3283_v60 }
 0x18c   : > { %v1501_v23 = vsel %vm281_vm5, %v1498_v5, %v1500_v31  ;;  %v1535_v24 = vmul.f32 %v1532_v62, %v3283_v60  ;;  %v1554_v7 = vmul.f32 %v1553_v15, %v3258_v8  ;;  %v1556_v40 = vmul.f32 %v1553_v15, %v3283_v60 }
 0x18d   : > { %1425 = vrot.lane.b32.xlu0 %v1422_v45, %s2590_s17  ;;  %1406 = vrot.lane.b32.xlu1 %v1403_v2, %s2590_s17  ;;  %v579_v6 = vadd.f32 %v3308_v30, %v558_v58  ;;  %v620_v27 = vadd.f32 %v3327_v47, %v599_v26  ;;  %v1480_v47 = vsel %vm263_vm4, %v1477_v57, %v1479_v61  ;;  %v1518_v2 = vrot.slane %v1512_v56, 3 }
 0x18e   : > { %v1521_v28 = vrot.slane %v1514_v33, 3  ;;  %v1542_v3 = vrot.slane %v1535_v24, 4  ;;  %v1560_v57 = vrot.slane %v1554_v7, 5  ;;  %v1563_v56 = vrot.slane %v1556_v40, 5 }
 0x18f   : > { %v3386_v34 = vpop.permute.xlu1 %693  ;;  %v3388_v17 = vpop.permute.xlu0 %712  ;;  %v600_v11 = vadd.f32 %v3325_v55, %v579_v6  ;;  %v641_v39 = vadd.f32 %v3342_v51, %v620_v27  ;;  %v1533_v55 = vmul.f32 %v1532_v62, %v3258_v8  ;;  %v1534_v51 = vmul.f32 %v1532_v62, %v3260_v19 }
 0x190   : > { %v1520_v53 = vsel %vm299_vm6, %v1518_v2, %v1519_v35  ;;  %v1630_v33 = vstv %s3475_s25  ;;  %s3637_s25 = sld [smem:[#allocation7 + $0x4d]] }
 0x191   : > { %1446 = vrot.lane.b32.xlu0 %v1443_v29, %s2590_s17  ;;  %1427 = vrot.lane.b32.xlu1 %v1424_v52, %s2590_s17  ;;  %v621_v29 = vadd.f32 %v3340_v44, %v600_v11  ;;  %v1499_v52 = vsel %vm281_vm5, %v1497_v14, %v1498_v5  ;;  %v655_v22 = vadd.f32 %v3000_v0, %v641_v39  ;;  %v1540_v50 = vrot.slane %v1534_v51, 4 }
 0x192   : > { %v1632_v24 = vmul.f32 %v1630_v33, %v3260_v19 }
 0x193   : > { %v3404_v63 = vpop.permute.xlu1 %714  ;;  %v3406_v41 = vpop.permute.xlu0 %733  ;;  %v642_v59 = vadd.f32 %v3361_v12, %v621_v29  ;;  %v676_v13 = vadd.f32 %v3363_v37, %v655_v22 }
 0x195   : > { %1448 = vrot.lane.b32.xlu1 %v1445_v4, %s2590_s17  ;;  %1460 = vrot.lane.b32.xlu0 %v1456_v16, %s2591_s30  ;;  %s3429_s17 = sld [smem:[#allocation7 + $0x5d]]  ;;  %v1555_v16 = vmul.f32 %v1553_v15, %v3260_v19  ;;  %v1539_v4 = vrot.slane %v1533_v55, 4  ;;  %v656_v12 = vadd.f32 %v3019_v9, %v642_v59  ;;  %v1522_v9 = vsel %vm299_vm6, %v1519_v35, %v1521_v28 }
 0x196   : > { %v1595_v35 = vstv %s3468_s19  ;;  %s3630_s19 = sld [smem:[#allocation7 + $0x3f]] }
 0x197   : > { %v3420_v36 = vpop.permute.xlu1 %735  ;;  %v3422_v42 = vpop.permute.xlu0 %754  ;;  %v1561_v58 = vrot.slane %v1555_v16, 5  ;;  %v1541_v37 = vsel %vm317_vm7, %v1539_v4, %v1540_v50  ;;  %v677_v61 = vadd.f32 %v3373_v1, %v656_v12  ;;  %v1596_v51 = vmul.f32 %v1595_v35, %v3258_v8 }
 0x198   : > { %v1633_v4 = vmul.f32 %v1630_v33, %v3283_v60 }
 0x199   : > { %1462 = vrot.lane.b32.xlu1 %v1457_v49, %s2591_s30  ;;  %1481 = vrot.lane.b32.xlu0 %v1478_v54, %s2591_s30  ;;  %v697_v49 = vadd.f32 %v3375_v38, %v676_v13  ;;  %v1543_v38 = vsel %vm317_vm7, %v1540_v50, %v1542_v3  ;;  %v1562_v27 = vsel %vm335_vm8, %v1560_v57, %v1561_v58 }
 0x19a   : > { %v698_v62 = vadd.f32 %v3386_v34, %v677_v61  ;;  %v1564_v15 = vsel %vm335_vm8, %v1561_v58, %v1563_v56  ;;  %v1597_v50 = vmul.f32 %v1595_v35, %v3260_v19 }
 0x19b   : > { %v3437_v45 = vpop.permute.xlu1 %756  ;;  %v3439_v30 = vpop.permute.xlu0 %775  ;;  %v1574_v0 = vstv %s3429_s17  ;;  %v718_v14 = vadd.f32 %v3388_v17, %v697_v49  ;;  %v1609_v17 = vstv %s3461_s5  ;;  %v1672_v49 = vstv %s3511_s23  ;;  %s3621_s17 = sld [smem:[#allocation7 + $0x38]]  ;;  %s4033_s5 = smov 124  }
 0x19c   : > { %v1575_v26 = vmul.f32 %v1574_v0, %v3258_v8  ;;  %v1576_v43 = vmul.f32 %v1574_v0, %v3260_v19  ;;  %v1577_v5 = vmul.f32 %v1574_v0, %v3283_v60  ;;  %v719_v39 = vadd.f32 %v3404_v63, %v698_v62  ;;  %s3645_s23 = sld [smem:[#allocation7 + $0x54]] }
 0x19d   : > { %1483 = vrot.lane.b32.xlu1 %v1480_v47, %s2591_s30  ;;  %1502 = vrot.lane.b32.xlu0 %v1499_v52, %s2591_s30  ;;  %v739_v1 = vadd.f32 %v3406_v41, %v718_v14  ;;  %v1610_v41 = vmul.f32 %v1609_v17, %v3258_v8  ;;  %v1611_v63 = vmul.f32 %v1609_v17, %v3260_v19  ;;  %v1693_v62 = vstv %s3526_s29  ;;  %s3649_s29 = sld [smem:[#allocation7 + $0x5b]] }
 0x19e   : > { %v1581_v54 = vrot.slane %v1575_v26, 6  ;;  %v1582_v11 = vrot.slane %v1576_v43, 6  ;;  %v1584_v34 = vrot.slane %v1577_v5, 6  ;;  %v740_v29 = vadd.f32 %v3420_v36, %v719_v39 }
 0x19f   : > { %v3452_v18 = vpop.permute.xlu1 %777  ;;  %v3454_v44 = vpop.permute.xlu0 %810  ;;  %v760_v31 = vadd.f32 %v3422_v42, %v739_v1  ;;  %v1612_v22 = vmul.f32 %v1609_v17, %v3283_v60  ;;  %v1617_v28 = vrot.slane %v1611_v63, 1  ;;  %v1694_v35 = vmul.f32 %v1693_v62, %v3258_v8 }
 0x1a0   : > { %v1583_v55 = vsel %vm353_vm9, %v1581_v54, %v1582_v11  ;;  %v761_v42 = vadd.f32 %v3437_v45, %v740_v29  ;;  %v1585_v59 = vsel %vm353_vm9, %v1582_v11, %v1584_v34  ;;  %v1651_v45 = vstv %s3495_s20  ;;  %s3642_s20 = sld [smem:[#allocation7 + $0x31]] }
 0x1a1   : > { %1504 = vrot.lane.b32.xlu1 %v1501_v23, %s2591_s30  ;;  %1523 = vrot.lane.b32.xlu0 %v1520_v53, %s2591_s30  ;;  %v781_v52 = vadd.f32 %v3439_v30, %v760_v31  ;;  %v1616_v23 = vrot.slane %v1610_v41, 1  ;;  %v1631_v53 = vmul.f32 %v1630_v33, %v3258_v8  ;;  %v1619_v0 = vrot.slane %v1612_v22, 1 }
 0x1a2   : > { %v782_v16 = vadd.f32 %v3452_v18, %v761_v42  ;;  %v1652_v18 = vmul.f32 %v1651_v45, %v3258_v8  ;;  %v1653_v3 = vmul.f32 %v1651_v45, %v3260_v19  ;;  %v1654_v61 = vmul.f32 %v1651_v45, %v3283_v60 }
 0x1a3   : > { %v3470_v25 = vpop.permute.xlu1 %812  ;;  %v3472_v46 = vpop.permute.xlu0 %831  ;;  %v795_v7 = vadd.f32 %v3021_v10, %v781_v52  ;;  %v1637_v40 = vrot.slane %v1631_v53, 2  ;;  %v1638_v10 = vrot.slane %v1632_v24, 2  ;;  %v1618_v26 = vsel %vm263_vm4, %v1616_v23, %v1617_v28 }
 0x1a4   : > { %v796_v57 = vadd.f32 %v3043_v20, %v782_v16  ;;  %v1620_v43 = vsel %vm263_vm4, %v1617_v28, %v1619_v0  ;;  %v1661_v39 = vrot.slane %v1654_v61, 3  ;;  %v1675_v31 = vmul.f32 %v1672_v49, %v3283_v60 }
 0x1a5   : > { %1525 = vrot.lane.b32.xlu1 %v1522_v9, %s2591_s30  ;;  %1544 = vrot.lane.b32.xlu0 %v1541_v37, %s2591_s30  ;;  %v816_v58 = vadd.f32 %v3454_v44, %v795_v7  ;;  %v1640_v9 = vrot.slane %v1633_v4, 2  ;;  %v1639_v20 = vsel %vm281_vm5, %v1637_v40, %v1638_v10  ;;  %v1658_v44 = vrot.slane %v1652_v18, 3 }
 0x1a6   : > { %v817_v54 = vadd.f32 %v3470_v25, %v796_v57  ;;  %v1714_v41 = vstv %s3534_s7  ;;  %v1696_v63 = vmul.f32 %v1693_v62, %v3283_v60  ;;  %v1682_v22 = vrot.slane %v1675_v31, 4  ;;  %s3681_s7 = sld [smem:[#allocation7 + $0x3d]] }
 0x1a7   : > { %v3485_v48 = vpop.permute.xlu1 %833  ;;  %v3487_v6 = vpop.permute.xlu0 %852  ;;  %v837_v37 = vadd.f32 %v3472_v46, %v816_v58  ;;  %v1674_v46 = vmul.f32 %v1672_v49, %v3260_v19  ;;  %v1641_v1 = vsel %vm281_vm5, %v1638_v10, %v1640_v9  ;;  %v1717_v7 = vmul.f32 %v1714_v41, %v3283_v60 }
 0x1a8   : > { %v838_v11 = vadd.f32 %v3485_v48, %v817_v54  ;;  %v1703_v45 = vrot.slane %v1696_v63, 5  ;;  %v1749_v18 = vstv %s3567_s16  ;;  %s3712_s16 = sld [smem:[#allocation7 + $0x44]] }
 0x1a9   : > { %1546 = vrot.lane.b32.xlu1 %v1543_v38, %s2591_s30  ;;  %1565 = vrot.lane.b32.xlu0 %v1562_v27, %s2591_s30  ;;  %v1659_v38 = vrot.slane %v1653_v3, 3  ;;  %v1673_v27 = vmul.f32 %v1672_v49, %v3258_v8  ;;  %v858_v5 = vadd.f32 %v3487_v6, %v837_v37  ;;  %v1680_v52 = vrot.slane %v1674_v46, 4 }
 0x1aa   : > { %v1751_v61 = vmul.f32 %v1749_v18, %v3260_v19 }
 0x1ab   : > { %v3502_v47 = vpop.permute.xlu1 %854  ;;  %v874_v2 = vpop.permute.xlu0 %873  ;;  %v1660_v6 = vsel %vm299_vm6, %v1658_v44, %v1659_v38  ;;  %v1679_v34 = vrot.slane %v1673_v27, 4  ;;  %v1683_v0 = vsel %vm317_vm7, %v1680_v52, %v1682_v22 }
 0x1ac   : > { %v879_v17 = vadd.f32 %v874_v2, %v858_v5  ;;  %v859_v33 = vadd.f32 %v3502_v47, %v838_v11  ;;  %v1757_v31 = vrot.slane %v1751_v61, 1 }
 0x1ad   : > { %1567 = vrot.lane.b32.xlu1 %v1564_v15, %s2591_s30  ;;  %1586 = vrot.lane.b32.xlu0 %v1583_v55, %s2591_s30  ;;  %v1695_v55 = vmul.f32 %v1693_v62, %v3260_v19  ;;  %v1681_v53 = vsel %vm317_vm7, %v1679_v34, %v1680_v52 }
 0x1af   : > { %v3518_v36 = vpop.permute.xlu1 %875  ;;  %v895_v30 = vpop.permute.xlu0 %894  ;;  %v1701_v24 = vrot.slane %v1695_v55, 5 }
 0x1b0   : > { %v900_v29 = vadd.f32 %v895_v30, %v879_v17  ;;  %v880_v48 = vadd.f32 %v3518_v36, %v859_v33  ;;  %v1700_v30 = vrot.slane %v1694_v35, 5  ;;  %v1716_v36 = vmul.f32 %v1714_v41, %v3260_v19 }
 0x1b1   : > { %1588 = vrot.lane.b32.xlu1 %v1585_v59, %s2591_s30  ;;  %1600 = vrot.lane.b32.xlu0 %v1596_v51, %s2592_s3  ;;  %s3565_s30 = sld [smem:[#allocation7 + $0x35]]  ;;  %v1662_v51 = vsel %vm299_vm6, %v1659_v38, %v1661_v39  ;;  %v1715_v59 = vmul.f32 %v1714_v41, %v3258_v8  ;;  %v1704_v58 = vsel %vm335_vm8, %v1701_v24, %v1703_v45  ;;  %v1833_v33 = vstv %s3591_s4  ;;  %s3834_s4 = sld [smem:[#allocation7 + $0x60]] }
 0x1b2   : > { %v1722_v40 = vrot.slane %v1716_v36, 6 }
 0x1b3   : > { %v897_v12 = vpop.permute.xlu1 %896  ;;  %v916_v13 = vpop.permute.xlu0 %915 }
 0x1b4   : > { %v921_v2 = vadd.f32 %v916_v13, %v900_v29  ;;  %v901_v23 = vadd.f32 %v897_v12, %v880_v48  ;;  %v1721_v12 = vrot.slane %v1715_v59, 6  ;;  %v1702_v13 = vsel %vm335_vm8, %v1700_v30, %v1701_v24 }
 0x1b5   : > { %1602 = vrot.lane.b32.xlu1 %v1597_v50, %s2592_s3  ;;  %1621 = vrot.lane.b32.xlu0 %v1618_v26, %s2592_s3  ;;  %v1770_v26 = vstv %s3573_s26  ;;  %v1834_v59 = vmul.f32 %v1833_v33, %v3258_v8  ;;  %s3753_s26 = sld [smem:[#allocation7 + $0x4b]] }
 0x1b6   : > { %v935_v16 = vadd.f32 %v3045_v21, %v921_v2  ;;  %v1724_v21 = vrot.slane %v1717_v7, 6  ;;  %v1723_v44 = vsel %vm353_vm9, %v1721_v12, %v1722_v40  ;;  %v1771_v27 = vmul.f32 %v1770_v26, %v3258_v8 }
 0x1b7   : > { %v918_v14 = vpop.permute.xlu1 %917  ;;  %v3545_v56 = vpop.permute.xlu0 %950  ;;  %v1735_v10 = vstv %s3565_s30  ;;  %v3611_v54 = vmul.f32 %v1770_v26, %v3260_v19  ;;  %v1773_v62 = vmul.f32 %v1770_v26, %v3283_v60  ;;  %s3704_s30 = sld [smem:[#allocation7 + $0x36]] }
 0x1b8   : > { %v922_v28 = vadd.f32 %v918_v14, %v901_v23  ;;  %v956_v57 = vadd.f32 %v3545_v56, %v935_v16  ;;  %v1736_v37 = vmul.f32 %v1735_v10, %v3258_v8  ;;  %v1752_v14 = vmul.f32 %v1749_v18, %v3283_v60 }
 0x1b9   : > { %1623 = vrot.lane.b32.xlu1 %v1620_v43, %s2592_s3  ;;  %1642 = vrot.lane.b32.xlu0 %v1639_v20, %s2592_s3  ;;  %v1750_v43 = vmul.f32 %v1749_v18, %v3258_v8  ;;  %v1791_v56 = vstv %s3579_s27  ;;  %v1725_v38 = vsel %vm353_vm9, %v1722_v40, %v1724_v21  ;;  %v1778_v63 = vrot.slane %v3611_v54, 2  ;;  %s3769_s27 = sld [smem:[#allocation7 + $0x52]] }
 0x1ba   : > { %v936_v3 = vadd.f32 %v3064_v32, %v922_v28  ;;  %v1737_v32 = vmul.f32 %v1735_v10, %v3260_v19  ;;  %v1793_v41 = vmul.f32 %v1791_v56, %v3260_v19  ;;  %v1794_v29 = vmul.f32 %v1791_v56, %v3283_v60 }
 0x1bb   : > { %v3558_v15 = vpop.permute.xlu1 %952  ;;  %v972_v25 = vpop.permute.xlu0 %971  ;;  %v1756_v39 = vrot.slane %v1750_v43, 1  ;;  %v1780_v30 = vrot.slane %v1773_v62, 2  ;;  %v1835_v23 = vmul.f32 %v1833_v33, %v3260_v19  ;;  %v1840_v21 = vrot.slane %v1834_v59, 5 }
 0x1bc   : > { %v977_v20 = vadd.f32 %v972_v25, %v956_v57  ;;  %v957_v5 = vadd.f32 %v3558_v15, %v936_v3  ;;  %v1759_v25 = vrot.slane %v1752_v14, 1  ;;  %v1777_v15 = vrot.slane %v1771_v27, 2 }
 0x1bd   : > { %1644 = vrot.lane.b32.xlu1 %v1641_v1, %s2592_s3  ;;  %1663 = vrot.lane.b32.xlu0 %v1660_v6, %s2592_s3  ;;  %v1812_v1 = vstv %s3585_s28  ;;  %v1792_v6 = vmul.f32 %v1791_v56, %v3258_v8  ;;  %v1758_v22 = vsel %vm263_vm4, %v1756_v39, %v1757_v31  ;;  %v1799_v7 = vrot.slane %v1793_v41, 3  ;;  %s3793_s28 = sld [smem:[#allocation7 + $0x59]] }
 0x1be   : > { %v1813_v52 = vmul.f32 %v1812_v1, %v3258_v8  ;;  %v1814_v55 = vmul.f32 %v1812_v1, %v3260_v19  ;;  %v1801_v16 = vrot.slane %v1794_v29, 3  ;;  %v1760_v12 = vsel %vm263_vm4, %v1757_v31, %v1759_v25 }
 0x1bf   : > { %v974_v47 = vpop.permute.xlu1 %973  ;;  %v993_v42 = vpop.permute.xlu0 %992  ;;  %v1798_v36 = vrot.slane %v1792_v6, 3  ;;  %v1779_v18 = vsel %vm281_vm5, %v1777_v15, %v1778_v63  ;;  %v1841_v3 = vrot.slane %v1835_v23, 5  ;;  %v1854_v57 = vstv %s3617_s6  ;;  %s3859_s6 = sld [smem:[#allocation7 + $0x3e]] }
 0x1c0   : > { %v998_v46 = vadd.f32 %v993_v42, %v977_v20  ;;  %v978_v34 = vadd.f32 %v974_v47, %v957_v5  ;;  %v1815_v47 = vmul.f32 %v1812_v1, %v3283_v60  ;;  %v1819_v28 = vrot.slane %v1813_v52, 4 }
 0x1c1   : > { %1665 = vrot.lane.b32.xlu1 %v1662_v51, %s2592_s3  ;;  %1684 = vrot.lane.b32.xlu0 %v1681_v53, %s2592_s3  ;;  %v1820_v45 = vrot.slane %v1814_v55, 4  ;;  %v1802_v43 = vsel %vm299_vm6, %v1799_v7, %v1801_v16  ;;  %v3663_v56 = vstv %s3630_s19  ;;  %v1842_v54 = vsel %vm335_vm8, %v1840_v21, %v1841_v3  ;;  %s3893_s19 = sld [smem:[#allocation7 + $0x4c]] }
 0x1c2   : > { %v3667_v5 = vmul.f32 %v1854_v57, %v3260_v19  ;;  %v3679_v39 = vstv %s3637_s25  ;;  %v1207_v25 = vstv %s3642_s20  ;;  %v1231_v6 = vmul.f32 %v3663_v56, %v3258_v8  ;;  %s3916_s25 = sld [smem:[#allocation7 + $0x5a]]  ;;  %s2383_s20 = sshll.u32 %s2635_s13, 8 }
 0x1c3   : > { %v995_v4 = vpop.permute.xlu1 %994  ;;  %v1014_v50 = vpop.permute.xlu0 %1013  ;;  %v1821_v61 = vsel %vm317_vm7, %v1819_v28, %v1820_v45  ;;  %v3702_v15 = vstv %s3645_s23  ;;  %v1857_v16 = vmul.f32 %v1854_v57, %v3283_v60 }
 0x1c4   : > { %v1019_v35 = vadd.f32 %v1014_v50, %v998_v46  ;;  %v999_v48 = vadd.f32 %v995_v4, %v978_v34  ;;  %v1836_v4 = vmul.f32 %v1833_v33, %v3283_v60  ;;  %v3693_v34 = vmul.f32 %v3663_v56, %v3260_v19 }
 0x1c5   : > { %1686 = vrot.lane.b32.xlu1 %v1683_v0, %s2592_s3  ;;  %1705 = vrot.lane.b32.xlu0 %v1702_v13, %s2592_s3  ;;  %v1822_v13 = vrot.slane %v1815_v47, 4  ;;  %v1862_v55 = vrot.slane %v3667_v5, 6  ;;  %v1282_v23 = vmul.f32 %v3702_v15, %v3258_v8 }
 0x1c6   : > { %v1843_v14 = vrot.slane %v1836_v4, 5  ;;  %v1238_v59 = vrot.slane %v3693_v34, 2 }
 0x1c7   : > { %v1016_v49 = vpop.permute.xlu1 %1015  ;;  %v1035_v9 = vpop.permute.xlu0 %1034 }
 0x1c8   : > { %v1040_v2 = vadd.f32 %v1035_v9, %v1019_v35  ;;  %v1020_v53 = vadd.f32 %v1016_v49, %v999_v48  ;;  %v1781_v49 = vsel %vm281_vm5, %v1778_v63, %v1780_v30  ;;  %v3653_v9 = vstv %s3621_s17  ;;  %s3876_s17 = sld [smem:[#allocation7 + $0x37]] }
 0x1c9   : > { %1707 = vrot.lane.b32.xlu1 %v1704_v58, %s2592_s3  ;;  %1726 = vrot.lane.b32.xlu0 %v1723_v44, %s2592_s3  ;;  %v1823_v44 = vsel %vm317_vm7, %v1820_v45, %v1822_v13  ;;  %v1214_v46 = vmul.f32 %v3653_v9, %v3258_v8  ;;  %v3686_v31 = vsel %vm335_vm8, %v1841_v3, %v1843_v14  ;;  %v3710_v63 = vstv %s3649_s29  ;;  %v3762_v14 = vld [vmem:[#allocation2 + $0x18] sm:$0xff] }
 0x1ca   : > { %v1237_v30 = vrot.slane %v1231_v6, 2  ;;  %v3789_v6 = vld [vmem:[#allocation2 + $0x28] sm:$0x3f] }
 0x1cb   : > { %v1037_v11 = vpop.permute.xlu1 %1036  ;;  %v1056_v17 = vpop.permute.xlu0 %1055  ;;  %v1220_v48 = vrot.slane %v1214_v46, 1 }
 0x1cc   : > { %v1061_v24 = vadd.f32 %v1056_v17, %v1040_v2  ;;  %v1041_v50 = vadd.f32 %v1037_v11, %v1020_v53  ;;  %v3676_v17 = vmul.f32 %v3653_v9, %v3260_v19  ;;  %v1265_v2 = vmul.f32 %v3679_v39, %v3258_v8 }
 0x1cd   : > { %1728 = vrot.lane.b32.xlu1 %v1725_v38, %s2592_s3  ;;  %1740 = vrot.lane.b32.xlu0 %v1736_v37, %s4033_s5  ;;  %s3635_s3 = sld [smem:[#allocation7 + $0x46]]  ;;  %v1800_v37 = vsel %vm299_vm6, %v1798_v36, %v1799_v7  ;;  %v3726_v53 = vmul.f32 %v3702_v15, %v3260_v19  ;;  %v1299_v7 = vmul.f32 %v3710_v63, %v3258_v8 }
 0x1cf   : > { %v1058_v42 = vpop.permute.xlu1 %1057  ;;  %v1070_v51 = vpop.permute.xlu0 %1069  ;;  %v1289_v3 = vrot.slane %v3726_v53, 5 }
 0x1d0   : > { %v1075_v0 = vadd.f32 %v1070_v51, %v1061_v24  ;;  %v1062_v58 = vadd.f32 %v1058_v42, %v1041_v50  ;;  %v1221_v51 = vrot.slane %v3676_v17, 1  ;;  %v1208_v50 = vmul.f32 %v1207_v25, %v3258_v8 }
 0x1d1   : > { %1742 = vrot.lane.b32.xlu1 %v1737_v32, %s4033_s5  ;;  %1761 = vrot.lane.b32.xlu0 %v1758_v22, %s4033_s5  ;;  %v1855_v32 = vmul.f32 %v1854_v57, %v3258_v8  ;;  %v3717_v22 = vmul.f32 %v3679_v39, %v3260_v19 }
 0x1d2   : > { %v1222_v21 = vsel %vm263_vm4, %v1220_v48, %v1221_v51 }
 0x1d3   : > { %v1072_v40 = vpop.permute.xlu1 %1071  ;;  %v1091_v10 = vpop.permute.xlu0 %1090  ;;  %v3672_v62 = vstv %s3635_s3  ;;  %v1861_v35 = vrot.slane %v1855_v32, 6  ;;  %s3904_s3 = sld [smem:[#allocation7 + $0x53]] }
 0x1d4   : > { %v1096_v26 = vadd.f32 %v1091_v10, %v1075_v0  ;;  %v1076_v20 = vadd.f32 %v1072_v40, %v1062_v58  ;;  %v1248_v41 = vmul.f32 %v3672_v62, %v3258_v8  ;;  %v3699_v33 = vmul.f32 %v3672_v62, %v3260_v19 }
 0x1d5   : > { %1763 = vrot.lane.b32.xlu1 %v1760_v12, %s4033_s5  ;;  %1782 = vrot.lane.b32.xlu0 %v1779_v18, %s4033_s5  ;;  %v1863_v4 = vsel %vm353_vm9, %v1861_v35, %v1862_v55  ;;  %v1271_v0 = vrot.slane %v1265_v2, 4  ;;  %v3738_v12 = vmul.f32 %v3710_v63, %v3260_v19  ;;  %v1272_v10 = vrot.slane %v3717_v22, 4 }
 0x1d6   : > { %v1254_v24 = vrot.slane %v1248_v41, 3  ;;  %v1255_v36 = vrot.slane %v3699_v33, 3  ;;  %v1889_v18 = vstv %s3681_s7  ;;  %v3750_v8 = vsel %vm281_vm5, %v1237_v30, %v1238_v59 }
 0x1d7   : > { %v1093_v38 = vpop.permute.xlu1 %1092  ;;  %v1112_v27 = vpop.permute.xlu0 %1111  ;;  %v1288_v19 = vrot.slane %v1282_v23, 5  ;;  %v1305_v58 = vrot.slane %v1299_v7, 6  ;;  %v3774_v5 = vsel %vm317_vm7, %v1271_v0, %v1272_v10  ;;  %v1233_v35 = vmul.f32 %v3789_v6, %v3663_v56 }
 0x1d8   : > { %v1097_v1 = vadd.f32 %v1093_v38, %v1076_v20  ;;  %v1117_v11 = vadd.f32 %v1112_v27, %v1096_v26  ;;  %v3758_v57 = vsel %vm299_vm6, %v1254_v24, %v1255_v36  ;;  %v1864_v26 = vrot.slane %v1857_v16, 6 }
 0x1d9   : > { %1784 = vrot.lane.b32.xlu1 %v1781_v49, %s4033_s5  ;;  %1803 = vrot.lane.b32.xlu0 %v1800_v37, %s4033_s5  ;;  %v1875_v49 = vstv %s3704_s30  ;;  %v1890_v20 = vmul.f32 %v3762_v14, %v1889_v18  ;;  %v1910_v38 = vstv %s3712_s16  ;;  %v1892_v41 = vmul.f32 %v3789_v6, %v1889_v18  ;;  %s3968_s16 = scalar_lea.hbm %s4017_s2, %s2383_s20 }
 0x1da   : > { %v3811_v30 = vmul.f32 %v3789_v6, %v3679_v39  ;;  %v1240_v24 = vrot.slane %v1233_v35, 2  ;;  %v1284_v7 = vmul.f32 %v3789_v6, %v3702_v15  ;;  %v1931_v16 = vstv %s3753_s26  ;;  %s2169_s26 = scalar_lea.sflag [#allocation5], %s2741_s14 }
 0x1db   : > { %v1114_v29 = vpop.permute.xlu1 %1113  ;;  %v1133_v52 = vpop.permute.xlu0 %1132  ;;  %v1896_v48 = vrot.slane %v1890_v20, 1  ;;  %v1932_v15 = vmul.f32 %v3762_v14, %v1931_v16  ;;  %v1973_v20 = vstv %s3793_s28 }
 0x1dc   : > { %v1118_v47 = vadd.f32 %v1114_v29, %v1097_v1  ;;  %v1138_v42 = vadd.f32 %v1133_v52, %v1117_v11  ;;  %v3785_v1 = vsel %vm335_vm8, %v1288_v19, %v1289_v3  ;;  %v1216_v11 = vmul.f32 %v3653_v9, %v3283_v60 }
 0x1dd   : > { %1805 = vrot.lane.b32.xlu1 %v1802_v43, %s4033_s5  ;;  %1824 = vrot.lane.b32.xlu0 %v1821_v61, %s4033_s5  ;;  %v1306_v61 = vrot.slane %v3738_v12, 6  ;;  %v1911_v29 = vmul.f32 %v3762_v14, %v1910_v38  ;;  %v1952_v19 = vstv %s3769_s27  ;;  %s2596_s27 = smov [#allocation8]  }
 0x1de   : > { %v1223_v23 = vrot.slane %v1216_v11, 1  ;;  %v1953_v35 = vmul.f32 %v3762_v14, %v1952_v19  ;;  %v1955_v34 = vmul.f32 %v3789_v6, %v1952_v19  ;;  %s2516_s28 = sshll.u32 %s2596_s27, 4  ;;  %s2517_s28 = int_to_ptr.vmem [resolvable:$false] %s2516_s28 }
 0x1df   : > { %v1135_v28 = vpop.permute.xlu1 %1134  ;;  %v1154_v45 = vpop.permute.xlu0 %1153  ;;  %v3802_v60 = vsel %vm353_vm9, %v1305_v58, %v1306_v61 }
 0x1e0   : > { %v1139_v13 = vadd.f32 %v1135_v28, %v1118_v47  ;;  %v1159_v40 = vadd.f32 %v1154_v45, %v1138_v42  ;;  %v1250_v42 = vmul.f32 %v3789_v6, %v3672_v62  ;;  %v1917_v62 = vrot.slane %v1911_v29, 2 }
 0x1e1   : > { %1826 = vrot.lane.b32.xlu1 %v1823_v44, %s4033_s5  ;;  %1845 = vrot.lane.b32.xlu0 %v1842_v54, %s4033_s5  ;;  %v3765_v44 = vld [vmem:[#allocation2 + $0x20] sm:$0xff]  ;;  %v1938_v29 = vrot.slane %v1932_v15, 3  ;;  %v1959_v33 = vrot.slane %v1953_v35, 4 }
 0x1e2   : > { %v1891_v32 = vmul.f32 %v3765_v44, %v1889_v18  ;;  %v1209_v46 = vmul.f32 %v3765_v44, %v1207_v25  ;;  %v1865_v25 = vsel %vm353_vm9, %v1862_v55, %v1864_v26  ;;  %v3805_v2 = vmul.f32 %v3765_v44, %v1910_v38 }
 0x1e3   : > { %v1156_v37 = vpop.permute.xlu1 %1155  ;;  %v1175_v43 = vpop.permute.xlu0 %1174  ;;  %v1877_v45 = vmul.f32 %v3765_v44, %v1875_v49  ;;  %v1913_v18 = vmul.f32 %v3789_v6, %v1910_v38 }
 0x1e4   : > { %v1160_v27 = vadd.f32 %v1156_v37, %v1139_v13  ;;  %v1180_v54 = vadd.f32 %v1175_v43, %v1159_v40  ;;  %v1897_v56 = vrot.slane %v1891_v32, 1  ;;  %v1918_v40 = vrot.slane %v3805_v2, 2 }
 0x1e5   : > { %1847 = vrot.lane.b32.xlu1 %v3686_v31, %s4033_s5  ;;  %1866 = vrot.lane.b32.xlu0 %v1863_v4, %s4033_s5  ;;  %v1876_v31 = vmul.f32 %v3762_v14, %v1875_v49  ;;  %v1899_v4 = vrot.slane %v1892_v41, 1  ;;  %v1224_v49 = vsel %vm263_vm4, %v1221_v51, %v1223_v23  ;;  %v1257_v37 = vrot.slane %v1250_v42, 3 }
 0x1e6   : > { %v1898_v13 = vsel %vm263_vm4, %v1896_v48, %v1897_v56  ;;  %v1274_v43 = vrot.slane %v3811_v30, 4  ;;  %v1920_v11 = vrot.slane %v1913_v18, 2  ;;  %v1301_v48 = vmul.f32 %v3789_v6, %v3710_v63 }
 0x1e7   : > { %v1177_v52 = vpop.permute.xlu1 %1176  ;;  %v1196_v9 = vpop.permute.xlu0 %1195  ;;  %v1900_v38 = vsel %vm263_vm4, %v1897_v56, %v1899_v4  ;;  %v1975_v42 = vmul.f32 %v3765_v44, %v1973_v20 }
 0x1e8   : > { %v1181_v55 = vadd.f32 %v1177_v52, %v1160_v27  ;;  %v1201_v47 = vadd.f32 %v1196_v9, %v1180_v54  ;;  %v1934_v27 = vmul.f32 %v3789_v6, %v1931_v16  ;;  %v1919_v54 = vsel %vm281_vm5, %v1917_v62, %v1918_v40 }
 0x1e9   : > { %1868 = vrot.lane.b32.xlu1 %v1865_v25, %s4033_s5  ;;  %1880 = vrot.lane.b32.xlu0 %v1876_v31, %s2594_s8  ;;  %v1954_v25 = vmul.f32 %v3765_v44, %v1952_v19  ;;  %v1258_v52 = vsel %vm299_vm6, %v1255_v36, %v1257_v37  ;;  %v1291_v9 = vrot.slane %v1284_v7, 5  ;;  %v1974_v36 = vmul.f32 %v3762_v14, %v1973_v20  ;;  %s3882_s5 = sld [smem:[#allocation7 + $0x45]] }
 0x1ea   : > { %v1210_v28 = vadd.f32 %v1208_v50, %v1201_v47  ;;  %v1933_v50 = vmul.f32 %v3765_v44, %v1931_v16  ;;  %v1941_v2 = vrot.slane %v1934_v27, 3  ;;  %v1308_v16 = vrot.slane %v1301_v48, 6 }
 0x1eb   : > { %v1198_v0 = vpop.permute.xlu1 %1197  ;;  %v3819_v39 = vpop.permute.xlu0 %1320  ;;  %v1960_v47 = vrot.slane %v1954_v25, 4  ;;  %v1292_v7 = vsel %vm335_vm8, %v1289_v3, %v1291_v9  ;;  %v1976_v62 = vmul.f32 %v3789_v6, %v1973_v20  ;;  %v1962_v3 = vrot.slane %v1955_v34, 4 }
 0x1ec   : > { %v1227_v58 = vadd.f32 %v1222_v21, %v1210_v28  ;;  %v1202_v26 = vadd.f32 %v1198_v0, %v1181_v55  ;;  %v1994_v28 = vstv %s3834_s4  ;;  %v1980_v0 = vrot.slane %v1974_v36, 5  ;;  %s2518_s4 = scalar_lea.vmem %s2517_s28, 512 }
 0x1ed   : > { %1882 = vrot.lane.b32.xlu1 %v1877_v45, %s2594_s8  ;;  %1901 = vrot.lane.b32.xlu0 %v1898_v13, %s2594_s8  ;;  %v1961_v53 = vsel %vm317_vm7, %v1959_v33, %v1960_v47  ;;  %v1981_v13 = vrot.slane %v1975_v42, 5  ;;  %v1996_v19 = vmul.f32 %v3765_v44, %v1994_v28  ;;  %v1963_v37 = vsel %vm317_vm7, %v1960_v47, %v1962_v3 }
 0x1ee   : > { %v1244_v21 = vadd.f32 %v3750_v8, %v1227_v58  ;;  %v1211_v32 = vadd.f32 %v1209_v46, %v1202_v26  ;;  %v1939_v8 = vrot.slane %v1933_v50, 3  ;;  %v1241_v46 = vsel %vm281_vm5, %v1238_v59, %v1240_v24 }
 0x1ef   : > { %v3839_v17 = vpop.permute.xlu1 %1322  ;;  %v1342_v51 = vpop.permute.xlu0 %1341  ;;  %v1275_v24 = vsel %vm317_vm7, %v1272_v10, %v1274_v43  ;;  %v1309_v58 = vsel %vm353_vm9, %v1306_v61, %v1308_v16  ;;  %v1983_v50 = vrot.slane %v1976_v62, 5  ;;  %v1982_v43 = vsel %vm335_vm8, %v1980_v0, %v1981_v13 }
 0x1f0   : > { %v1261_v31 = vadd.f32 %v3758_v57, %v1244_v21  ;;  %v1228_v41 = vadd.f32 %v1224_v49, %v1211_v32  ;;  %v1940_v23 = vsel %vm299_vm6, %v1938_v29, %v1939_v8  ;;  %v1942_v4 = vsel %vm299_vm6, %v1939_v8, %v1941_v2 }
 0x1f1   : > { %1903 = vrot.lane.b32.xlu1 %v1900_v38, %s2594_s8  ;;  %1922 = vrot.lane.b32.xlu0 %v1919_v54, %s2594_s8  ;;  %v1997_v20 = vmul.f32 %v3789_v6, %v1994_v28  ;;  %v2029_v21 = vstv %s3859_s6  ;;  %v2002_v38 = vrot.slane %v1996_v19, 6  ;;  %v2015_v54 = vstv %s3876_s17 }
 0x1f2   : > { %v1278_v57 = vadd.f32 %v3774_v5, %v1261_v31  ;;  %v1245_v56 = vadd.f32 %v1241_v46, %v1228_v41  ;;  %v1921_v5 = vsel %vm281_vm5, %v1918_v40, %v1920_v11  ;;  %v1984_v25 = vsel %vm335_vm8, %v1981_v13, %v1983_v50 }
 0x1f3   : > { %v1344_v55 = vpop.permute.xlu1 %1343  ;;  %v1363_v59 = vpop.permute.xlu0 %1362  ;;  %v2004_v31 = vrot.slane %v1997_v20, 6  ;;  %v2030_v41 = vmul.f32 %v3762_v14, %v2029_v21  ;;  %v2071_v47 = vstv %s3893_s19  ;;  %v2092_v3 = vstv %s3904_s3 }
 0x1f4   : > { %v1295_v63 = vadd.f32 %v3785_v1, %v1278_v57  ;;  %v1262_v30 = vadd.f32 %v1258_v52, %v1245_v56  ;;  %v2050_v52 = vstv %s3882_s5  ;;  %v2016_v57 = vmul.f32 %v3762_v14, %v2015_v54 }
 0x1f5   : > { %1924 = vrot.lane.b32.xlu1 %v1921_v5, %s2594_s8  ;;  %1943 = vrot.lane.b32.xlu0 %v1940_v23, %s2594_s8  ;;  %v2032_v56 = vmul.f32 %v3789_v6, %v2029_v21  ;;  %v2051_v33 = vmul.f32 %v3762_v14, %v2050_v52  ;;  %v2017_v23 = vmul.f32 %v3765_v44, %v2015_v54 }
 0x1f6   : > { %v1312_v1 = vadd.f32 %v3802_v60, %v1295_v63  ;;  %v1279_v45 = vadd.f32 %v1275_v24, %v1262_v30  ;;  %v1995_v60 = vmul.f32 %v3762_v14, %v1994_v28  ;;  %v2005_v63 = vsel %vm353_vm9, %v2002_v38, %v2004_v31 }
 0x1f7   : > { %v1365_v22 = vpop.permute.xlu1 %1364  ;;  %v1384_v10 = vpop.permute.xlu0 %1383  ;;  %v2052_v30 = vmul.f32 %v3765_v44, %v2050_v52  ;;  %v2039_v24 = vrot.slane %v2032_v56, 1  ;;  %v2073_v62 = vmul.f32 %v3765_v44, %v2071_v47  ;;  %v2074_v13 = vmul.f32 %v3789_v6, %v2071_v47 }
 0x1f8   : > { %v1296_v40 = vadd.f32 %v1292_v7, %v1279_v45  ;;  %v1326_v18 = vadd.f32 %v3819_v39, %v1312_v1  ;;  %v2001_v32 = vrot.slane %v1995_v60, 6  ;;  %v2053_v7 = vmul.f32 %v3789_v6, %v2050_v52 }
 0x1f9   : > { %1945 = vrot.lane.b32.xlu1 %v1942_v4, %s2594_s8  ;;  %1964 = vrot.lane.b32.xlu0 %v1961_v53, %s2594_s8  ;;  %v2057_v45 = vrot.slane %v2051_v33, 2  ;;  %v2072_v4 = vmul.f32 %v3762_v14, %v2071_v47  ;;  %v2058_v53 = vrot.slane %v2052_v30, 2  ;;  %v2079_v19 = vrot.slane %v2073_v62, 3 }
 0x1fa   : > { %v1313_v26 = vadd.f32 %v1309_v58, %v1296_v40  ;;  %v1347_v15 = vadd.f32 %v1342_v51, %v1326_v18  ;;  %v2003_v46 = vsel %vm353_vm9, %v2001_v32, %v2002_v38  ;;  %v2060_v0 = vrot.slane %v2053_v7, 2 }
 0x1fb   : > { %v1386_v49 = vpop.permute.xlu1 %1385  ;;  %v1405_v39 = vpop.permute.xlu0 %1404  ;;  %v2078_v60 = vrot.slane %v2072_v4, 3  ;;  %v2093_v58 = vmul.f32 %v3762_v14, %v2092_v3  ;;  %v2081_v20 = vrot.slane %v2074_v13, 3 }
 0x1fc   : > { %v1327_v12 = vadd.f32 %v3839_v17, %v1313_v26  ;;  %v1368_v61 = vadd.f32 %v1363_v59, %v1347_v15  ;;  %v2031_v17 = vmul.f32 %v3765_v44, %v2029_v21  ;;  %v2094_v26 = vmul.f32 %v3765_v44, %v2092_v3 }
 0x1fd   : > { %1966 = vrot.lane.b32.xlu1 %v1963_v37, %s2594_s8  ;;  %1985 = vrot.lane.b32.xlu0 %v1982_v43, %s2594_s8  ;;  %v2113_v37 = vstv %s3916_s25  ;;  %v2061_v43 = vsel %vm281_vm5, %v2058_v53, %v2060_v0  ;;  %v2095_v21 = vmul.f32 %v3789_v6, %v2092_v3  ;;  %v2080_v32 = vsel %vm299_vm6, %v2078_v60, %v2079_v19 }
 0x1fe   : > { %v1348_v27 = vadd.f32 %v1344_v55, %v1327_v12  ;;  %v1389_v51 = vadd.f32 %v1384_v10, %v1368_v61  ;;  %v2036_v55 = vrot.slane %v2030_v41, 1  ;;  %v2037_v59 = vrot.slane %v2031_v17, 1 }
 0x1ff   : > { %v1407_v11 = vpop.permute.xlu1 %1406  ;;  %v1426_v35 = vpop.permute.xlu0 %1425  ;;  %v2099_v38 = vrot.slane %v2093_v58, 4  ;;  %v2082_v31 = vsel %vm299_vm6, %v2079_v19, %v2081_v20 }
 0x200   : > { %v1369_v29 = vadd.f32 %v1365_v22, %v1348_v27  ;;  %v1410_v8 = vadd.f32 %v1405_v39, %v1389_v51  ;;  %v2038_v1 = vsel %vm263_vm4, %v2036_v55, %v2037_v59  ;;  %v2059_v39 = vsel %vm281_vm5, %v2057_v45, %v2058_v53 }
 0x201   : > { %1987 = vrot.lane.b32.xlu1 %v1984_v25, %s2594_s8  ;;  %2006 = vrot.lane.b32.xlu0 %v2003_v46, %s2594_s8  ;;  %v2100_v27 = vrot.slane %v2094_v26, 4  ;;  %v2115_v25 = vmul.f32 %v3765_v44, %v2113_v37  ;;  %v2116_v46 = vmul.f32 %v3789_v6, %v2113_v37 }
 0x202   : > { %v1390_v9 = vadd.f32 %v1386_v49, %v1369_v29  ;;  %v1431_v48 = vadd.f32 %v1426_v35, %v1410_v8  ;;  %v2040_v49 = vsel %vm263_vm4, %v2037_v59, %v2039_v24  ;;  %v2114_v35 = vmul.f32 %v3762_v14, %v2113_v37 }
 0x203   : > { %v1428_v2 = vpop.permute.xlu1 %1427  ;;  %v1447_v34 = vpop.permute.xlu0 %1446  ;;  %v2101_v29 = vsel %vm317_vm7, %v2099_v38, %v2100_v27  ;;  %v2102_v8 = vrot.slane %v2095_v21, 4  ;;  %v2123_v47 = vrot.slane %v2116_v46, 5 }
 0x204   : > { %v1411_v36 = vadd.f32 %v1407_v11, %v1390_v9  ;;  %v1452_v42 = vadd.f32 %v1447_v34, %v1431_v48  ;;  %v2120_v48 = vrot.slane %v2114_v35, 5 }
 0x205   : > { %2008 = vrot.lane.b32.xlu1 %v2005_v63, %s2594_s8  ;;  %2020 = vrot.lane.b32.xlu0 %v2016_v57, %s2595_s24  ;;  %s2374_s8 = sld [smem:[#allocation7 + $0x61]]  ;;  %v2121_v57 = vrot.slane %v2115_v25, 5  ;;  %v2103_v55 = vsel %vm317_vm7, %v2100_v27, %v2102_v8 }
 0x206   : > { %v1432_v5 = vadd.f32 %v1428_v2, %v1411_v36 }
 0x207   : > { %v1449_v16 = vpop.permute.xlu1 %1448  ;;  %v1461_v28 = vpop.permute.xlu0 %1460  ;;  %v2122_v33 = vsel %vm335_vm8, %v2120_v48, %v2121_v57  ;;  %v2124_v63 = vsel %vm335_vm8, %v2121_v57, %v2123_v47 }
 0x208   : > { %v1453_v22 = vadd.f32 %v1449_v16, %v1432_v5  ;;  %v1466_v10 = vadd.f32 %v1461_v28, %v1452_v42 }
 0x209   : > { %2022 = vrot.lane.b32.xlu1 %v2017_v23, %s2595_s24  ;;  %2041 = vrot.lane.b32.xlu0 %v2038_v1, %s2595_s24 }
 0x20b   : > { %v1463_v40 = vpop.permute.xlu1 %1462  ;;  %v1482_v18 = vpop.permute.xlu0 %1481  ;;  %v2134_v51 = vstv %s2374_s8 }
 0x20c   : > { %v1467_v15 = vadd.f32 %v1463_v40, %v1453_v22  ;;  %v1487_v50 = vadd.f32 %v1482_v18, %v1466_v10  ;;  %v2135_v52 = vmul.f32 %v3762_v14, %v2134_v51  ;;  %v2136_v56 = vmul.f32 %v3765_v44, %v2134_v51 }
 0x20d   : > { %2043 = vrot.lane.b32.xlu1 %v2040_v49, %s2595_s24  ;;  %2062 = vrot.lane.b32.xlu0 %v2059_v39, %s2595_s24  ;;  %v2137_v59 = vmul.f32 %v3789_v6, %v2134_v51 }
 0x20e   : > { %v2141_v36 = vrot.slane %v2135_v52, 6  ;;  %v2142_v14 = vrot.slane %v2136_v56, 6 }
 0x20f   : > { %v1484_v12 = vpop.permute.xlu1 %1483  ;;  %v1503_v61 = vpop.permute.xlu0 %1502  ;;  %v2144_v5 = vrot.slane %v2137_v59, 6 }
 0x210   : > { %v1488_v54 = vadd.f32 %v1484_v12, %v1467_v15  ;;  %v3937_v11 = vadd.f32 %v1503_v61, %v1487_v50  ;;  %v2143_v30 = vsel %vm353_vm9, %v2141_v36, %v2142_v14 }
 0x211   : > { %2064 = vrot.lane.b32.xlu1 %v2061_v43, %s2595_s24  ;;  %2083 = vrot.lane.b32.xlu0 %v2080_v32, %s2595_s24  ;;  %v2145_v24 = vsel %vm353_vm9, %v2142_v14, %v2144_v5 }
 0x213   : > { %v1505_v41 = vpop.permute.xlu1 %1504  ;;  %v1524_v17 = vpop.permute.xlu0 %1523 }
 0x214   : > { %v1509_v9 = vadd.f32 %v1505_v41, %v1488_v54  ;;  %v1529_v43 = vadd.f32 %v1524_v17, %v3937_v11 }
 0x215   : > { %2085 = vrot.lane.b32.xlu1 %v2082_v31, %s2595_s24  ;;  %2104 = vrot.lane.b32.xlu0 %v2101_v29, %s2595_s24 }
 0x217   : > { %v1526_v2 = vpop.permute.xlu1 %1525  ;;  %v1545_v34 = vpop.permute.xlu0 %1544 }
 0x218   : > { %v1550_v12 = vadd.f32 %v1545_v34, %v1529_v43  ;;  %v1530_v61 = vadd.f32 %v1526_v2, %v1509_v9 }
 0x219   : > { %2106 = vrot.lane.b32.xlu1 %v2103_v55, %s2595_s24  ;;  %2125 = vrot.lane.b32.xlu0 %v2122_v33, %s2595_s24 }
 0x21b   : > { %v1547_v44 = vpop.permute.xlu1 %1546  ;;  %v1566_v42 = vpop.permute.xlu0 %1565 }
 0x21c   : > { %v1571_v32 = vadd.f32 %v1566_v42, %v1550_v12  ;;  %v1551_v51 = vadd.f32 %v1547_v44, %v1530_v61 }
 0x21d   : > { %2127 = vrot.lane.b32.xlu1 %v2124_v63, %s2595_s24  ;;  %2146 = vrot.lane.b32.xlu0 %v2143_v30, %s2595_s24 }
 0x21f   : > { %v1568_v6 = vpop.permute.xlu1 %1567  ;;  %v1587_v23 = vpop.permute.xlu0 %1586 }
 0x220   : > { %v1592_v54 = vadd.f32 %v1587_v23, %v1571_v32  ;;  %v1572_v35 = vadd.f32 %v1568_v6, %v1551_v51 }
 0x221   : > { %2148 = vrot.lane.b32.xlu1 %v2145_v24, %s2595_s24  ;;  %s2277_s24 = sshll.u32 %s2741_s14, 4 }
 0x222   : > { %s175_s23 = scalar_lea.vmem [#allocation8], %s2277_s24 }
 0x223   : > { %v1589_v7 = vpop.permute.xlu1 %1588  ;;  %v1601_v16 = vpop.permute.xlu0 %1600  ;;  %s2182_s29 = sshll.u32 %s175_s23, 4  ;;  %s3970_s29 = int_to_ptr.vmem [resolvable:$true] %s2182_s29 }
 0x224   : > { %v1606_v25 = vadd.f32 %v1601_v16, %v1592_v54  ;;  %v1593_v29 = vadd.f32 %v1589_v7, %v1572_v35  ;;  %s2512_s13 = scalar_lea.vmem %s3970_s29, 256  ;;  %p2519_p10 = scmp.lt.s32.totalorder %s3970_s29, %s2517_s28 }
 0x225   : > { %p2513_p13 = scmp.ne.s32.totalorder %s3970_s29, %s2512_s13  ;;  %p2520_p1 = scmp.lt.s32.totalorder %s2518_s4, %s2512_s13 }
 0x227   : > { %v1603_v28 = vpop.permute.xlu1 %1602  ;;  %v1622_v1 = vpop.permute.xlu0 %1621  ;;  %p2514_p8 = pnand %p2513_p13, %p4034_p12  ;;  %p2521_p4 = por %p2520_p1, %p2519_p10 }
 0x228   : > { %v1627_v8 = vadd.f32 %v1622_v1, %v1606_v25  ;;  %v1607_v46 = vadd.f32 %v1603_v28, %v1593_v29 }
 0x229   : > { %p2515_p9 = pneg %p2514_p8 }
 0x22b   : > { %v1624_v45 = vpop.permute.xlu1 %1623  ;;  %v1643_v4 = vpop.permute.xlu0 %1642  ;;  %p2522_p11 = pnand %p2521_p4, %p2515_p9 }
 0x22c   : > { %v1648_v52 = vadd.f32 %v1643_v4, %v1627_v8  ;;  %v1628_v11 = vadd.f32 %v1624_v45, %v1607_v46 }
 0x22f   : > { %v1645_v62 = vpop.permute.xlu1 %1644  ;;  %v1664_v22 = vpop.permute.xlu0 %1663 }
 0x230   : > { %v1669_v17 = vadd.f32 %v1664_v22, %v1648_v52  ;;  %v1649_v56 = vadd.f32 %v1645_v62, %v1628_v11 }
 0x233   : > { %v1666_v10 = vpop.permute.xlu1 %1665  ;;  %v1685_v53 = vpop.permute.xlu0 %1684 }
 0x234   : > { %v1690_v34 = vadd.f32 %v1685_v53, %v1669_v17  ;;  %v1670_v55 = vadd.f32 %v1666_v10, %v1649_v56 }
 0x237   : > { %v1687_v3 = vpop.permute.xlu1 %1686  ;;  %v1706_v0 = vpop.permute.xlu0 %1705 }
 0x238   : > { %v1711_v59 = vadd.f32 %v1706_v0, %v1690_v34  ;;  %v1691_v33 = vadd.f32 %v1687_v3, %v1670_v55 }
 0x23b   : > { %v1708_v13 = vpop.permute.xlu1 %1707  ;;  %v1727_v40 = vpop.permute.xlu0 %1726 }
 0x23c   : > { %v1732_v47 = vadd.f32 %v1727_v40, %v1711_v59  ;;  %v1712_v44 = vadd.f32 %v1708_v13, %v1691_v33 }
 0x23f   : > { %v1729_v18 = vpop.permute.xlu1 %1728  ;;  %v1741_v60 = vpop.permute.xlu0 %1740 }
 0x240   : > { %v1746_v42 = vadd.f32 %v1741_v60, %v1732_v47  ;;  %v1733_v63 = vadd.f32 %v1729_v18, %v1712_v44 }
 0x243   : > { %v1743_v19 = vpop.permute.xlu1 %1742  ;;  %v1762_v58 = vpop.permute.xlu0 %1761 }
 0x244   : > { %v1767_v30 = vadd.f32 %v1762_v58, %v1746_v42  ;;  %v1747_v23 = vadd.f32 %v1743_v19, %v1733_v63 }
 0x247   : > { %v1764_v26 = vpop.permute.xlu1 %1763  ;;  %v1783_v15 = vpop.permute.xlu0 %1782 }
 0x248   : > { %v1788_v24 = vadd.f32 %v1783_v15, %v1767_v30  ;;  %v1768_v7 = vadd.f32 %v1764_v26, %v1747_v23 }
 0x24b   : > { %v1785_v50 = vpop.permute.xlu1 %1784  ;;  %v1804_v49 = vpop.permute.xlu0 %1803 }
 0x24c   : > { %v1809_v16 = vadd.f32 %v1804_v49, %v1788_v24  ;;  %v1789_v45 = vadd.f32 %v1785_v50, %v1768_v7 }
 0x24f   : > { %v1806_v39 = vpop.permute.xlu1 %1805  ;;  %v1825_v37 = vpop.permute.xlu0 %1824 }
 0x250   : > { %v1830_v4 = vadd.f32 %v1825_v37, %v1809_v16  ;;  %v1810_v62 = vadd.f32 %v1806_v39, %v1789_v45 }
 0x253   : > { %v1827_v20 = vpop.permute.xlu1 %1826  ;;  %v1846_v21 = vpop.permute.xlu0 %1845 }
 0x254   : > { %v1851_v22 = vadd.f32 %v1846_v21, %v1830_v4  ;;  %v1831_v3 = vadd.f32 %v1827_v20, %v1810_v62 }
 0x257   : > { %v1848_v38 = vpop.permute.xlu1 %1847  ;;  %v1867_v27 = vpop.permute.xlu0 %1866 }
 0x258   : > { %v1872_v0 = vadd.f32 %v1867_v27, %v1851_v22  ;;  %v1852_v13 = vadd.f32 %v1848_v38, %v1831_v3 }
 0x25b   : > { %v1869_v31 = vpop.permute.xlu1 %1868  ;;  %v1881_v41 = vpop.permute.xlu0 %1880 }
 0x25c   : > { %v1886_v40 = vadd.f32 %v1881_v41, %v1872_v0  ;;  %v1873_v58 = vadd.f32 %v1869_v31, %v1852_v13 }
 0x25f   : > { %v1883_v48 = vpop.permute.xlu1 %1882  ;;  %v1902_v57 = vpop.permute.xlu0 %1901 }
 0x260   : > { %v1907_v43 = vadd.f32 %v1902_v57, %v1886_v40  ;;  %v1887_v19 = vadd.f32 %v1883_v48, %v1873_v58 }
 0x263   : > { %v1904_v9 = vpop.permute.xlu1 %1903  ;;  %v1923_v2 = vpop.permute.xlu0 %1922 }
 0x264   : > { %v1928_v15 = vadd.f32 %v1923_v2, %v1907_v43  ;;  %v1908_v12 = vadd.f32 %v1904_v9, %v1887_v19 }
 0x267   : > { %v1925_v36 = vpop.permute.xlu1 %1924  ;;  %v1944_v14 = vpop.permute.xlu0 %1943 }
 0x268   : > { %v1949_v61 = vadd.f32 %v1944_v14, %v1928_v15  ;;  %v1929_v50 = vadd.f32 %v1925_v36, %v1908_v12 }
 0x26b   : > { %v1946_v5 = vpop.permute.xlu1 %1945  ;;  %v1965_v6 = vpop.permute.xlu0 %1964 }
 0x26c   : > { %v1970_v37 = vadd.f32 %v1965_v6, %v1949_v61  ;;  %v1950_v32 = vadd.f32 %v1946_v5, %v1929_v50 }
 0x26f   : > { %v1967_v28 = vpop.permute.xlu1 %1966  ;;  %v1986_v1 = vpop.permute.xlu0 %1985 }
 0x270   : > { %v1991_v51 = vadd.f32 %v1986_v1, %v1970_v37  ;;  %v1971_v20 = vadd.f32 %v1967_v28, %v1950_v32 }
 0x273   : > { %v1988_v10 = vpop.permute.xlu1 %1987  ;;  %v2007_v53 = vpop.permute.xlu0 %2006 }
 0x274   : > { %v2012_v27 = vadd.f32 %v2007_v53, %v1991_v51  ;;  %v1992_v35 = vadd.f32 %v1988_v10, %v1971_v20 }
 0x277   : > { %v2009_v18 = vpop.permute.xlu1 %2008  ;;  %v2021_v60 = vpop.permute.xlu0 %2020 }
 0x278   : > { %v2026_v25 = vadd.f32 %v2021_v60, %v2012_v27  ;;  %v2013_v31 = vadd.f32 %v2009_v18, %v1992_v35 }
 0x27b   : > { %v2023_v26 = vpop.permute.xlu1 %2022  ;;  %v2042_v49 = vpop.permute.xlu0 %2041 }
 0x27c   : > { %v2047_v41 = vadd.f32 %v2042_v49, %v2026_v25  ;;  %v2027_v46 = vadd.f32 %v2023_v26, %v2013_v31 }
 0x27f   : > { %v2044_v39 = vpop.permute.xlu1 %2043  ;;  %v2063_v21 = vpop.permute.xlu0 %2062 }
 0x280   : > { %v2068_v52 = vadd.f32 %v2063_v21, %v2047_v41  ;;  %v2048_v48 = vadd.f32 %v2044_v39, %v2027_v46 }
 0x283   : > { %v2065_v38 = vpop.permute.xlu1 %2064  ;;  %v2084_v54 = vpop.permute.xlu0 %2083 }
 0x284   : > { %v2089_v57 = vadd.f32 %v2084_v54, %v2068_v52  ;;  %v2069_v56 = vadd.f32 %v2065_v38, %v2048_v48 }
 0x287   : > { %v2086_v29 = vpop.permute.xlu1 %2085  ;;  %v2105_v8 = vpop.permute.xlu0 %2104 }
 0x288   : > { %v2110_v34 = vadd.f32 %v2105_v8, %v2089_v57  ;;  %v2090_v9 = vadd.f32 %v2086_v29, %v2069_v56 }
 0x28b   : > { %v2107_v11 = vpop.permute.xlu1 %2106  ;;  %v2126_v17 = vpop.permute.xlu0 %2125 }
 0x28c   : > { %v2131_v2 = vadd.f32 %v2126_v17, %v2110_v34  ;;  %v2111_v33 = vadd.f32 %v2107_v11, %v2090_v9 }
 0x28f   : > { %v2128_v55 = vpop.permute.xlu1 %2127  ;;  %v2147_v59 = vpop.permute.xlu0 %2146 }
 0x290   : > { %v2152_v47 = vadd.f32 %v2147_v59, %v2131_v2  ;;  %v2132_v36 = vadd.f32 %v2128_v55, %v2111_v33 }
 0x292   : > { %v2375_v14 = vmul.f32 -1.442695, %v2152_v47 }
 0x293   : > { %v2149_v44 = vpop.permute.xlu1 %2148 }
 0x294   : > { %2453 = vpow2.f32 %v2375_v14  ;;  %v2153_v42 = vadd.f32 %v2149_v44, %v2132_v36 }
 0x296   : > { %v2376_v63 = vmul.f32 -1.442695, %v2153_v42 }
 0x298   : > { %2455 = vpow2.f32 %v2376_v63 }
 0x29e   : > { %v2454_v30 = vpop.eup %2453 }
 0x29f   : > { %v2160_v5 = vadd.f32 1.0, %v2454_v30 }
 0x2a1   : > { %2457 = vrcp.f32 %v2160_v5 }
 0x2a2   : > { %v2456_v6 = vpop.eup %2455 }
 0x2a3   : > { %v2161_v23 = vadd.f32 1.0, %v2456_v6 }
 0x2a5   : > { %2459 = vrcp.f32 %v2161_v23 }
 0x2ab   : > { %v2458_v24 = vpop.eup %2457 }
 0x2ac   : > { %2166 = vst.msk [vmem:[%s175_s23] sm:$0xff] %vm192_vm0, %v2458_v24 }
 0x2af   : > { %v2460_v7 = vpop.eup %2459 }
 0x2b0   : > { %2167 = vst.msk [vmem:[%s175_s23 + $0x8] sm:$0xff] %vm192_vm0, %v2460_v7 }
 0x2b1   : > { %2525 = shalt.err (!%p2522_p11)
}
 0x2b2   : > { %s2526_s6 = scalar_lea.hbm %s3968_s16, 256  ;;  %s2530_s19 = scalar_lea.hbm %s4017_s2, 512 }
 0x2b3   : > { %p2527_p0 = scmp.ne.s32.totalorder %s3968_s16, %s2526_s6  ;;  %p2531_p6 = scmp.lt.u32.totalorder %s3968_s16, %s4017_s2 }
 0x2b4   : > { %p2532_p5 = scmp.lt.u32.totalorder %s2530_s19, %s2526_s6  ;;  %p2534_p13 = scmp.lt.u32.totalorder %s2526_s6, %s3968_s16 }
 0x2b5   : > { %p2528_p2 = pnand %p2527_p0, %p4034_p12 }
 0x2b6   : > { %p2533_p3 = por %p2532_p5, %p2531_p6 }
 0x2b7   : > { %p2529_p7 = pneg %p2528_p2 }
 0x2b8   : > { %p2535_p8 = por %p2534_p13, %p2533_p3 }
 0x2ba   : > { %p2536_p9 = pnand %p2535_p8, %p2529_p7 }
 0x2bc   : > { %2539 = shalt.err (!%p2536_p9)
}
 0x2bd   : > { %s2597_s8 = smov 128   ;;  %s2598_s24 = smov 8  }
 0x2be   : > { %2390 = dma.vmem_to_hbm [thread:$0]  (%p4034_p12), %s3970_s29, 256, %s3968_s16, %s2169_s26, %s2597_s8, %s2597_s8, %s2598_s24  }
 0x2bf PF: > { %s2197_s20 = sand.u32 1, %s2570_s9   ;;  %p4035_p10 = scmp.ne.s32.totalorder %s4026_s22, 0 }
 0x2c0   : > { %p4036_p1 = scmp.ge.s32.totalorder %s2582_s12, 2  ;;  %s2198_s23 = scalar_lea.sflag [#allocation5], %s2197_s20 }
 0x2c2   : > { %p2401_p4 = pnand %p4036_p1, %p4035_p10 }
 0x2c4   : > { %2565 = dma.done.wait (!%p2401_p4), %s2198_s23, 256  }
 0x2c5   : > { %2567 = vsyncadd (!%p2401_p4), %s2198_s23, 4294967040  ;;  %p16_p11 = scmp.ge.s32.totalorder %s2639_s15, 4   ;;  %s4037_s9 = smov %s2574_s10 }
 0x2c6   : > { %s4038_s10 = smov %s2578_s11  ;;  %s4039_s11 = smov %s2651_s18 }
 0x2c7   : > { %s4040_s12 = smov %s2639_s15  ;;  %18 = sbr.rel (!%p16_p11) target bundleno = 6 (0x6), region = 79 }
 0x2ce   :  { %2203 = vsyncpa [#allocation4], 1 }
 0x2cf   :  { %2205 = vsyncpa [#allocation4 + $0x1], 1 }
 0x2d0   :  { %2206 = vsyncpa [#allocation5], 1 }
 0x2d1   :  { %2208 = vsyncpa [#allocation5 + $0x1], 1 }
 0x2d2   :  { %2209 = vsyncpa [#allocation6], 1 }
 0x2d3   :  { %2211 = vsyncpa [#allocation6 + $0x1], 1 }

</bundles_post_ra>
